<compile_context>
chip_gen: v7x
topology: tpu7x:2x2x1
jax: 0.10.0
libtpu: 0.0.40
codegen_flags: <defaults>
</compile_context>

<pallas_src>
import math

import jax
import jax.numpy as jnp
from jax.experimental import pallas as pl
from jax.experimental.pallas import tpu as pltpu

# ---- small, module-consistent hyper-parameters (synthetic sizes) ----
B = 2          # batch
LQ = 16        # question length  (module constant Lq, scaled down)
LC = 8         # video length     (module constant Lc, scaled down)
CTX = 64       # ctx_dim (video feature dim), scaled down
DM = 32        # ctx_dim_m
D = DM         # QANet hidden size D (must equal ctx_dim_m for VQAttention math)
DWORD = 48     # word-embedding dim (Dword)
NH = 4         # self-attention heads
K_EMB = 7      # emb_enc EncoderBlock depthwise-conv kernel size
VOCAB = 50
NEG_INF = -1e30

# Fixed parameter ordering for the fused kernel's *refs unpacking.
_PARAM_ORDER = ["emb_table", "conv1d_w", "pos"]
for _i in range(2):
    _PARAM_ORDER += [f"hw_gate_w{_i}", f"hw_gate_b{_i}", f"hw_lin_w{_i}", f"hw_lin_b{_i}"]
for _i in range(4):
    _PARAM_ORDER += [f"normC_g{_i}", f"normC_b{_i}", f"dw_w{_i}", f"pw_w{_i}", f"pw_b{_i}"]
_PARAM_ORDER += ["norm1_g", "norm1_b", "mem_w", "qry_w",
                 "norm2_g", "norm2_b", "ffn1_w", "ffn1_b", "ffn2_w", "ffn2_b",
                 "trans_wT", "trans_b", "w4V", "w4Q", "w4mlu", "vq_bias",
                 "vq_resizer_w"]
_NP = len(_PARAM_ORDER)

# dot_general dimension numbers (2-D): NT = A @ B^T, TN = A^T @ B
_NT = (((1,), (1,)), ((), ()))
_TN = (((0,), (0,)), ((), ()))


# =====================================================================
# The single fused Pallas kernel (one grid step == one batch element)
# =====================================================================

def _fused_forward_kernel(vid_ref, qns_ref, vmask_ref, *refs):
    pr = dict(zip(_PARAM_ORDER, refs[:_NP]))
    out_ref, vidt_ref, qenc_ref = refs[_NP:]
    f32 = jnp.float32

    def W(name):
        return pr[name][...]

    qns = qns_ref[...][0]                                 # (1, LQ) int32
    qmask = (qns != 0).astype(f32)                        # (1, LQ) question mask

    # ---- embedding lookup as a one-hot matmul (gather-free, stays on MXU) ----
    iota_vl = jax.lax.broadcasted_iota(jnp.int32, (VOCAB, LQ), 0)
    onehot_t = (iota_vl == qns).astype(f32)               # (VOCAB, LQ)
    emb = jax.lax.dot_general(onehot_t, W("emb_table"), _TN,
                              preferred_element_type=f32)  # (LQ, DWORD)

    # ---- 1x1 conv Dword -> D (no bias) ----
    x = jnp.dot(emb, W("conv1d_w"), preferred_element_type=f32)   # (LQ, D)

    # ---- Highway(2) ----
    for i in range(2):
        g = jax.nn.sigmoid(
            jnp.dot(x, W(f"hw_gate_w{i}"), preferred_element_type=f32)
            + W(f"hw_gate_b{i}"))
        h = jnp.dot(x, W(f"hw_lin_w{i}"), preferred_element_type=f32) + W(f"hw_lin_b{i}")
        x = g * h + (1.0 - g) * x

    def layernorm(v, g, b):
        mu = jnp.mean(v, axis=-1, keepdims=True)
        var = jnp.mean(jnp.square(v - mu), axis=-1, keepdims=True)
        return (v - mu) * jax.lax.rsqrt(var + 1e-5) * g + b

    # ---- EncoderBlock(conv_num=4, k=7) ----
    out = x + W("pos")                                     # add sinusoidal pos enc
    pad = K_EMB // 2
    zpad = jnp.zeros((pad, D), f32)
    for i in range(4):
        res = out
        h = layernorm(out, W(f"normC_g{i}"), W(f"normC_b{i}"))
        # depthwise conv ('same' padding) via in-VMEM zero-pad + shifted adds
        hp = jnp.concatenate([zpad, h, zpad], axis=0)      # (LQ + 2*pad, D)
        dw = W(f"dw_w{i}")                                 # (K, D)
        acc = jnp.zeros((LQ, D), f32)
        for j in range(K_EMB):
            acc = acc + hp[j:j + LQ, :] * dw[j:j + 1, :]
        # pointwise conv + ReLU + residual
        h = jnp.maximum(
            jnp.dot(acc, W(f"pw_w{i}"), preferred_element_type=f32) + W(f"pw_b{i}"), 0.0)
        out = h + res

    # ---- self attention: all heads handled in-kernel, D stays on the lane axis ----
    res = out
    h = layernorm(out, W("norm1_g"), W("norm1_b"))
    mem = jnp.dot(h, W("mem_w"), preferred_element_type=f32)   # (LQ, 2D) -> K|V
    qry = jnp.dot(h, W("qry_w"), preferred_element_type=f32)   # (LQ, D)
    dh = D // NH
    scale = dh ** -0.5
    heads = []
    for hh in range(NH):
        lo, hi = hh * dh, (hh + 1) * dh
        qh = qry[:, lo:hi] * scale
        kh = mem[:, lo:hi]
        vh = mem[:, D + lo:D + hi]
        logits = jax.lax.dot_general(qh, kh, _NT, preferred_element_type=f32)  # (LQ, LQ)
        logits = jnp.where(qmask > 0, logits, NEG_INF)                          # key mask
        p = jax.nn.softmax(logits, axis=-1)
        heads.append(jnp.dot(p, vh, preferred_element_type=f32))                # (LQ, dh)
    out = jnp.concatenate(heads, axis=-1) + res                                  # (LQ, D)

    # ---- FFN ----
    res = out
    h = layernorm(out, W("norm2_g"), W("norm2_b"))
    h = jnp.maximum(
        jnp.dot(h, W("ffn1_w"), preferred_element_type=f32) + W("ffn1_b"), 0.0)
    h = jnp.dot(h, W("ffn2_w"), preferred_element_type=f32) + W("ffn2_b")
    qenc = h + res                                                               # (LQ, D)

    # ---- VQAttention (trans, trilinear S, 2 masked softmaxes, bmms, concat) ----
    V = jnp.dot(vid_ref[...][0], W("trans_wT"),
                preferred_element_type=f32) + W("trans_b")    # (LC, DM)  weight-norm Linear
    Q = qenc                                                  # (LQ, D)  == Ques_enc.transpose(1,2)
    vmask = vmask_ref[...][0]                                 # (LC, 1)

    sub0 = jnp.sum(V * W("w4V"), axis=-1, keepdims=True)                       # (LC, 1)
    sub1 = jax.lax.dot_general(W("w4Q"), Q, _NT, preferred_element_type=f32)   # (1, LQ)
    sub2 = jax.lax.dot_general(V * W("w4mlu"), Q, _NT,
                               preferred_element_type=f32)                     # (LC, LQ)
    S = sub0 + sub1 + sub2 + W("vq_bias")                                      # (LC, LQ)

    S1 = jax.nn.softmax(jnp.where(qmask > 0, S, NEG_INF), axis=1)   # softmax over Lq
    S2 = jax.nn.softmax(jnp.where(vmask > 0, S, NEG_INF), axis=0)   # softmax over Lc

    A = jnp.dot(S1, Q, preferred_element_type=f32)                              # (LC, D)
    S1S2T = jax.lax.dot_general(S1, S2, _NT, preferred_element_type=f32)        # (LC, LC)
    Bm = jnp.dot(S1S2T, V, preferred_element_type=f32)                          # (LC, DM)
    cat = jnp.concatenate([V, A, V * A, V * Bm], axis=-1)                       # (LC, 4*DM)

    # ---- fused vq_resizer (1x1 conv 4D->D, no bias) + mean over Lc ----
    y = jnp.dot(cat, W("vq_resizer_w"), preferred_element_type=f32)             # (LC, D)
    out_ref[...] = jnp.mean(y, axis=0, keepdims=True)[None]                     # (1, 1, D)
    vidt_ref[...] = V[None]                                                     # (1, LC, DM)
    qenc_ref[...] = jnp.transpose(qenc)[None]                                   # (1, D, LQ)


# =====================================================================
# Wrapper: one pallas_call for the whole forward
# =====================================================================

def forward(kparams, vid_enc, qns):
    """Returns (out[B,D], vid_enc_trans[B,Lc,Dm], qns_embed_enc[B,D,Lq])."""
    bsz = vid_enc.shape[0]
    vid_enc = vid_enc.astype(jnp.float32)
    qns3 = qns.astype(jnp.int32).reshape(bsz, 1, -1)            # (B, 1, LQ)
    vmask = jnp.ones((bsz, LC, 1), jnp.float32)                 # V_mask (all valid)
    param_list = [kparams[name] for name in _PARAM_ORDER]

    def const_spec(shape):
        zeros = (0,) * len(shape)
        return pl.BlockSpec(shape, lambda b, z=zeros: z)        # weight resident across grid

    in_specs = ([pl.BlockSpec((1, LC, CTX), lambda b: (b, 0, 0)),
                 pl.BlockSpec((1, 1, LQ), lambda b: (b, 0, 0)),
                 pl.BlockSpec((1, LC, 1), lambda b: (b, 0, 0))]
                + [const_spec(p.shape) for p in param_list])

    out_shapes = (jax.ShapeDtypeStruct((bsz, 1, D), jnp.float32),
                  jax.ShapeDtypeStruct((bsz, LC, DM), jnp.float32),
                  jax.ShapeDtypeStruct((bsz, D, LQ), jnp.float32))
    out_specs = (pl.BlockSpec((1, 1, D), lambda b: (b, 0, 0)),
                 pl.BlockSpec((1, LC, DM), lambda b: (b, 0, 0)),
                 pl.BlockSpec((1, D, LQ), lambda b: (b, 0, 0)))

    out3, vid_trans, qenc_t = pl.pallas_call(
        _fused_forward_kernel,
        out_shape=out_shapes,
        grid=(bsz,),
        in_specs=in_specs,
        out_specs=out_specs,
        compiler_params=pltpu.CompilerParams(
            dimension_semantics=("parallel",)),   # split batch across TCs on v7x
    )(vid_enc, qns3, vmask, *param_list)

    return out3[:, 0, :], vid_trans, qenc_t


# =====================================================================
# Parameter setup & one-time preparation (outside the kernel path)
# =====================================================================

def pos_signal(length, channels):
    """QANet sinusoidal positional encoding (get_timing_signal)."""
    position = jnp.arange(length, dtype=jnp.float32)
    num_timescales = channels // 2
    log_inc = math.log(1.0e4) / (num_timescales - 1)
    inv = jnp.exp(jnp.arange(num_timescales, dtype=jnp.float32) * -log_inc)
    scaled = position[:, None] * inv[None, :]
    return jnp.concatenate([jnp.sin(scaled), jnp.cos(scaled)], axis=1)   # (L, C)


def prepare_params(p):
    """Hoist per-forward constant work: pos encoding, weight-norm w_eff, reshapes, f32 casts."""
    kp = {"emb_table": p["emb_table"], "conv1d_w": p["conv1d_w"], "pos": pos_signal(LQ, D)}
    for i in range(2):
        kp[f"hw_gate_w{i}"] = p[f"hw_gate_w{i}"]
        kp[f"hw_gate_b{i}"] = p[f"hw_gate_b{i}"].reshape(1, D)
        kp[f"hw_lin_w{i}"] = p[f"hw_lin_w{i}"]
        kp[f"hw_lin_b{i}"] = p[f"hw_lin_b{i}"].reshape(1, D)
    for i in range(4):
        kp[f"normC_g{i}"] = p[f"normC_g{i}"].reshape(1, D)
        kp[f"normC_b{i}"] = p[f"normC_b{i}"].reshape(1, D)
        kp[f"dw_w{i}"] = p[f"dw_w{i}"]
        kp[f"pw_w{i}"] = p[f"pw_w{i}"]
        kp[f"pw_b{i}"] = p[f"pw_b{i}"].reshape(1, D)
    kp["norm1_g"] = p["norm1_g"].reshape(1, D); kp["norm1_b"] = p["norm1_b"].reshape(1, D)
    kp["norm2_g"] = p["norm2_g"].reshape(1, D); kp["norm2_b"] = p["norm2_b"].reshape(1, D)
    kp["mem_w"] = p["mem_w"]; kp["qry_w"] = p["qry_w"]
    kp["ffn1_w"] = p["ffn1_w"]; kp["ffn1_b"] = p["ffn1_b"].reshape(1, D)
    kp["ffn2_w"] = p["ffn2_w"]; kp["ffn2_b"] = p["ffn2_b"].reshape(1, D)
    # weight_norm(Linear) default dim=0: per-output-row norm over in_features (axis=1 of (out,in))
    v, g = p["trans_v"], p["trans_g"]
    w_eff = g * v / jnp.sqrt(jnp.sum(v * v, axis=1, keepdims=True))   # (DM, CTX)
    kp["trans_wT"] = w_eff.T                                           # (CTX, DM)
    kp["trans_b"] = p["trans_b"].reshape(1, DM)
    kp["w4V"] = p["w4V"].reshape(1, DM)
    kp["w4Q"] = p["w4Q"].reshape(1, D)
    kp["w4mlu"] = p["w4mlu"].reshape(1, DM)
    kp["vq_bias"] = p["vq_bias"].reshape(1, 1)
    kp["vq_resizer_w"] = p["vq_resizer_w"]
    return {k: jnp.asarray(v, jnp.float32) for k, v in kp.items()}


def init_params(key):
    keys = iter(jax.random.split(key, 64))

    def nrm(shape, scale=0.05):
        return jax.random.normal(next(keys), shape, jnp.float32) * scale

    p = {"emb_table": nrm((VOCAB, DWORD), 0.1),
         "conv1d_w": nrm((DWORD, D))}
    for i in range(2):                                   # Highway
        p[f"hw_gate_w{i}"] = nrm((D, D)); p[f"hw_gate_b{i}"] = jnp.zeros((D,))
        p[f"hw_lin_w{i}"] = nrm((D, D));  p[f"hw_lin_b{i}"] = jnp.zeros((D,))
    for i in range(4):                                   # emb_enc convs
        p[f"dw_w{i}"] = nrm((K_EMB, D))
        p[f"pw_w{i}"] = nrm((D, D)); p[f"pw_b{i}"] = jnp.zeros((D,))
        p[f"normC_g{i}"] = jnp.ones((D,)); p[f"normC_b{i}"] = jnp.zeros((D,))
    p["norm1_g"] = jnp.ones((D,)); p["norm1_b"] = jnp.zeros((D,))
    p["norm2_g"] = jnp.ones((D,)); p["norm2_b"] = jnp.zeros((D,))
    p["mem_w"] = nrm((D, 2 * D)); p["qry_w"] = nrm((D, D))
    p["ffn1_w"] = nrm((D, D)); p["ffn1_b"] = jnp.zeros((D,))
    p["ffn2_w"] = nrm((D, D)); p["ffn2_b"] = jnp.zeros((D,))
    # VQAttention
    p["trans_v"] = nrm((DM, CTX)); p["trans_g"] = jnp.ones((DM, 1))
    p["trans_b"] = jnp.zeros((DM,))
    p["w4V"] = nrm((DM,)); p["w4Q"] = nrm((D,)); p["w4mlu"] = nrm((DM,))
    p["vq_bias"] = jnp.zeros(())
    p["vq_resizer_w"] = nrm((4 * D, D))                  # vq_resizer (no bias)
    return p


if __name__ == "__main__":
    key = jax.random.PRNGKey(0)
    k_p, k_v, k_q = jax.random.split(key, 3)
    params = init_params(k_p)
    kparams = prepare_params(params)         # one-time prep, outside the jitted forward
    vid_enc = jax.random.normal(k_v, (B, LC, CTX), jnp.float32)
    qns = jax.random.randint(k_q, (B, LQ), 0, VOCAB, dtype=jnp.int32)

    fwd = jax.jit(forward)
    out, vid_trans, qns_enc = fwd(kparams, vid_enc, qns)
    jax.block_until_ready((out, vid_trans, qns_enc))

    assert out.shape == (B, D)
    assert vid_trans.shape == (B, LC, DM)
    assert qns_enc.shape == (B, D, LQ)
    assert bool(jnp.all(jnp.isfinite(out)))
    assert bool(jnp.all(jnp.isfinite(vid_trans)))
    assert bool(jnp.all(jnp.isfinite(qns_enc)))
    print("KERNEL_OK")
</pallas_src>

<mosaic_0001>
module attributes {stable_mosaic.version = 11 : i64} {
  func.func @_fused_forward_kernel(%arg0: i32, %arg1: memref<1x8x64xf32, #tpu.memory_space<vmem>>, %arg2: memref<1x1x16xi32, #tpu.memory_space<vmem>>, %arg3: memref<1x8x1xf32, #tpu.memory_space<vmem>>, %arg4: memref<50x48xf32, #tpu.memory_space<vmem>>, %arg5: memref<48x32xf32, #tpu.memory_space<vmem>>, %arg6: memref<16x32xf32, #tpu.memory_space<vmem>>, %arg7: memref<32x32xf32, #tpu.memory_space<vmem>>, %arg8: memref<1x32xf32, #tpu.memory_space<vmem>>, %arg9: memref<32x32xf32, #tpu.memory_space<vmem>>, %arg10: memref<1x32xf32, #tpu.memory_space<vmem>>, %arg11: memref<32x32xf32, #tpu.memory_space<vmem>>, %arg12: memref<1x32xf32, #tpu.memory_space<vmem>>, %arg13: memref<32x32xf32, #tpu.memory_space<vmem>>, %arg14: memref<1x32xf32, #tpu.memory_space<vmem>>, %arg15: memref<1x32xf32, #tpu.memory_space<vmem>>, %arg16: memref<1x32xf32, #tpu.memory_space<vmem>>, %arg17: memref<7x32xf32, #tpu.memory_space<vmem>>, %arg18: memref<32x32xf32, #tpu.memory_space<vmem>>, %arg19: memref<1x32xf32, #tpu.memory_space<vmem>>, %arg20: memref<1x32xf32, #tpu.memory_space<vmem>>, %arg21: memref<1x32xf32, #tpu.memory_space<vmem>>, %arg22: memref<7x32xf32, #tpu.memory_space<vmem>>, %arg23: memref<32x32xf32, #tpu.memory_space<vmem>>, %arg24: memref<1x32xf32, #tpu.memory_space<vmem>>, %arg25: memref<1x32xf32, #tpu.memory_space<vmem>>, %arg26: memref<1x32xf32, #tpu.memory_space<vmem>>, %arg27: memref<7x32xf32, #tpu.memory_space<vmem>>, %arg28: memref<32x32xf32, #tpu.memory_space<vmem>>, %arg29: memref<1x32xf32, #tpu.memory_space<vmem>>, %arg30: memref<1x32xf32, #tpu.memory_space<vmem>>, %arg31: memref<1x32xf32, #tpu.memory_space<vmem>>, %arg32: memref<7x32xf32, #tpu.memory_space<vmem>>, %arg33: memref<32x32xf32, #tpu.memory_space<vmem>>, %arg34: memref<1x32xf32, #tpu.memory_space<vmem>>, %arg35: memref<1x32xf32, #tpu.memory_space<vmem>>, %arg36: memref<1x32xf32, #tpu.memory_space<vmem>>, %arg37: memref<32x64xf32, #tpu.memory_space<vmem>>, %arg38: memref<32x32xf32, #tpu.memory_space<vmem>>, %arg39: memref<1x32xf32, #tpu.memory_space<vmem>>, %arg40: memref<1x32xf32, #tpu.memory_space<vmem>>, %arg41: memref<32x32xf32, #tpu.memory_space<vmem>>, %arg42: memref<1x32xf32, #tpu.memory_space<vmem>>, %arg43: memref<32x32xf32, #tpu.memory_space<vmem>>, %arg44: memref<1x32xf32, #tpu.memory_space<vmem>>, %arg45: memref<64x32xf32, #tpu.memory_space<vmem>>, %arg46: memref<1x32xf32, #tpu.memory_space<vmem>>, %arg47: memref<1x32xf32, #tpu.memory_space<vmem>>, %arg48: memref<1x32xf32, #tpu.memory_space<vmem>>, %arg49: memref<1x32xf32, #tpu.memory_space<vmem>>, %arg50: memref<1x1xf32, #tpu.memory_space<vmem>>, %arg51: memref<128x32xf32, #tpu.memory_space<vmem>>, %arg52: memref<1x1x32xf32, #tpu.memory_space<vmem>>, %arg53: memref<1x8x32xf32, #tpu.memory_space<vmem>>, %arg54: memref<1x32x16xf32, #tpu.memory_space<vmem>>) attributes {dimension_semantics = [#tpu.dimension_semantics<parallel>], iteration_bounds = array<i64: 2>, scalar_prefetch = 0 : i64, scratch_operands = 0 : i64, tpu.core_type = #tpu.core_type<tc>, window_params = [{transform_indices = @transform_0, window_bounds = array<i64: 1, 8, 64>}, {transform_indices = @transform_1, window_bounds = array<i64: 1, 1, 16>}, {transform_indices = @transform_2, window_bounds = array<i64: 1, 8, 1>}, {pipeline_mode = #tpu.pipeline_mode<synchronous>, transform_indices = @transform_3, window_bounds = array<i64: 50, 48>}, {pipeline_mode = #tpu.pipeline_mode<synchronous>, transform_indices = @transform_4, window_bounds = array<i64: 48, 32>}, {pipeline_mode = #tpu.pipeline_mode<synchronous>, transform_indices = @transform_5, window_bounds = array<i64: 16, 32>}, {pipeline_mode = #tpu.pipeline_mode<synchronous>, transform_indices = @transform_6, window_bounds = array<i64: 32, 32>}, {pipeline_mode = #tpu.pipeline_mode<synchronous>, transform_indices = @transform_7, window_bounds = array<i64: 1, 32>}, {pipeline_mode = #tpu.pipeline_mode<synchronous>, transform_indices = @transform_8, window_bounds = array<i64: 32, 32>}, {pipeline_mode = #tpu.pipeline_mode<synchronous>, transform_indices = @transform_9, window_bounds = array<i64: 1, 32>}, {pipeline_mode = #tpu.pipeline_mode<synchronous>, transform_indices = @transform_10, window_bounds = array<i64: 32, 32>}, {pipeline_mode = #tpu.pipeline_mode<synchronous>, transform_indices = @transform_11, window_bounds = array<i64: 1, 32>}, {pipeline_mode = #tpu.pipeline_mode<synchronous>, transform_indices = @transform_12, window_bounds = array<i64: 32, 32>}, {pipeline_mode = #tpu.pipeline_mode<synchronous>, transform_indices = @transform_13, window_bounds = array<i64: 1, 32>}, {pipeline_mode = #tpu.pipeline_mode<synchronous>, transform_indices = @transform_14, window_bounds = array<i64: 1, 32>}, {pipeline_mode = #tpu.pipeline_mode<synchronous>, transform_indices = @transform_15, window_bounds = array<i64: 1, 32>}, {pipeline_mode = #tpu.pipeline_mode<synchronous>, transform_indices = @transform_16, window_bounds = array<i64: 7, 32>}, {pipeline_mode = #tpu.pipeline_mode<synchronous>, transform_indices = @transform_17, window_bounds = array<i64: 32, 32>}, {pipeline_mode = #tpu.pipeline_mode<synchronous>, transform_indices = @transform_18, window_bounds = array<i64: 1, 32>}, {pipeline_mode = #tpu.pipeline_mode<synchronous>, transform_indices = @transform_19, window_bounds = array<i64: 1, 32>}, {pipeline_mode = #tpu.pipeline_mode<synchronous>, transform_indices = @transform_20, window_bounds = array<i64: 1, 32>}, {pipeline_mode = #tpu.pipeline_mode<synchronous>, transform_indices = @transform_21, window_bounds = array<i64: 7, 32>}, {pipeline_mode = #tpu.pipeline_mode<synchronous>, transform_indices = @transform_22, window_bounds = array<i64: 32, 32>}, {pipeline_mode = #tpu.pipeline_mode<synchronous>, transform_indices = @transform_23, window_bounds = array<i64: 1, 32>}, {pipeline_mode = #tpu.pipeline_mode<synchronous>, transform_indices = @transform_24, window_bounds = array<i64: 1, 32>}, {pipeline_mode = #tpu.pipeline_mode<synchronous>, transform_indices = @transform_25, window_bounds = array<i64: 1, 32>}, {pipeline_mode = #tpu.pipeline_mode<synchronous>, transform_indices = @transform_26, window_bounds = array<i64: 7, 32>}, {pipeline_mode = #tpu.pipeline_mode<synchronous>, transform_indices = @transform_27, window_bounds = array<i64: 32, 32>}, {pipeline_mode = #tpu.pipeline_mode<synchronous>, transform_indices = @transform_28, window_bounds = array<i64: 1, 32>}, {pipeline_mode = #tpu.pipeline_mode<synchronous>, transform_indices = @transform_29, window_bounds = array<i64: 1, 32>}, {pipeline_mode = #tpu.pipeline_mode<synchronous>, transform_indices = @transform_30, window_bounds = array<i64: 1, 32>}, {pipeline_mode = #tpu.pipeline_mode<synchronous>, transform_indices = @transform_31, window_bounds = array<i64: 7, 32>}, {pipeline_mode = #tpu.pipeline_mode<synchronous>, transform_indices = @transform_32, window_bounds = array<i64: 32, 32>}, {pipeline_mode = #tpu.pipeline_mode<synchronous>, transform_indices = @transform_33, window_bounds = array<i64: 1, 32>}, {pipeline_mode = #tpu.pipeline_mode<synchronous>, transform_indices = @transform_34, window_bounds = array<i64: 1, 32>}, {pipeline_mode = #tpu.pipeline_mode<synchronous>, transform_indices = @transform_35, window_bounds = array<i64: 1, 32>}, {pipeline_mode = #tpu.pipeline_mode<synchronous>, transform_indices = @transform_36, window_bounds = array<i64: 32, 64>}, {pipeline_mode = #tpu.pipeline_mode<synchronous>, transform_indices = @transform_37, window_bounds = array<i64: 32, 32>}, {pipeline_mode = #tpu.pipeline_mode<synchronous>, transform_indices = @transform_38, window_bounds = array<i64: 1, 32>}, {pipeline_mode = #tpu.pipeline_mode<synchronous>, transform_indices = @transform_39, window_bounds = array<i64: 1, 32>}, {pipeline_mode = #tpu.pipeline_mode<synchronous>, transform_indices = @transform_40, window_bounds = array<i64: 32, 32>}, {pipeline_mode = #tpu.pipeline_mode<synchronous>, transform_indices = @transform_41, window_bounds = array<i64: 1, 32>}, {pipeline_mode = #tpu.pipeline_mode<synchronous>, transform_indices = @transform_42, window_bounds = array<i64: 32, 32>}, {pipeline_mode = #tpu.pipeline_mode<synchronous>, transform_indices = @transform_43, window_bounds = array<i64: 1, 32>}, {pipeline_mode = #tpu.pipeline_mode<synchronous>, transform_indices = @transform_44, window_bounds = array<i64: 64, 32>}, {pipeline_mode = #tpu.pipeline_mode<synchronous>, transform_indices = @transform_45, window_bounds = array<i64: 1, 32>}, {pipeline_mode = #tpu.pipeline_mode<synchronous>, transform_indices = @transform_46, window_bounds = array<i64: 1, 32>}, {pipeline_mode = #tpu.pipeline_mode<synchronous>, transform_indices = @transform_47, window_bounds = array<i64: 1, 32>}, {pipeline_mode = #tpu.pipeline_mode<synchronous>, transform_indices = @transform_48, window_bounds = array<i64: 1, 32>}, {pipeline_mode = #tpu.pipeline_mode<synchronous>, transform_indices = @transform_49, window_bounds = array<i64: 1, 1>}, {pipeline_mode = #tpu.pipeline_mode<synchronous>, transform_indices = @transform_50, window_bounds = array<i64: 128, 32>}, {transform_indices = @transform_51, window_bounds = array<i64: 1, 1, 32>}, {transform_indices = @transform_52, window_bounds = array<i64: 1, 8, 32>}, {transform_indices = @transform_53, window_bounds = array<i64: 1, 32, 16>}]} {
    %c0 = arith.constant 0 : index
    %c0_0 = arith.constant 0 : index
    %c0_1 = arith.constant 0 : index
    %0 = vector.load %arg2[%c0, %c0_0, %c0_1] : memref<1x1x16xi32, #tpu.memory_space<vmem>>, vector<1x1x16xi32>
    %1 = vector.shape_cast %0 : vector<1x1x16xi32> to vector<1x16xi32>
    %c0_i32 = arith.constant 0 : i32
    %2 = vector.broadcast %c0_i32 : i32 to vector<1x16xi32>
    %3 = arith.cmpi ne, %1, %2 : vector<1x16xi32>
    %4 = arith.extui %3 : vector<1x16xi1> to vector<1x16xi32>
    %5 = arith.sitofp %4 : vector<1x16xi32> to vector<1x16xf32>
    %6 = tpu.iota {dimensions = array<i32: 0>} : vector<50x16xi32>
    %7 = vector.broadcast %1 : vector<1x16xi32> to vector<50x16xi32>
    %8 = arith.cmpi eq, %6, %7 : vector<50x16xi32>
    %9 = arith.extui %8 : vector<50x16xi1> to vector<50x16xi32>
    %10 = arith.sitofp %9 : vector<50x16xi32> to vector<50x16xf32>
    %c0_2 = arith.constant 0 : index
    %c0_3 = arith.constant 0 : index
    %11 = vector.load %arg4[%c0_2, %c0_3] : memref<50x48xf32, #tpu.memory_space<vmem>>, vector<50x48xf32>
    %cst = arith.constant dense<0.000000e+00> : vector<16x48xf32>
    %12 = tpu.matmul %10, %11, %cst {dimension_numbers = #tpu.dot_dimension_numbers<[0], [0], [1], [1], [0, 1, 1, 1], [], []>} : vector<50x16xf32>, vector<50x48xf32>, vector<16x48xf32> -> vector<16x48xf32>
    %c0_4 = arith.constant 0 : index
    %c0_5 = arith.constant 0 : index
    %13 = vector.load %arg5[%c0_4, %c0_5] : memref<48x32xf32, #tpu.memory_space<vmem>>, vector<48x32xf32>
    %cst_6 = arith.constant dense<0.000000e+00> : vector<16x32xf32>
    %14 = tpu.matmul %12, %13, %cst_6 {dimension_numbers = #tpu.dot_dimension_numbers<[1], [0], [0], [1], [0, 0, 1, 1], [], []>} : vector<16x48xf32>, vector<48x32xf32>, vector<16x32xf32> -> vector<16x32xf32>
    %c0_7 = arith.constant 0 : index
    %c0_8 = arith.constant 0 : index
    %15 = vector.load %arg7[%c0_7, %c0_8] : memref<32x32xf32, #tpu.memory_space<vmem>>, vector<32x32xf32>
    %cst_9 = arith.constant dense<0.000000e+00> : vector<16x32xf32>
    %16 = tpu.matmul %14, %15, %cst_9 {dimension_numbers = #tpu.dot_dimension_numbers<[1], [0], [0], [1], [0, 0, 1, 1], [], []>} : vector<16x32xf32>, vector<32x32xf32>, vector<16x32xf32> -> vector<16x32xf32>
    %c0_10 = arith.constant 0 : index
    %c0_11 = arith.constant 0 : index
    %17 = vector.load %arg8[%c0_10, %c0_11] : memref<1x32xf32, #tpu.memory_space<vmem>>, vector<1x32xf32>
    %18 = vector.broadcast %17 : vector<1x32xf32> to vector<16x32xf32>
    %19 = arith.addf %16, %18 : vector<16x32xf32>
    %20 = arith.negf %19 : vector<16x32xf32>
    %21 = math.exp %20 : vector<16x32xf32>
    %cst_12 = arith.constant 1.000000e+00 : f32
    %22 = vector.broadcast %cst_12 : f32 to vector<16x32xf32>
    %23 = arith.addf %22, %21 : vector<16x32xf32>
    %24 = arith.divf %22, %23 : vector<16x32xf32>
    %c0_13 = arith.constant 0 : index
    %c0_14 = arith.constant 0 : index
    %25 = vector.load %arg9[%c0_13, %c0_14] : memref<32x32xf32, #tpu.memory_space<vmem>>, vector<32x32xf32>
    %cst_15 = arith.constant dense<0.000000e+00> : vector<16x32xf32>
    %26 = tpu.matmul %14, %25, %cst_15 {dimension_numbers = #tpu.dot_dimension_numbers<[1], [0], [0], [1], [0, 0, 1, 1], [], []>} : vector<16x32xf32>, vector<32x32xf32>, vector<16x32xf32> -> vector<16x32xf32>
    %c0_16 = arith.constant 0 : index
    %c0_17 = arith.constant 0 : index
    %27 = vector.load %arg10[%c0_16, %c0_17] : memref<1x32xf32, #tpu.memory_space<vmem>>, vector<1x32xf32>
    %28 = vector.broadcast %27 : vector<1x32xf32> to vector<16x32xf32>
    %29 = arith.addf %26, %28 : vector<16x32xf32>
    %30 = arith.mulf %24, %29 : vector<16x32xf32>
    %cst_18 = arith.constant 1.000000e+00 : f32
    %31 = vector.broadcast %cst_18 : f32 to vector<16x32xf32>
    %32 = arith.subf %31, %24 : vector<16x32xf32>
    %33 = arith.mulf %32, %14 : vector<16x32xf32>
    %34 = arith.addf %30, %33 : vector<16x32xf32>
    %c0_19 = arith.constant 0 : index
    %c0_20 = arith.constant 0 : index
    %35 = vector.load %arg11[%c0_19, %c0_20] : memref<32x32xf32, #tpu.memory_space<vmem>>, vector<32x32xf32>
    %cst_21 = arith.constant dense<0.000000e+00> : vector<16x32xf32>
    %36 = tpu.matmul %34, %35, %cst_21 {dimension_numbers = #tpu.dot_dimension_numbers<[1], [0], [0], [1], [0, 0, 1, 1], [], []>} : vector<16x32xf32>, vector<32x32xf32>, vector<16x32xf32> -> vector<16x32xf32>
    %c0_22 = arith.constant 0 : index
    %c0_23 = arith.constant 0 : index
    %37 = vector.load %arg12[%c0_22, %c0_23] : memref<1x32xf32, #tpu.memory_space<vmem>>, vector<1x32xf32>
    %38 = vector.broadcast %37 : vector<1x32xf32> to vector<16x32xf32>
    %39 = arith.addf %36, %38 : vector<16x32xf32>
    %40 = arith.negf %39 : vector<16x32xf32>
    %41 = math.exp %40 : vector<16x32xf32>
    %cst_24 = arith.constant 1.000000e+00 : f32
    %42 = vector.broadcast %cst_24 : f32 to vector<16x32xf32>
    %43 = arith.addf %42, %41 : vector<16x32xf32>
    %44 = arith.divf %42, %43 : vector<16x32xf32>
    %c0_25 = arith.constant 0 : index
    %c0_26 = arith.constant 0 : index
    %45 = vector.load %arg13[%c0_25, %c0_26] : memref<32x32xf32, #tpu.memory_space<vmem>>, vector<32x32xf32>
    %cst_27 = arith.constant dense<0.000000e+00> : vector<16x32xf32>
    %46 = tpu.matmul %34, %45, %cst_27 {dimension_numbers = #tpu.dot_dimension_numbers<[1], [0], [0], [1], [0, 0, 1, 1], [], []>} : vector<16x32xf32>, vector<32x32xf32>, vector<16x32xf32> -> vector<16x32xf32>
    %c0_28 = arith.constant 0 : index
    %c0_29 = arith.constant 0 : index
    %47 = vector.load %arg14[%c0_28, %c0_29] : memref<1x32xf32, #tpu.memory_space<vmem>>, vector<1x32xf32>
    %48 = vector.broadcast %47 : vector<1x32xf32> to vector<16x32xf32>
    %49 = arith.addf %46, %48 : vector<16x32xf32>
    %50 = arith.mulf %44, %49 : vector<16x32xf32>
    %cst_30 = arith.constant 1.000000e+00 : f32
    %51 = vector.broadcast %cst_30 : f32 to vector<16x32xf32>
    %52 = arith.subf %51, %44 : vector<16x32xf32>
    %53 = arith.mulf %52, %34 : vector<16x32xf32>
    %54 = arith.addf %50, %53 : vector<16x32xf32>
    %c0_31 = arith.constant 0 : index
    %c0_32 = arith.constant 0 : index
    %55 = vector.load %arg6[%c0_31, %c0_32] : memref<16x32xf32, #tpu.memory_space<vmem>>, vector<16x32xf32>
    %56 = arith.addf %54, %55 : vector<16x32xf32>
    %cst_33 = arith.constant 0.000000e+00 : f32
    %57 = vector.broadcast %cst_33 : f32 to vector<3x32xf32>
    %c0_34 = arith.constant 0 : index
    %c0_35 = arith.constant 0 : index
    %58 = vector.load %arg15[%c0_34, %c0_35] : memref<1x32xf32, #tpu.memory_space<vmem>>, vector<1x32xf32>
    %c0_36 = arith.constant 0 : index
    %c0_37 = arith.constant 0 : index
    %59 = vector.load %arg16[%c0_36, %c0_37] : memref<1x32xf32, #tpu.memory_space<vmem>>, vector<1x32xf32>
    %cst_38 = arith.constant dense<0.000000e+00> : vector<16xf32>
    %60 = vector.multi_reduction <add>, %56, %cst_38 [1] : vector<16x32xf32> to vector<16xf32>
    %61 = vector.shape_cast %60 : vector<16xf32> to vector<16x1xf32>
    %cst_39 = arith.constant 3.200000e+01 : f32
    %62 = vector.broadcast %cst_39 : f32 to vector<16x1xf32>
    %63 = arith.divf %61, %62 : vector<16x1xf32>
    %64 = vector.broadcast %63 : vector<16x1xf32> to vector<16x32xf32>
    %65 = arith.subf %56, %64 : vector<16x32xf32>
    %66 = arith.mulf %65, %65 : vector<16x32xf32>
    %cst_40 = arith.constant dense<0.000000e+00> : vector<16xf32>
    %67 = vector.multi_reduction <add>, %66, %cst_40 [1] : vector<16x32xf32> to vector<16xf32>
    %68 = vector.shape_cast %67 : vector<16xf32> to vector<16x1xf32>
    %cst_41 = arith.constant 3.200000e+01 : f32
    %69 = vector.broadcast %cst_41 : f32 to vector<16x1xf32>
    %70 = arith.divf %68, %69 : vector<16x1xf32>
    %71 = vector.broadcast %63 : vector<16x1xf32> to vector<16x32xf32>
    %72 = arith.subf %56, %71 : vector<16x32xf32>
    %cst_42 = arith.constant 9.99999974E-6 : f32
    %73 = vector.broadcast %cst_42 : f32 to vector<16x1xf32>
    %74 = arith.addf %70, %73 : vector<16x1xf32>
    %75 = math.rsqrt %74 : vector<16x1xf32>
    %76 = vector.broadcast %75 : vector<16x1xf32> to vector<16x32xf32>
    %77 = arith.mulf %72, %76 : vector<16x32xf32>
    %78 = vector.broadcast %58 : vector<1x32xf32> to vector<16x32xf32>
    %79 = arith.mulf %77, %78 : vector<16x32xf32>
    %80 = vector.broadcast %59 : vector<1x32xf32> to vector<16x32xf32>
    %81 = arith.addf %79, %80 : vector<16x32xf32>
    %82 = tpu.concatenate %57, %81, %57 in 0 : vector<3x32xf32>, vector<16x32xf32>, vector<3x32xf32> -> vector<22x32xf32>
    %c0_43 = arith.constant 0 : index
    %c0_44 = arith.constant 0 : index
    %83 = vector.load %arg17[%c0_43, %c0_44] : memref<7x32xf32, #tpu.memory_space<vmem>>, vector<7x32xf32>
    %cst_45 = arith.constant 0.000000e+00 : f32
    %84 = vector.broadcast %cst_45 : f32 to vector<16x32xf32>
    %85 = vector.extract_strided_slice %82 {offsets = [0, 0], sizes = [16, 32], strides = [1, 1]} : vector<22x32xf32> to vector<16x32xf32>
    %86 = vector.extract_strided_slice %83 {offsets = [0, 0], sizes = [1, 32], strides = [1, 1]} : vector<7x32xf32> to vector<1x32xf32>
    %87 = vector.broadcast %86 : vector<1x32xf32> to vector<16x32xf32>
    %88 = arith.mulf %85, %87 : vector<16x32xf32>
    %89 = arith.addf %84, %88 : vector<16x32xf32>
    %90 = vector.extract_strided_slice %82 {offsets = [1, 0], sizes = [16, 32], strides = [1, 1]} : vector<22x32xf32> to vector<16x32xf32>
    %91 = vector.extract_strided_slice %83 {offsets = [1, 0], sizes = [1, 32], strides = [1, 1]} : vector<7x32xf32> to vector<1x32xf32>
    %92 = vector.broadcast %91 : vector<1x32xf32> to vector<16x32xf32>
    %93 = arith.mulf %90, %92 : vector<16x32xf32>
    %94 = arith.addf %89, %93 : vector<16x32xf32>
    %95 = vector.extract_strided_slice %82 {offsets = [2, 0], sizes = [16, 32], strides = [1, 1]} : vector<22x32xf32> to vector<16x32xf32>
    %96 = vector.extract_strided_slice %83 {offsets = [2, 0], sizes = [1, 32], strides = [1, 1]} : vector<7x32xf32> to vector<1x32xf32>
    %97 = vector.broadcast %96 : vector<1x32xf32> to vector<16x32xf32>
    %98 = arith.mulf %95, %97 : vector<16x32xf32>
    %99 = arith.addf %94, %98 : vector<16x32xf32>
    %100 = vector.extract_strided_slice %82 {offsets = [3, 0], sizes = [16, 32], strides = [1, 1]} : vector<22x32xf32> to vector<16x32xf32>
    %101 = vector.extract_strided_slice %83 {offsets = [3, 0], sizes = [1, 32], strides = [1, 1]} : vector<7x32xf32> to vector<1x32xf32>
    %102 = vector.broadcast %101 : vector<1x32xf32> to vector<16x32xf32>
    %103 = arith.mulf %100, %102 : vector<16x32xf32>
    %104 = arith.addf %99, %103 : vector<16x32xf32>
    %105 = vector.extract_strided_slice %82 {offsets = [4, 0], sizes = [16, 32], strides = [1, 1]} : vector<22x32xf32> to vector<16x32xf32>
    %106 = vector.extract_strided_slice %83 {offsets = [4, 0], sizes = [1, 32], strides = [1, 1]} : vector<7x32xf32> to vector<1x32xf32>
    %107 = vector.broadcast %106 : vector<1x32xf32> to vector<16x32xf32>
    %108 = arith.mulf %105, %107 : vector<16x32xf32>
    %109 = arith.addf %104, %108 : vector<16x32xf32>
    %110 = vector.extract_strided_slice %82 {offsets = [5, 0], sizes = [16, 32], strides = [1, 1]} : vector<22x32xf32> to vector<16x32xf32>
    %111 = vector.extract_strided_slice %83 {offsets = [5, 0], sizes = [1, 32], strides = [1, 1]} : vector<7x32xf32> to vector<1x32xf32>
    %112 = vector.broadcast %111 : vector<1x32xf32> to vector<16x32xf32>
    %113 = arith.mulf %110, %112 : vector<16x32xf32>
    %114 = arith.addf %109, %113 : vector<16x32xf32>
    %115 = vector.extract_strided_slice %82 {offsets = [6, 0], sizes = [16, 32], strides = [1, 1]} : vector<22x32xf32> to vector<16x32xf32>
    %116 = vector.extract_strided_slice %83 {offsets = [6, 0], sizes = [1, 32], strides = [1, 1]} : vector<7x32xf32> to vector<1x32xf32>
    %117 = vector.broadcast %116 : vector<1x32xf32> to vector<16x32xf32>
    %118 = arith.mulf %115, %117 : vector<16x32xf32>
    %119 = arith.addf %114, %118 : vector<16x32xf32>
    %c0_46 = arith.constant 0 : index
    %c0_47 = arith.constant 0 : index
    %120 = vector.load %arg18[%c0_46, %c0_47] : memref<32x32xf32, #tpu.memory_space<vmem>>, vector<32x32xf32>
    %cst_48 = arith.constant dense<0.000000e+00> : vector<16x32xf32>
    %121 = tpu.matmul %119, %120, %cst_48 {dimension_numbers = #tpu.dot_dimension_numbers<[1], [0], [0], [1], [0, 0, 1, 1], [], []>} : vector<16x32xf32>, vector<32x32xf32>, vector<16x32xf32> -> vector<16x32xf32>
    %c0_49 = arith.constant 0 : index
    %c0_50 = arith.constant 0 : index
    %122 = vector.load %arg19[%c0_49, %c0_50] : memref<1x32xf32, #tpu.memory_space<vmem>>, vector<1x32xf32>
    %123 = vector.broadcast %122 : vector<1x32xf32> to vector<16x32xf32>
    %124 = arith.addf %121, %123 : vector<16x32xf32>
    %cst_51 = arith.constant 0.000000e+00 : f32
    %125 = vector.broadcast %cst_51 : f32 to vector<16x32xf32>
    %126 = arith.maximumf %124, %125 : vector<16x32xf32>
    %127 = arith.addf %126, %56 : vector<16x32xf32>
    %c0_52 = arith.constant 0 : index
    %c0_53 = arith.constant 0 : index
    %128 = vector.load %arg20[%c0_52, %c0_53] : memref<1x32xf32, #tpu.memory_space<vmem>>, vector<1x32xf32>
    %c0_54 = arith.constant 0 : index
    %c0_55 = arith.constant 0 : index
    %129 = vector.load %arg21[%c0_54, %c0_55] : memref<1x32xf32, #tpu.memory_space<vmem>>, vector<1x32xf32>
    %cst_56 = arith.constant dense<0.000000e+00> : vector<16xf32>
    %130 = vector.multi_reduction <add>, %127, %cst_56 [1] : vector<16x32xf32> to vector<16xf32>
    %131 = vector.shape_cast %130 : vector<16xf32> to vector<16x1xf32>
    %cst_57 = arith.constant 3.200000e+01 : f32
    %132 = vector.broadcast %cst_57 : f32 to vector<16x1xf32>
    %133 = arith.divf %131, %132 : vector<16x1xf32>
    %134 = vector.broadcast %133 : vector<16x1xf32> to vector<16x32xf32>
    %135 = arith.subf %127, %134 : vector<16x32xf32>
    %136 = arith.mulf %135, %135 : vector<16x32xf32>
    %cst_58 = arith.constant dense<0.000000e+00> : vector<16xf32>
    %137 = vector.multi_reduction <add>, %136, %cst_58 [1] : vector<16x32xf32> to vector<16xf32>
    %138 = vector.shape_cast %137 : vector<16xf32> to vector<16x1xf32>
    %cst_59 = arith.constant 3.200000e+01 : f32
    %139 = vector.broadcast %cst_59 : f32 to vector<16x1xf32>
    %140 = arith.divf %138, %139 : vector<16x1xf32>
    %141 = vector.broadcast %133 : vector<16x1xf32> to vector<16x32xf32>
    %142 = arith.subf %127, %141 : vector<16x32xf32>
    %cst_60 = arith.constant 9.99999974E-6 : f32
    %143 = vector.broadcast %cst_60 : f32 to vector<16x1xf32>
    %144 = arith.addf %140, %143 : vector<16x1xf32>
    %145 = math.rsqrt %144 : vector<16x1xf32>
    %146 = vector.broadcast %145 : vector<16x1xf32> to vector<16x32xf32>
    %147 = arith.mulf %142, %146 : vector<16x32xf32>
    %148 = vector.broadcast %128 : vector<1x32xf32> to vector<16x32xf32>
    %149 = arith.mulf %147, %148 : vector<16x32xf32>
    %150 = vector.broadcast %129 : vector<1x32xf32> to vector<16x32xf32>
    %151 = arith.addf %149, %150 : vector<16x32xf32>
    %152 = tpu.concatenate %57, %151, %57 in 0 : vector<3x32xf32>, vector<16x32xf32>, vector<3x32xf32> -> vector<22x32xf32>
    %c0_61 = arith.constant 0 : index
    %c0_62 = arith.constant 0 : index
    %153 = vector.load %arg22[%c0_61, %c0_62] : memref<7x32xf32, #tpu.memory_space<vmem>>, vector<7x32xf32>
    %cst_63 = arith.constant 0.000000e+00 : f32
    %154 = vector.broadcast %cst_63 : f32 to vector<16x32xf32>
    %155 = vector.extract_strided_slice %152 {offsets = [0, 0], sizes = [16, 32], strides = [1, 1]} : vector<22x32xf32> to vector<16x32xf32>
    %156 = vector.extract_strided_slice %153 {offsets = [0, 0], sizes = [1, 32], strides = [1, 1]} : vector<7x32xf32> to vector<1x32xf32>
    %157 = vector.broadcast %156 : vector<1x32xf32> to vector<16x32xf32>
    %158 = arith.mulf %155, %157 : vector<16x32xf32>
    %159 = arith.addf %154, %158 : vector<16x32xf32>
    %160 = vector.extract_strided_slice %152 {offsets = [1, 0], sizes = [16, 32], strides = [1, 1]} : vector<22x32xf32> to vector<16x32xf32>
    %161 = vector.extract_strided_slice %153 {offsets = [1, 0], sizes = [1, 32], strides = [1, 1]} : vector<7x32xf32> to vector<1x32xf32>
    %162 = vector.broadcast %161 : vector<1x32xf32> to vector<16x32xf32>
    %163 = arith.mulf %160, %162 : vector<16x32xf32>
    %164 = arith.addf %159, %163 : vector<16x32xf32>
    %165 = vector.extract_strided_slice %152 {offsets = [2, 0], sizes = [16, 32], strides = [1, 1]} : vector<22x32xf32> to vector<16x32xf32>
    %166 = vector.extract_strided_slice %153 {offsets = [2, 0], sizes = [1, 32], strides = [1, 1]} : vector<7x32xf32> to vector<1x32xf32>
    %167 = vector.broadcast %166 : vector<1x32xf32> to vector<16x32xf32>
    %168 = arith.mulf %165, %167 : vector<16x32xf32>
    %169 = arith.addf %164, %168 : vector<16x32xf32>
    %170 = vector.extract_strided_slice %152 {offsets = [3, 0], sizes = [16, 32], strides = [1, 1]} : vector<22x32xf32> to vector<16x32xf32>
    %171 = vector.extract_strided_slice %153 {offsets = [3, 0], sizes = [1, 32], strides = [1, 1]} : vector<7x32xf32> to vector<1x32xf32>
    %172 = vector.broadcast %171 : vector<1x32xf32> to vector<16x32xf32>
    %173 = arith.mulf %170, %172 : vector<16x32xf32>
    %174 = arith.addf %169, %173 : vector<16x32xf32>
    %175 = vector.extract_strided_slice %152 {offsets = [4, 0], sizes = [16, 32], strides = [1, 1]} : vector<22x32xf32> to vector<16x32xf32>
    %176 = vector.extract_strided_slice %153 {offsets = [4, 0], sizes = [1, 32], strides = [1, 1]} : vector<7x32xf32> to vector<1x32xf32>
    %177 = vector.broadcast %176 : vector<1x32xf32> to vector<16x32xf32>
    %178 = arith.mulf %175, %177 : vector<16x32xf32>
    %179 = arith.addf %174, %178 : vector<16x32xf32>
    %180 = vector.extract_strided_slice %152 {offsets = [5, 0], sizes = [16, 32], strides = [1, 1]} : vector<22x32xf32> to vector<16x32xf32>
    %181 = vector.extract_strided_slice %153 {offsets = [5, 0], sizes = [1, 32], strides = [1, 1]} : vector<7x32xf32> to vector<1x32xf32>
    %182 = vector.broadcast %181 : vector<1x32xf32> to vector<16x32xf32>
    %183 = arith.mulf %180, %182 : vector<16x32xf32>
    %184 = arith.addf %179, %183 : vector<16x32xf32>
    %185 = vector.extract_strided_slice %152 {offsets = [6, 0], sizes = [16, 32], strides = [1, 1]} : vector<22x32xf32> to vector<16x32xf32>
    %186 = vector.extract_strided_slice %153 {offsets = [6, 0], sizes = [1, 32], strides = [1, 1]} : vector<7x32xf32> to vector<1x32xf32>
    %187 = vector.broadcast %186 : vector<1x32xf32> to vector<16x32xf32>
    %188 = arith.mulf %185, %187 : vector<16x32xf32>
    %189 = arith.addf %184, %188 : vector<16x32xf32>
    %c0_64 = arith.constant 0 : index
    %c0_65 = arith.constant 0 : index
    %190 = vector.load %arg23[%c0_64, %c0_65] : memref<32x32xf32, #tpu.memory_space<vmem>>, vector<32x32xf32>
    %cst_66 = arith.constant dense<0.000000e+00> : vector<16x32xf32>
    %191 = tpu.matmul %189, %190, %cst_66 {dimension_numbers = #tpu.dot_dimension_numbers<[1], [0], [0], [1], [0, 0, 1, 1], [], []>} : vector<16x32xf32>, vector<32x32xf32>, vector<16x32xf32> -> vector<16x32xf32>
    %c0_67 = arith.constant 0 : index
    %c0_68 = arith.constant 0 : index
    %192 = vector.load %arg24[%c0_67, %c0_68] : memref<1x32xf32, #tpu.memory_space<vmem>>, vector<1x32xf32>
    %193 = vector.broadcast %192 : vector<1x32xf32> to vector<16x32xf32>
    %194 = arith.addf %191, %193 : vector<16x32xf32>
    %cst_69 = arith.constant 0.000000e+00 : f32
    %195 = vector.broadcast %cst_69 : f32 to vector<16x32xf32>
    %196 = arith.maximumf %194, %195 : vector<16x32xf32>
    %197 = arith.addf %196, %127 : vector<16x32xf32>
    %c0_70 = arith.constant 0 : index
    %c0_71 = arith.constant 0 : index
    %198 = vector.load %arg25[%c0_70, %c0_71] : memref<1x32xf32, #tpu.memory_space<vmem>>, vector<1x32xf32>
    %c0_72 = arith.constant 0 : index
    %c0_73 = arith.constant 0 : index
    %199 = vector.load %arg26[%c0_72, %c0_73] : memref<1x32xf32, #tpu.memory_space<vmem>>, vector<1x32xf32>
    %cst_74 = arith.constant dense<0.000000e+00> : vector<16xf32>
    %200 = vector.multi_reduction <add>, %197, %cst_74 [1] : vector<16x32xf32> to vector<16xf32>
    %201 = vector.shape_cast %200 : vector<16xf32> to vector<16x1xf32>
    %cst_75 = arith.constant 3.200000e+01 : f32
    %202 = vector.broadcast %cst_75 : f32 to vector<16x1xf32>
    %203 = arith.divf %201, %202 : vector<16x1xf32>
    %204 = vector.broadcast %203 : vector<16x1xf32> to vector<16x32xf32>
    %205 = arith.subf %197, %204 : vector<16x32xf32>
    %206 = arith.mulf %205, %205 : vector<16x32xf32>
    %cst_76 = arith.constant dense<0.000000e+00> : vector<16xf32>
    %207 = vector.multi_reduction <add>, %206, %cst_76 [1] : vector<16x32xf32> to vector<16xf32>
    %208 = vector.shape_cast %207 : vector<16xf32> to vector<16x1xf32>
    %cst_77 = arith.constant 3.200000e+01 : f32
    %209 = vector.broadcast %cst_77 : f32 to vector<16x1xf32>
    %210 = arith.divf %208, %209 : vector<16x1xf32>
    %211 = vector.broadcast %203 : vector<16x1xf32> to vector<16x32xf32>
    %212 = arith.subf %197, %211 : vector<16x32xf32>
    %cst_78 = arith.constant 9.99999974E-6 : f32
    %213 = vector.broadcast %cst_78 : f32 to vector<16x1xf32>
    %214 = arith.addf %210, %213 : vector<16x1xf32>
    %215 = math.rsqrt %214 : vector<16x1xf32>
    %216 = vector.broadcast %215 : vector<16x1xf32> to vector<16x32xf32>
    %217 = arith.mulf %212, %216 : vector<16x32xf32>
    %218 = vector.broadcast %198 : vector<1x32xf32> to vector<16x32xf32>
    %219 = arith.mulf %217, %218 : vector<16x32xf32>
    %220 = vector.broadcast %199 : vector<1x32xf32> to vector<16x32xf32>
    %221 = arith.addf %219, %220 : vector<16x32xf32>
    %222 = tpu.concatenate %57, %221, %57 in 0 : vector<3x32xf32>, vector<16x32xf32>, vector<3x32xf32> -> vector<22x32xf32>
    %c0_79 = arith.constant 0 : index
    %c0_80 = arith.constant 0 : index
    %223 = vector.load %arg27[%c0_79, %c0_80] : memref<7x32xf32, #tpu.memory_space<vmem>>, vector<7x32xf32>
    %cst_81 = arith.constant 0.000000e+00 : f32
    %224 = vector.broadcast %cst_81 : f32 to vector<16x32xf32>
    %225 = vector.extract_strided_slice %222 {offsets = [0, 0], sizes = [16, 32], strides = [1, 1]} : vector<22x32xf32> to vector<16x32xf32>
    %226 = vector.extract_strided_slice %223 {offsets = [0, 0], sizes = [1, 32], strides = [1, 1]} : vector<7x32xf32> to vector<1x32xf32>
    %227 = vector.broadcast %226 : vector<1x32xf32> to vector<16x32xf32>
    %228 = arith.mulf %225, %227 : vector<16x32xf32>
    %229 = arith.addf %224, %228 : vector<16x32xf32>
    %230 = vector.extract_strided_slice %222 {offsets = [1, 0], sizes = [16, 32], strides = [1, 1]} : vector<22x32xf32> to vector<16x32xf32>
    %231 = vector.extract_strided_slice %223 {offsets = [1, 0], sizes = [1, 32], strides = [1, 1]} : vector<7x32xf32> to vector<1x32xf32>
    %232 = vector.broadcast %231 : vector<1x32xf32> to vector<16x32xf32>
    %233 = arith.mulf %230, %232 : vector<16x32xf32>
    %234 = arith.addf %229, %233 : vector<16x32xf32>
    %235 = vector.extract_strided_slice %222 {offsets = [2, 0], sizes = [16, 32], strides = [1, 1]} : vector<22x32xf32> to vector<16x32xf32>
    %236 = vector.extract_strided_slice %223 {offsets = [2, 0], sizes = [1, 32], strides = [1, 1]} : vector<7x32xf32> to vector<1x32xf32>
    %237 = vector.broadcast %236 : vector<1x32xf32> to vector<16x32xf32>
    %238 = arith.mulf %235, %237 : vector<16x32xf32>
    %239 = arith.addf %234, %238 : vector<16x32xf32>
    %240 = vector.extract_strided_slice %222 {offsets = [3, 0], sizes = [16, 32], strides = [1, 1]} : vector<22x32xf32> to vector<16x32xf32>
    %241 = vector.extract_strided_slice %223 {offsets = [3, 0], sizes = [1, 32], strides = [1, 1]} : vector<7x32xf32> to vector<1x32xf32>
    %242 = vector.broadcast %241 : vector<1x32xf32> to vector<16x32xf32>
    %243 = arith.mulf %240, %242 : vector<16x32xf32>
    %244 = arith.addf %239, %243 : vector<16x32xf32>
    %245 = vector.extract_strided_slice %222 {offsets = [4, 0], sizes = [16, 32], strides = [1, 1]} : vector<22x32xf32> to vector<16x32xf32>
    %246 = vector.extract_strided_slice %223 {offsets = [4, 0], sizes = [1, 32], strides = [1, 1]} : vector<7x32xf32> to vector<1x32xf32>
    %247 = vector.broadcast %246 : vector<1x32xf32> to vector<16x32xf32>
    %248 = arith.mulf %245, %247 : vector<16x32xf32>
    %249 = arith.addf %244, %248 : vector<16x32xf32>
    %250 = vector.extract_strided_slice %222 {offsets = [5, 0], sizes = [16, 32], strides = [1, 1]} : vector<22x32xf32> to vector<16x32xf32>
    %251 = vector.extract_strided_slice %223 {offsets = [5, 0], sizes = [1, 32], strides = [1, 1]} : vector<7x32xf32> to vector<1x32xf32>
    %252 = vector.broadcast %251 : vector<1x32xf32> to vector<16x32xf32>
    %253 = arith.mulf %250, %252 : vector<16x32xf32>
    %254 = arith.addf %249, %253 : vector<16x32xf32>
    %255 = vector.extract_strided_slice %222 {offsets = [6, 0], sizes = [16, 32], strides = [1, 1]} : vector<22x32xf32> to vector<16x32xf32>
    %256 = vector.extract_strided_slice %223 {offsets = [6, 0], sizes = [1, 32], strides = [1, 1]} : vector<7x32xf32> to vector<1x32xf32>
    %257 = vector.broadcast %256 : vector<1x32xf32> to vector<16x32xf32>
    %258 = arith.mulf %255, %257 : vector<16x32xf32>
    %259 = arith.addf %254, %258 : vector<16x32xf32>
    %c0_82 = arith.constant 0 : index
    %c0_83 = arith.constant 0 : index
    %260 = vector.load %arg28[%c0_82, %c0_83] : memref<32x32xf32, #tpu.memory_space<vmem>>, vector<32x32xf32>
    %cst_84 = arith.constant dense<0.000000e+00> : vector<16x32xf32>
    %261 = tpu.matmul %259, %260, %cst_84 {dimension_numbers = #tpu.dot_dimension_numbers<[1], [0], [0], [1], [0, 0, 1, 1], [], []>} : vector<16x32xf32>, vector<32x32xf32>, vector<16x32xf32> -> vector<16x32xf32>
    %c0_85 = arith.constant 0 : index
    %c0_86 = arith.constant 0 : index
    %262 = vector.load %arg29[%c0_85, %c0_86] : memref<1x32xf32, #tpu.memory_space<vmem>>, vector<1x32xf32>
    %263 = vector.broadcast %262 : vector<1x32xf32> to vector<16x32xf32>
    %264 = arith.addf %261, %263 : vector<16x32xf32>
    %cst_87 = arith.constant 0.000000e+00 : f32
    %265 = vector.broadcast %cst_87 : f32 to vector<16x32xf32>
    %266 = arith.maximumf %264, %265 : vector<16x32xf32>
    %267 = arith.addf %266, %197 : vector<16x32xf32>
    %c0_88 = arith.constant 0 : index
    %c0_89 = arith.constant 0 : index
    %268 = vector.load %arg30[%c0_88, %c0_89] : memref<1x32xf32, #tpu.memory_space<vmem>>, vector<1x32xf32>
    %c0_90 = arith.constant 0 : index
    %c0_91 = arith.constant 0 : index
    %269 = vector.load %arg31[%c0_90, %c0_91] : memref<1x32xf32, #tpu.memory_space<vmem>>, vector<1x32xf32>
    %cst_92 = arith.constant dense<0.000000e+00> : vector<16xf32>
    %270 = vector.multi_reduction <add>, %267, %cst_92 [1] : vector<16x32xf32> to vector<16xf32>
    %271 = vector.shape_cast %270 : vector<16xf32> to vector<16x1xf32>
    %cst_93 = arith.constant 3.200000e+01 : f32
    %272 = vector.broadcast %cst_93 : f32 to vector<16x1xf32>
    %273 = arith.divf %271, %272 : vector<16x1xf32>
    %274 = vector.broadcast %273 : vector<16x1xf32> to vector<16x32xf32>
    %275 = arith.subf %267, %274 : vector<16x32xf32>
    %276 = arith.mulf %275, %275 : vector<16x32xf32>
    %cst_94 = arith.constant dense<0.000000e+00> : vector<16xf32>
    %277 = vector.multi_reduction <add>, %276, %cst_94 [1] : vector<16x32xf32> to vector<16xf32>
    %278 = vector.shape_cast %277 : vector<16xf32> to vector<16x1xf32>
    %cst_95 = arith.constant 3.200000e+01 : f32
    %279 = vector.broadcast %cst_95 : f32 to vector<16x1xf32>
    %280 = arith.divf %278, %279 : vector<16x1xf32>
    %281 = vector.broadcast %273 : vector<16x1xf32> to vector<16x32xf32>
    %282 = arith.subf %267, %281 : vector<16x32xf32>
    %cst_96 = arith.constant 9.99999974E-6 : f32
    %283 = vector.broadcast %cst_96 : f32 to vector<16x1xf32>
    %284 = arith.addf %280, %283 : vector<16x1xf32>
    %285 = math.rsqrt %284 : vector<16x1xf32>
    %286 = vector.broadcast %285 : vector<16x1xf32> to vector<16x32xf32>
    %287 = arith.mulf %282, %286 : vector<16x32xf32>
    %288 = vector.broadcast %268 : vector<1x32xf32> to vector<16x32xf32>
    %289 = arith.mulf %287, %288 : vector<16x32xf32>
    %290 = vector.broadcast %269 : vector<1x32xf32> to vector<16x32xf32>
    %291 = arith.addf %289, %290 : vector<16x32xf32>
    %292 = tpu.concatenate %57, %291, %57 in 0 : vector<3x32xf32>, vector<16x32xf32>, vector<3x32xf32> -> vector<22x32xf32>
    %c0_97 = arith.constant 0 : index
    %c0_98 = arith.constant 0 : index
    %293 = vector.load %arg32[%c0_97, %c0_98] : memref<7x32xf32, #tpu.memory_space<vmem>>, vector<7x32xf32>
    %cst_99 = arith.constant 0.000000e+00 : f32
    %294 = vector.broadcast %cst_99 : f32 to vector<16x32xf32>
    %295 = vector.extract_strided_slice %292 {offsets = [0, 0], sizes = [16, 32], strides = [1, 1]} : vector<22x32xf32> to vector<16x32xf32>
    %296 = vector.extract_strided_slice %293 {offsets = [0, 0], sizes = [1, 32], strides = [1, 1]} : vector<7x32xf32> to vector<1x32xf32>
    %297 = vector.broadcast %296 : vector<1x32xf32> to vector<16x32xf32>
    %298 = arith.mulf %295, %297 : vector<16x32xf32>
    %299 = arith.addf %294, %298 : vector<16x32xf32>
    %300 = vector.extract_strided_slice %292 {offsets = [1, 0], sizes = [16, 32], strides = [1, 1]} : vector<22x32xf32> to vector<16x32xf32>
    %301 = vector.extract_strided_slice %293 {offsets = [1, 0], sizes = [1, 32], strides = [1, 1]} : vector<7x32xf32> to vector<1x32xf32>
    %302 = vector.broadcast %301 : vector<1x32xf32> to vector<16x32xf32>
    %303 = arith.mulf %300, %302 : vector<16x32xf32>
    %304 = arith.addf %299, %303 : vector<16x32xf32>
    %305 = vector.extract_strided_slice %292 {offsets = [2, 0], sizes = [16, 32], strides = [1, 1]} : vector<22x32xf32> to vector<16x32xf32>
    %306 = vector.extract_strided_slice %293 {offsets = [2, 0], sizes = [1, 32], strides = [1, 1]} : vector<7x32xf32> to vector<1x32xf32>
    %307 = vector.broadcast %306 : vector<1x32xf32> to vector<16x32xf32>
    %308 = arith.mulf %305, %307 : vector<16x32xf32>
    %309 = arith.addf %304, %308 : vector<16x32xf32>
    %310 = vector.extract_strided_slice %292 {offsets = [3, 0], sizes = [16, 32], strides = [1, 1]} : vector<22x32xf32> to vector<16x32xf32>
    %311 = vector.extract_strided_slice %293 {offsets = [3, 0], sizes = [1, 32], strides = [1, 1]} : vector<7x32xf32> to vector<1x32xf32>
    %312 = vector.broadcast %311 : vector<1x32xf32> to vector<16x32xf32>
    %313 = arith.mulf %310, %312 : vector<16x32xf32>
    %314 = arith.addf %309, %313 : vector<16x32xf32>
    %315 = vector.extract_strided_slice %292 {offsets = [4, 0], sizes = [16, 32], strides = [1, 1]} : vector<22x32xf32> to vector<16x32xf32>
    %316 = vector.extract_strided_slice %293 {offsets = [4, 0], sizes = [1, 32], strides = [1, 1]} : vector<7x32xf32> to vector<1x32xf32>
    %317 = vector.broadcast %316 : vector<1x32xf32> to vector<16x32xf32>
    %318 = arith.mulf %315, %317 : vector<16x32xf32>
    %319 = arith.addf %314, %318 : vector<16x32xf32>
    %320 = vector.extract_strided_slice %292 {offsets = [5, 0], sizes = [16, 32], strides = [1, 1]} : vector<22x32xf32> to vector<16x32xf32>
    %321 = vector.extract_strided_slice %293 {offsets = [5, 0], sizes = [1, 32], strides = [1, 1]} : vector<7x32xf32> to vector<1x32xf32>
    %322 = vector.broadcast %321 : vector<1x32xf32> to vector<16x32xf32>
    %323 = arith.mulf %320, %322 : vector<16x32xf32>
    %324 = arith.addf %319, %323 : vector<16x32xf32>
    %325 = vector.extract_strided_slice %292 {offsets = [6, 0], sizes = [16, 32], strides = [1, 1]} : vector<22x32xf32> to vector<16x32xf32>
    %326 = vector.extract_strided_slice %293 {offsets = [6, 0], sizes = [1, 32], strides = [1, 1]} : vector<7x32xf32> to vector<1x32xf32>
    %327 = vector.broadcast %326 : vector<1x32xf32> to vector<16x32xf32>
    %328 = arith.mulf %325, %327 : vector<16x32xf32>
    %329 = arith.addf %324, %328 : vector<16x32xf32>
    %c0_100 = arith.constant 0 : index
    %c0_101 = arith.constant 0 : index
    %330 = vector.load %arg33[%c0_100, %c0_101] : memref<32x32xf32, #tpu.memory_space<vmem>>, vector<32x32xf32>
    %cst_102 = arith.constant dense<0.000000e+00> : vector<16x32xf32>
    %331 = tpu.matmul %329, %330, %cst_102 {dimension_numbers = #tpu.dot_dimension_numbers<[1], [0], [0], [1], [0, 0, 1, 1], [], []>} : vector<16x32xf32>, vector<32x32xf32>, vector<16x32xf32> -> vector<16x32xf32>
    %c0_103 = arith.constant 0 : index
    %c0_104 = arith.constant 0 : index
    %332 = vector.load %arg34[%c0_103, %c0_104] : memref<1x32xf32, #tpu.memory_space<vmem>>, vector<1x32xf32>
    %333 = vector.broadcast %332 : vector<1x32xf32> to vector<16x32xf32>
    %334 = arith.addf %331, %333 : vector<16x32xf32>
    %cst_105 = arith.constant 0.000000e+00 : f32
    %335 = vector.broadcast %cst_105 : f32 to vector<16x32xf32>
    %336 = arith.maximumf %334, %335 : vector<16x32xf32>
    %337 = arith.addf %336, %267 : vector<16x32xf32>
    %c0_106 = arith.constant 0 : index
    %c0_107 = arith.constant 0 : index
    %338 = vector.load %arg35[%c0_106, %c0_107] : memref<1x32xf32, #tpu.memory_space<vmem>>, vector<1x32xf32>
    %c0_108 = arith.constant 0 : index
    %c0_109 = arith.constant 0 : index
    %339 = vector.load %arg36[%c0_108, %c0_109] : memref<1x32xf32, #tpu.memory_space<vmem>>, vector<1x32xf32>
    %cst_110 = arith.constant dense<0.000000e+00> : vector<16xf32>
    %340 = vector.multi_reduction <add>, %337, %cst_110 [1] : vector<16x32xf32> to vector<16xf32>
    %341 = vector.shape_cast %340 : vector<16xf32> to vector<16x1xf32>
    %cst_111 = arith.constant 3.200000e+01 : f32
    %342 = vector.broadcast %cst_111 : f32 to vector<16x1xf32>
    %343 = arith.divf %341, %342 : vector<16x1xf32>
    %344 = vector.broadcast %343 : vector<16x1xf32> to vector<16x32xf32>
    %345 = arith.subf %337, %344 : vector<16x32xf32>
    %346 = arith.mulf %345, %345 : vector<16x32xf32>
    %cst_112 = arith.constant dense<0.000000e+00> : vector<16xf32>
    %347 = vector.multi_reduction <add>, %346, %cst_112 [1] : vector<16x32xf32> to vector<16xf32>
    %348 = vector.shape_cast %347 : vector<16xf32> to vector<16x1xf32>
    %cst_113 = arith.constant 3.200000e+01 : f32
    %349 = vector.broadcast %cst_113 : f32 to vector<16x1xf32>
    %350 = arith.divf %348, %349 : vector<16x1xf32>
    %351 = vector.broadcast %343 : vector<16x1xf32> to vector<16x32xf32>
    %352 = arith.subf %337, %351 : vector<16x32xf32>
    %cst_114 = arith.constant 9.99999974E-6 : f32
    %353 = vector.broadcast %cst_114 : f32 to vector<16x1xf32>
    %354 = arith.addf %350, %353 : vector<16x1xf32>
    %355 = math.rsqrt %354 : vector<16x1xf32>
    %356 = vector.broadcast %355 : vector<16x1xf32> to vector<16x32xf32>
    %357 = arith.mulf %352, %356 : vector<16x32xf32>
    %358 = vector.broadcast %338 : vector<1x32xf32> to vector<16x32xf32>
    %359 = arith.mulf %357, %358 : vector<16x32xf32>
    %360 = vector.broadcast %339 : vector<1x32xf32> to vector<16x32xf32>
    %361 = arith.addf %359, %360 : vector<16x32xf32>
    %c0_115 = arith.constant 0 : index
    %c0_116 = arith.constant 0 : index
    %362 = vector.load %arg37[%c0_115, %c0_116] : memref<32x64xf32, #tpu.memory_space<vmem>>, vector<32x64xf32>
    %cst_117 = arith.constant dense<0.000000e+00> : vector<16x64xf32>
    %363 = tpu.matmul %361, %362, %cst_117 {dimension_numbers = #tpu.dot_dimension_numbers<[1], [0], [0], [1], [0, 0, 1, 1], [], []>} : vector<16x32xf32>, vector<32x64xf32>, vector<16x64xf32> -> vector<16x64xf32>
    %c0_118 = arith.constant 0 : index
    %c0_119 = arith.constant 0 : index
    %364 = vector.load %arg38[%c0_118, %c0_119] : memref<32x32xf32, #tpu.memory_space<vmem>>, vector<32x32xf32>
    %cst_120 = arith.constant dense<0.000000e+00> : vector<16x32xf32>
    %365 = tpu.matmul %361, %364, %cst_120 {dimension_numbers = #tpu.dot_dimension_numbers<[1], [0], [0], [1], [0, 0, 1, 1], [], []>} : vector<16x32xf32>, vector<32x32xf32>, vector<16x32xf32> -> vector<16x32xf32>
    %366 = vector.extract_strided_slice %365 {offsets = [0, 0], sizes = [16, 8], strides = [1, 1]} : vector<16x32xf32> to vector<16x8xf32>
    %cst_121 = arith.constant 0.353553385 : f32
    %367 = vector.broadcast %cst_121 : f32 to vector<16x8xf32>
    %368 = arith.mulf %366, %367 : vector<16x8xf32>
    %369 = vector.extract_strided_slice %363 {offsets = [0, 0], sizes = [16, 8], strides = [1, 1]} : vector<16x64xf32> to vector<16x8xf32>
    %370 = vector.extract_strided_slice %363 {offsets = [0, 32], sizes = [16, 8], strides = [1, 1]} : vector<16x64xf32> to vector<16x8xf32>
    %cst_122 = arith.constant dense<0.000000e+00> : vector<16x16xf32>
    %371 = tpu.matmul %368, %369, %cst_122 {dimension_numbers = #tpu.dot_dimension_numbers<[1], [1], [0], [0], [0, 0, 1, 0], [], []>} : vector<16x8xf32>, vector<16x8xf32>, vector<16x16xf32> -> vector<16x16xf32>
    %cst_123 = arith.constant 0.000000e+00 : f32
    %372 = vector.broadcast %cst_123 : f32 to vector<1x16xf32>
    %373 = arith.cmpf ogt, %5, %372 : vector<1x16xf32>
    %cst_124 = arith.constant -1.000000e+30 : f32
    %374 = vector.shape_cast %373 : vector<1x16xi1> to vector<1x16xi1>
    %375 = vector.broadcast %374 : vector<1x16xi1> to vector<16x16xi1>
    %376 = vector.broadcast %cst_124 : f32 to vector<16x16xf32>
    %377 = arith.select %375, %371, %376 : vector<16x16xi1>, vector<16x16xf32>
    %cst_125 = arith.constant dense<0xFF800000> : vector<16xf32>
    %378 = vector.multi_reduction <maximumf>, %377, %cst_125 [1] : vector<16x16xf32> to vector<16xf32>
    %cst_126 = arith.constant 0xFF800000 : f32
    %379 = vector.broadcast %cst_126 : f32 to vector<16xf32>
    %380 = arith.maximumf %379, %378 : vector<16xf32>
    %381 = vector.shape_cast %380 : vector<16xf32> to vector<16x1xf32>
    %382 = vector.broadcast %381 : vector<16x1xf32> to vector<16x16xf32>
    %383 = arith.subf %377, %382 : vector<16x16xf32>
    %384 = math.exp %383 : vector<16x16xf32>
    %cst_127 = arith.constant dense<0.000000e+00> : vector<16xf32>
    %385 = vector.multi_reduction <add>, %384, %cst_127 [1] : vector<16x16xf32> to vector<16xf32>
    %386 = vector.shape_cast %385 : vector<16xf32> to vector<16x1xf32>
    %387 = vector.broadcast %386 : vector<16x1xf32> to vector<16x16xf32>
    %388 = arith.divf %384, %387 : vector<16x16xf32>
    %cst_128 = arith.constant dense<0.000000e+00> : vector<16x8xf32>
    %389 = tpu.matmul %388, %370, %cst_128 {dimension_numbers = #tpu.dot_dimension_numbers<[1], [0], [0], [1], [0, 0, 1, 1], [], []>} : vector<16x16xf32>, vector<16x8xf32>, vector<16x8xf32> -> vector<16x8xf32>
    %390 = vector.extract_strided_slice %365 {offsets = [0, 8], sizes = [16, 8], strides = [1, 1]} : vector<16x32xf32> to vector<16x8xf32>
    %cst_129 = arith.constant 0.353553385 : f32
    %391 = vector.broadcast %cst_129 : f32 to vector<16x8xf32>
    %392 = arith.mulf %390, %391 : vector<16x8xf32>
    %393 = vector.extract_strided_slice %363 {offsets = [0, 8], sizes = [16, 8], strides = [1, 1]} : vector<16x64xf32> to vector<16x8xf32>
    %394 = vector.extract_strided_slice %363 {offsets = [0, 40], sizes = [16, 8], strides = [1, 1]} : vector<16x64xf32> to vector<16x8xf32>
    %cst_130 = arith.constant dense<0.000000e+00> : vector<16x16xf32>
    %395 = tpu.matmul %392, %393, %cst_130 {dimension_numbers = #tpu.dot_dimension_numbers<[1], [1], [0], [0], [0, 0, 1, 0], [], []>} : vector<16x8xf32>, vector<16x8xf32>, vector<16x16xf32> -> vector<16x16xf32>
    %cst_131 = arith.constant 0.000000e+00 : f32
    %396 = vector.broadcast %cst_131 : f32 to vector<1x16xf32>
    %397 = arith.cmpf ogt, %5, %396 : vector<1x16xf32>
    %cst_132 = arith.constant -1.000000e+30 : f32
    %398 = vector.shape_cast %397 : vector<1x16xi1> to vector<1x16xi1>
    %399 = vector.broadcast %398 : vector<1x16xi1> to vector<16x16xi1>
    %400 = vector.broadcast %cst_132 : f32 to vector<16x16xf32>
    %401 = arith.select %399, %395, %400 : vector<16x16xi1>, vector<16x16xf32>
    %cst_133 = arith.constant dense<0xFF800000> : vector<16xf32>
    %402 = vector.multi_reduction <maximumf>, %401, %cst_133 [1] : vector<16x16xf32> to vector<16xf32>
    %cst_134 = arith.constant 0xFF800000 : f32
    %403 = vector.broadcast %cst_134 : f32 to vector<16xf32>
    %404 = arith.maximumf %403, %402 : vector<16xf32>
    %405 = vector.shape_cast %404 : vector<16xf32> to vector<16x1xf32>
    %406 = vector.broadcast %405 : vector<16x1xf32> to vector<16x16xf32>
    %407 = arith.subf %401, %406 : vector<16x16xf32>
    %408 = math.exp %407 : vector<16x16xf32>
    %cst_135 = arith.constant dense<0.000000e+00> : vector<16xf32>
    %409 = vector.multi_reduction <add>, %408, %cst_135 [1] : vector<16x16xf32> to vector<16xf32>
    %410 = vector.shape_cast %409 : vector<16xf32> to vector<16x1xf32>
    %411 = vector.broadcast %410 : vector<16x1xf32> to vector<16x16xf32>
    %412 = arith.divf %408, %411 : vector<16x16xf32>
    %cst_136 = arith.constant dense<0.000000e+00> : vector<16x8xf32>
    %413 = tpu.matmul %412, %394, %cst_136 {dimension_numbers = #tpu.dot_dimension_numbers<[1], [0], [0], [1], [0, 0, 1, 1], [], []>} : vector<16x16xf32>, vector<16x8xf32>, vector<16x8xf32> -> vector<16x8xf32>
    %414 = vector.extract_strided_slice %365 {offsets = [0, 16], sizes = [16, 8], strides = [1, 1]} : vector<16x32xf32> to vector<16x8xf32>
    %cst_137 = arith.constant 0.353553385 : f32
    %415 = vector.broadcast %cst_137 : f32 to vector<16x8xf32>
    %416 = arith.mulf %414, %415 : vector<16x8xf32>
    %417 = vector.extract_strided_slice %363 {offsets = [0, 16], sizes = [16, 8], strides = [1, 1]} : vector<16x64xf32> to vector<16x8xf32>
    %418 = vector.extract_strided_slice %363 {offsets = [0, 48], sizes = [16, 8], strides = [1, 1]} : vector<16x64xf32> to vector<16x8xf32>
    %cst_138 = arith.constant dense<0.000000e+00> : vector<16x16xf32>
    %419 = tpu.matmul %416, %417, %cst_138 {dimension_numbers = #tpu.dot_dimension_numbers<[1], [1], [0], [0], [0, 0, 1, 0], [], []>} : vector<16x8xf32>, vector<16x8xf32>, vector<16x16xf32> -> vector<16x16xf32>
    %cst_139 = arith.constant 0.000000e+00 : f32
    %420 = vector.broadcast %cst_139 : f32 to vector<1x16xf32>
    %421 = arith.cmpf ogt, %5, %420 : vector<1x16xf32>
    %cst_140 = arith.constant -1.000000e+30 : f32
    %422 = vector.shape_cast %421 : vector<1x16xi1> to vector<1x16xi1>
    %423 = vector.broadcast %422 : vector<1x16xi1> to vector<16x16xi1>
    %424 = vector.broadcast %cst_140 : f32 to vector<16x16xf32>
    %425 = arith.select %423, %419, %424 : vector<16x16xi1>, vector<16x16xf32>
    %cst_141 = arith.constant dense<0xFF800000> : vector<16xf32>
    %426 = vector.multi_reduction <maximumf>, %425, %cst_141 [1] : vector<16x16xf32> to vector<16xf32>
    %cst_142 = arith.constant 0xFF800000 : f32
    %427 = vector.broadcast %cst_142 : f32 to vector<16xf32>
    %428 = arith.maximumf %427, %426 : vector<16xf32>
    %429 = vector.shape_cast %428 : vector<16xf32> to vector<16x1xf32>
    %430 = vector.broadcast %429 : vector<16x1xf32> to vector<16x16xf32>
    %431 = arith.subf %425, %430 : vector<16x16xf32>
    %432 = math.exp %431 : vector<16x16xf32>
    %cst_143 = arith.constant dense<0.000000e+00> : vector<16xf32>
    %433 = vector.multi_reduction <add>, %432, %cst_143 [1] : vector<16x16xf32> to vector<16xf32>
    %434 = vector.shape_cast %433 : vector<16xf32> to vector<16x1xf32>
    %435 = vector.broadcast %434 : vector<16x1xf32> to vector<16x16xf32>
    %436 = arith.divf %432, %435 : vector<16x16xf32>
    %cst_144 = arith.constant dense<0.000000e+00> : vector<16x8xf32>
    %437 = tpu.matmul %436, %418, %cst_144 {dimension_numbers = #tpu.dot_dimension_numbers<[1], [0], [0], [1], [0, 0, 1, 1], [], []>} : vector<16x16xf32>, vector<16x8xf32>, vector<16x8xf32> -> vector<16x8xf32>
    %438 = vector.extract_strided_slice %365 {offsets = [0, 24], sizes = [16, 8], strides = [1, 1]} : vector<16x32xf32> to vector<16x8xf32>
    %cst_145 = arith.constant 0.353553385 : f32
    %439 = vector.broadcast %cst_145 : f32 to vector<16x8xf32>
    %440 = arith.mulf %438, %439 : vector<16x8xf32>
    %441 = vector.extract_strided_slice %363 {offsets = [0, 24], sizes = [16, 8], strides = [1, 1]} : vector<16x64xf32> to vector<16x8xf32>
    %442 = vector.extract_strided_slice %363 {offsets = [0, 56], sizes = [16, 8], strides = [1, 1]} : vector<16x64xf32> to vector<16x8xf32>
    %cst_146 = arith.constant dense<0.000000e+00> : vector<16x16xf32>
    %443 = tpu.matmul %440, %441, %cst_146 {dimension_numbers = #tpu.dot_dimension_numbers<[1], [1], [0], [0], [0, 0, 1, 0], [], []>} : vector<16x8xf32>, vector<16x8xf32>, vector<16x16xf32> -> vector<16x16xf32>
    %cst_147 = arith.constant 0.000000e+00 : f32
    %444 = vector.broadcast %cst_147 : f32 to vector<1x16xf32>
    %445 = arith.cmpf ogt, %5, %444 : vector<1x16xf32>
    %cst_148 = arith.constant -1.000000e+30 : f32
    %446 = vector.shape_cast %445 : vector<1x16xi1> to vector<1x16xi1>
    %447 = vector.broadcast %446 : vector<1x16xi1> to vector<16x16xi1>
    %448 = vector.broadcast %cst_148 : f32 to vector<16x16xf32>
    %449 = arith.select %447, %443, %448 : vector<16x16xi1>, vector<16x16xf32>
    %cst_149 = arith.constant dense<0xFF800000> : vector<16xf32>
    %450 = vector.multi_reduction <maximumf>, %449, %cst_149 [1] : vector<16x16xf32> to vector<16xf32>
    %cst_150 = arith.constant 0xFF800000 : f32
    %451 = vector.broadcast %cst_150 : f32 to vector<16xf32>
    %452 = arith.maximumf %451, %450 : vector<16xf32>
    %453 = vector.shape_cast %452 : vector<16xf32> to vector<16x1xf32>
    %454 = vector.broadcast %453 : vector<16x1xf32> to vector<16x16xf32>
    %455 = arith.subf %449, %454 : vector<16x16xf32>
    %456 = math.exp %455 : vector<16x16xf32>
    %cst_151 = arith.constant dense<0.000000e+00> : vector<16xf32>
    %457 = vector.multi_reduction <add>, %456, %cst_151 [1] : vector<16x16xf32> to vector<16xf32>
    %458 = vector.shape_cast %457 : vector<16xf32> to vector<16x1xf32>
    %459 = vector.broadcast %458 : vector<16x1xf32> to vector<16x16xf32>
    %460 = arith.divf %456, %459 : vector<16x16xf32>
    %cst_152 = arith.constant dense<0.000000e+00> : vector<16x8xf32>
    %461 = tpu.matmul %460, %442, %cst_152 {dimension_numbers = #tpu.dot_dimension_numbers<[1], [0], [0], [1], [0, 0, 1, 1], [], []>} : vector<16x16xf32>, vector<16x8xf32>, vector<16x8xf32> -> vector<16x8xf32>
    %462 = tpu.concatenate %389, %413, %437, %461 in 1 : vector<16x8xf32>, vector<16x8xf32>, vector<16x8xf32>, vector<16x8xf32> -> vector<16x32xf32>
    %463 = arith.addf %462, %337 : vector<16x32xf32>
    %c0_153 = arith.constant 0 : index
    %c0_154 = arith.constant 0 : index
    %464 = vector.load %arg39[%c0_153, %c0_154] : memref<1x32xf32, #tpu.memory_space<vmem>>, vector<1x32xf32>
    %c0_155 = arith.constant 0 : index
    %c0_156 = arith.constant 0 : index
    %465 = vector.load %arg40[%c0_155, %c0_156] : memref<1x32xf32, #tpu.memory_space<vmem>>, vector<1x32xf32>
    %cst_157 = arith.constant dense<0.000000e+00> : vector<16xf32>
    %466 = vector.multi_reduction <add>, %463, %cst_157 [1] : vector<16x32xf32> to vector<16xf32>
    %467 = vector.shape_cast %466 : vector<16xf32> to vector<16x1xf32>
    %cst_158 = arith.constant 3.200000e+01 : f32
    %468 = vector.broadcast %cst_158 : f32 to vector<16x1xf32>
    %469 = arith.divf %467, %468 : vector<16x1xf32>
    %470 = vector.broadcast %469 : vector<16x1xf32> to vector<16x32xf32>
    %471 = arith.subf %463, %470 : vector<16x32xf32>
    %472 = arith.mulf %471, %471 : vector<16x32xf32>
    %cst_159 = arith.constant dense<0.000000e+00> : vector<16xf32>
    %473 = vector.multi_reduction <add>, %472, %cst_159 [1] : vector<16x32xf32> to vector<16xf32>
    %474 = vector.shape_cast %473 : vector<16xf32> to vector<16x1xf32>
    %cst_160 = arith.constant 3.200000e+01 : f32
    %475 = vector.broadcast %cst_160 : f32 to vector<16x1xf32>
    %476 = arith.divf %474, %475 : vector<16x1xf32>
    %477 = vector.broadcast %469 : vector<16x1xf32> to vector<16x32xf32>
    %478 = arith.subf %463, %477 : vector<16x32xf32>
    %cst_161 = arith.constant 9.99999974E-6 : f32
    %479 = vector.broadcast %cst_161 : f32 to vector<16x1xf32>
    %480 = arith.addf %476, %479 : vector<16x1xf32>
    %481 = math.rsqrt %480 : vector<16x1xf32>
    %482 = vector.broadcast %481 : vector<16x1xf32> to vector<16x32xf32>
    %483 = arith.mulf %478, %482 : vector<16x32xf32>
    %484 = vector.broadcast %464 : vector<1x32xf32> to vector<16x32xf32>
    %485 = arith.mulf %483, %484 : vector<16x32xf32>
    %486 = vector.broadcast %465 : vector<1x32xf32> to vector<16x32xf32>
    %487 = arith.addf %485, %486 : vector<16x32xf32>
    %c0_162 = arith.constant 0 : index
    %c0_163 = arith.constant 0 : index
    %488 = vector.load %arg41[%c0_162, %c0_163] : memref<32x32xf32, #tpu.memory_space<vmem>>, vector<32x32xf32>
    %cst_164 = arith.constant dense<0.000000e+00> : vector<16x32xf32>
    %489 = tpu.matmul %487, %488, %cst_164 {dimension_numbers = #tpu.dot_dimension_numbers<[1], [0], [0], [1], [0, 0, 1, 1], [], []>} : vector<16x32xf32>, vector<32x32xf32>, vector<16x32xf32> -> vector<16x32xf32>
    %c0_165 = arith.constant 0 : index
    %c0_166 = arith.constant 0 : index
    %490 = vector.load %arg42[%c0_165, %c0_166] : memref<1x32xf32, #tpu.memory_space<vmem>>, vector<1x32xf32>
    %491 = vector.broadcast %490 : vector<1x32xf32> to vector<16x32xf32>
    %492 = arith.addf %489, %491 : vector<16x32xf32>
    %cst_167 = arith.constant 0.000000e+00 : f32
    %493 = vector.broadcast %cst_167 : f32 to vector<16x32xf32>
    %494 = arith.maximumf %492, %493 : vector<16x32xf32>
    %c0_168 = arith.constant 0 : index
    %c0_169 = arith.constant 0 : index
    %495 = vector.load %arg43[%c0_168, %c0_169] : memref<32x32xf32, #tpu.memory_space<vmem>>, vector<32x32xf32>
    %cst_170 = arith.constant dense<0.000000e+00> : vector<16x32xf32>
    %496 = tpu.matmul %494, %495, %cst_170 {dimension_numbers = #tpu.dot_dimension_numbers<[1], [0], [0], [1], [0, 0, 1, 1], [], []>} : vector<16x32xf32>, vector<32x32xf32>, vector<16x32xf32> -> vector<16x32xf32>
    %c0_171 = arith.constant 0 : index
    %c0_172 = arith.constant 0 : index
    %497 = vector.load %arg44[%c0_171, %c0_172] : memref<1x32xf32, #tpu.memory_space<vmem>>, vector<1x32xf32>
    %498 = vector.broadcast %497 : vector<1x32xf32> to vector<16x32xf32>
    %499 = arith.addf %496, %498 : vector<16x32xf32>
    %500 = arith.addf %499, %463 : vector<16x32xf32>
    %c0_173 = arith.constant 0 : index
    %c0_174 = arith.constant 0 : index
    %c0_175 = arith.constant 0 : index
    %501 = vector.load %arg1[%c0_173, %c0_174, %c0_175] : memref<1x8x64xf32, #tpu.memory_space<vmem>>, vector<1x8x64xf32>
    %502 = vector.shape_cast %501 : vector<1x8x64xf32> to vector<8x64xf32>
    %c0_176 = arith.constant 0 : index
    %c0_177 = arith.constant 0 : index
    %503 = vector.load %arg45[%c0_176, %c0_177] : memref<64x32xf32, #tpu.memory_space<vmem>>, vector<64x32xf32>
    %cst_178 = arith.constant dense<0.000000e+00> : vector<8x32xf32>
    %504 = tpu.matmul %502, %503, %cst_178 {dimension_numbers = #tpu.dot_dimension_numbers<[1], [0], [0], [1], [0, 0, 1, 1], [], []>} : vector<8x64xf32>, vector<64x32xf32>, vector<8x32xf32> -> vector<8x32xf32>
    %c0_179 = arith.constant 0 : index
    %c0_180 = arith.constant 0 : index
    %505 = vector.load %arg46[%c0_179, %c0_180] : memref<1x32xf32, #tpu.memory_space<vmem>>, vector<1x32xf32>
    %506 = vector.broadcast %505 : vector<1x32xf32> to vector<8x32xf32>
    %507 = arith.addf %504, %506 : vector<8x32xf32>
    %c0_181 = arith.constant 0 : index
    %c0_182 = arith.constant 0 : index
    %c0_183 = arith.constant 0 : index
    %508 = vector.load %arg3[%c0_181, %c0_182, %c0_183] : memref<1x8x1xf32, #tpu.memory_space<vmem>>, vector<1x8x1xf32>
    %509 = vector.shape_cast %508 : vector<1x8x1xf32> to vector<8x1xf32>
    %c0_184 = arith.constant 0 : index
    %c0_185 = arith.constant 0 : index
    %510 = vector.load %arg47[%c0_184, %c0_185] : memref<1x32xf32, #tpu.memory_space<vmem>>, vector<1x32xf32>
    %511 = vector.broadcast %510 : vector<1x32xf32> to vector<8x32xf32>
    %512 = arith.mulf %507, %511 : vector<8x32xf32>
    %cst_186 = arith.constant dense<0.000000e+00> : vector<8xf32>
    %513 = vector.multi_reduction <add>, %512, %cst_186 [1] : vector<8x32xf32> to vector<8xf32>
    %514 = vector.shape_cast %513 : vector<8xf32> to vector<8x1xf32>
    %c0_187 = arith.constant 0 : index
    %c0_188 = arith.constant 0 : index
    %515 = vector.load %arg48[%c0_187, %c0_188] : memref<1x32xf32, #tpu.memory_space<vmem>>, vector<1x32xf32>
    %cst_189 = arith.constant dense<0.000000e+00> : vector<1x16xf32>
    %516 = tpu.matmul %515, %500, %cst_189 {dimension_numbers = #tpu.dot_dimension_numbers<[1], [1], [0], [0], [0, 0, 1, 0], [], []>} : vector<1x32xf32>, vector<16x32xf32>, vector<1x16xf32> -> vector<1x16xf32>
    %c0_190 = arith.constant 0 : index
    %c0_191 = arith.constant 0 : index
    %517 = vector.load %arg49[%c0_190, %c0_191] : memref<1x32xf32, #tpu.memory_space<vmem>>, vector<1x32xf32>
    %518 = vector.broadcast %517 : vector<1x32xf32> to vector<8x32xf32>
    %519 = arith.mulf %507, %518 : vector<8x32xf32>
    %cst_192 = arith.constant dense<0.000000e+00> : vector<8x16xf32>
    %520 = tpu.matmul %519, %500, %cst_192 {dimension_numbers = #tpu.dot_dimension_numbers<[1], [1], [0], [0], [0, 0, 1, 0], [], []>} : vector<8x32xf32>, vector<16x32xf32>, vector<8x16xf32> -> vector<8x16xf32>
    %521 = vector.broadcast %514 : vector<8x1xf32> to vector<8x16xf32>
    %522 = vector.broadcast %516 : vector<1x16xf32> to vector<8x16xf32>
    %523 = arith.addf %521, %522 : vector<8x16xf32>
    %524 = arith.addf %523, %520 : vector<8x16xf32>
    %c0_193 = arith.constant 0 : index
    %c0_194 = arith.constant 0 : index
    %525 = vector.load %arg50[%c0_193, %c0_194] : memref<1x1xf32, #tpu.memory_space<vmem>>, vector<1x1xf32>
    %526 = vector.broadcast %525 : vector<1x1xf32> to vector<8x16xf32>
    %527 = arith.addf %524, %526 : vector<8x16xf32>
    %cst_195 = arith.constant 0.000000e+00 : f32
    %528 = vector.broadcast %cst_195 : f32 to vector<1x16xf32>
    %529 = arith.cmpf ogt, %5, %528 : vector<1x16xf32>
    %cst_196 = arith.constant -1.000000e+30 : f32
    %530 = vector.shape_cast %529 : vector<1x16xi1> to vector<1x16xi1>
    %531 = vector.broadcast %530 : vector<1x16xi1> to vector<8x16xi1>
    %532 = vector.broadcast %cst_196 : f32 to vector<8x16xf32>
    %533 = arith.select %531, %527, %532 : vector<8x16xi1>, vector<8x16xf32>
    %cst_197 = arith.constant dense<0xFF800000> : vector<8xf32>
    %534 = vector.multi_reduction <maximumf>, %533, %cst_197 [1] : vector<8x16xf32> to vector<8xf32>
    %cst_198 = arith.constant 0xFF800000 : f32
    %535 = vector.broadcast %cst_198 : f32 to vector<8xf32>
    %536 = arith.maximumf %535, %534 : vector<8xf32>
    %537 = vector.shape_cast %536 : vector<8xf32> to vector<8x1xf32>
    %538 = vector.broadcast %537 : vector<8x1xf32> to vector<8x16xf32>
    %539 = arith.subf %533, %538 : vector<8x16xf32>
    %540 = math.exp %539 : vector<8x16xf32>
    %cst_199 = arith.constant dense<0.000000e+00> : vector<8xf32>
    %541 = vector.multi_reduction <add>, %540, %cst_199 [1] : vector<8x16xf32> to vector<8xf32>
    %542 = vector.shape_cast %541 : vector<8xf32> to vector<8x1xf32>
    %543 = vector.broadcast %542 : vector<8x1xf32> to vector<8x16xf32>
    %544 = arith.divf %540, %543 : vector<8x16xf32>
    %cst_200 = arith.constant 0.000000e+00 : f32
    %545 = vector.broadcast %cst_200 : f32 to vector<8x1xf32>
    %546 = arith.cmpf ogt, %509, %545 : vector<8x1xf32>
    %cst_201 = arith.constant -1.000000e+30 : f32
    %547 = vector.shape_cast %546 : vector<8x1xi1> to vector<8x1xi1>
    %548 = vector.broadcast %547 : vector<8x1xi1> to vector<8x16xi1>
    %549 = vector.broadcast %cst_201 : f32 to vector<8x16xf32>
    %550 = arith.select %548, %527, %549 : vector<8x16xi1>, vector<8x16xf32>
    %cst_202 = arith.constant dense<0xFF800000> : vector<16xf32>
    %551 = vector.multi_reduction <maximumf>, %550, %cst_202 [0] : vector<8x16xf32> to vector<16xf32>
    %cst_203 = arith.constant 0xFF800000 : f32
    %552 = vector.broadcast %cst_203 : f32 to vector<16xf32>
    %553 = arith.maximumf %552, %551 : vector<16xf32>
    %554 = vector.shape_cast %553 : vector<16xf32> to vector<1x16xf32>
    %555 = vector.broadcast %554 : vector<1x16xf32> to vector<8x16xf32>
    %556 = arith.subf %550, %555 : vector<8x16xf32>
    %557 = math.exp %556 : vector<8x16xf32>
    %cst_204 = arith.constant dense<0.000000e+00> : vector<16xf32>
    %558 = vector.multi_reduction <add>, %557, %cst_204 [0] : vector<8x16xf32> to vector<16xf32>
    %559 = vector.shape_cast %558 : vector<16xf32> to vector<1x16xf32>
    %560 = vector.broadcast %559 : vector<1x16xf32> to vector<8x16xf32>
    %561 = arith.divf %557, %560 : vector<8x16xf32>
    %cst_205 = arith.constant dense<0.000000e+00> : vector<8x32xf32>
    %562 = tpu.matmul %544, %500, %cst_205 {dimension_numbers = #tpu.dot_dimension_numbers<[1], [0], [0], [1], [0, 0, 1, 1], [], []>} : vector<8x16xf32>, vector<16x32xf32>, vector<8x32xf32> -> vector<8x32xf32>
    %cst_206 = arith.constant dense<0.000000e+00> : vector<8x8xf32>
    %563 = tpu.matmul %544, %561, %cst_206 {dimension_numbers = #tpu.dot_dimension_numbers<[1], [1], [0], [0], [0, 0, 1, 0], [], []>} : vector<8x16xf32>, vector<8x16xf32>, vector<8x8xf32> -> vector<8x8xf32>
    %cst_207 = arith.constant dense<0.000000e+00> : vector<8x32xf32>
    %564 = tpu.matmul %563, %507, %cst_207 {dimension_numbers = #tpu.dot_dimension_numbers<[1], [0], [0], [1], [0, 0, 1, 1], [], []>} : vector<8x8xf32>, vector<8x32xf32>, vector<8x32xf32> -> vector<8x32xf32>
    %565 = arith.mulf %507, %562 : vector<8x32xf32>
    %566 = arith.mulf %507, %564 : vector<8x32xf32>
    %567 = tpu.concatenate %507, %562, %565, %566 in 1 : vector<8x32xf32>, vector<8x32xf32>, vector<8x32xf32>, vector<8x32xf32> -> vector<8x128xf32>
    %c0_208 = arith.constant 0 : index
    %c0_209 = arith.constant 0 : index
    %568 = vector.load %arg51[%c0_208, %c0_209] : memref<128x32xf32, #tpu.memory_space<vmem>>, vector<128x32xf32>
    %cst_210 = arith.constant dense<0.000000e+00> : vector<8x32xf32>
    %569 = tpu.matmul %567, %568, %cst_210 {dimension_numbers = #tpu.dot_dimension_numbers<[1], [0], [0], [1], [0, 0, 1, 1], [], []>} : vector<8x128xf32>, vector<128x32xf32>, vector<8x32xf32> -> vector<8x32xf32>
    %cst_211 = arith.constant dense<0.000000e+00> : vector<32xf32>
    %570 = vector.multi_reduction <add>, %569, %cst_211 [0] : vector<8x32xf32> to vector<32xf32>
    %571 = vector.shape_cast %570 : vector<32xf32> to vector<1x32xf32>
    %cst_212 = arith.constant 8.000000e+00 : f32
    %572 = vector.broadcast %cst_212 : f32 to vector<1x32xf32>
    %573 = arith.divf %571, %572 : vector<1x32xf32>
    %574 = vector.shape_cast %573 : vector<1x32xf32> to vector<1x1x32xf32>
    %c0_213 = arith.constant 0 : index
    %c0_214 = arith.constant 0 : index
    %c0_215 = arith.constant 0 : index
    %575 = vector.load %arg52[%c0_213, %c0_214, %c0_215] : memref<1x1x32xf32, #tpu.memory_space<vmem>>, vector<1x1x32xf32>
    tpu.vector_store %arg52[%c0_213, %c0_214, %c0_215], %574 {strides = array<i32>} : memref<1x1x32xf32, #tpu.memory_space<vmem>>, vector<1x1x32xf32>,
    %576 = vector.shape_cast %507 : vector<8x32xf32> to vector<1x8x32xf32>
    %c0_216 = arith.constant 0 : index
    %c0_217 = arith.constant 0 : index
    %c0_218 = arith.constant 0 : index
    %577 = vector.load %arg53[%c0_216, %c0_217, %c0_218] : memref<1x8x32xf32, #tpu.memory_space<vmem>>, vector<1x8x32xf32>
    tpu.vector_store %arg53[%c0_216, %c0_217, %c0_218], %576 {strides = array<i32>} : memref<1x8x32xf32, #tpu.memory_space<vmem>>, vector<1x8x32xf32>,
    %578 = tpu.transpose %500, [1, 0] : vector<16x32xf32> -> vector<32x16xf32>
    %579 = vector.shape_cast %578 : vector<32x16xf32> to vector<1x32x16xf32>
    %c0_219 = arith.constant 0 : index
    %c0_220 = arith.constant 0 : index
    %c0_221 = arith.constant 0 : index
    %580 = vector.load %arg54[%c0_219, %c0_220, %c0_221] : memref<1x32x16xf32, #tpu.memory_space<vmem>>, vector<1x32x16xf32>
    tpu.vector_store %arg54[%c0_219, %c0_220, %c0_221], %579 {strides = array<i32>} : memref<1x32x16xf32, #tpu.memory_space<vmem>>, vector<1x32x16xf32>,
    return
  }
  func.func @transform_0(%arg0: i32) -> (i32, i32, i32) {
    %c0_i32 = arith.constant 0 : i32
    %c0_i32_0 = arith.constant 0 : i32
    %c0_i32_1 = arith.constant 0 : i32
    return %arg0, %c0_i32, %c0_i32_0 : i32, i32, i32
  }
  func.func @transform_1(%arg0: i32) -> (i32, i32, i32) {
    %c0_i32 = arith.constant 0 : i32
    %c0_i32_0 = arith.constant 0 : i32
    %c0_i32_1 = arith.constant 0 : i32
    return %arg0, %c0_i32, %c0_i32_0 : i32, i32, i32
  }
  func.func @transform_2(%arg0: i32) -> (i32, i32, i32) {
    %c0_i32 = arith.constant 0 : i32
    %c0_i32_0 = arith.constant 0 : i32
    %c0_i32_1 = arith.constant 0 : i32
    return %arg0, %c0_i32, %c0_i32_0 : i32, i32, i32
  }
  func.func @transform_3(%arg0: i32) -> (i32, i32) {
    %c0_i32 = arith.constant 0 : i32
    %c0_i32_0 = arith.constant 0 : i32
    %c0_i32_1 = arith.constant 0 : i32
    return %c0_i32, %c0_i32_0 : i32, i32
  }
  func.func @transform_4(%arg0: i32) -> (i32, i32) {
    %c0_i32 = arith.constant 0 : i32
    %c0_i32_0 = arith.constant 0 : i32
    %c0_i32_1 = arith.constant 0 : i32
    return %c0_i32, %c0_i32_0 : i32, i32
  }
  func.func @transform_5(%arg0: i32) -> (i32, i32) {
    %c0_i32 = arith.constant 0 : i32
    %c0_i32_0 = arith.constant 0 : i32
    %c0_i32_1 = arith.constant 0 : i32
    return %c0_i32, %c0_i32_0 : i32, i32
  }
  func.func @transform_6(%arg0: i32) -> (i32, i32) {
    %c0_i32 = arith.constant 0 : i32
    %c0_i32_0 = arith.constant 0 : i32
    %c0_i32_1 = arith.constant 0 : i32
    return %c0_i32, %c0_i32_0 : i32, i32
  }
  func.func @transform_7(%arg0: i32) -> (i32, i32) {
    %c0_i32 = arith.constant 0 : i32
    %c0_i32_0 = arith.constant 0 : i32
    %c0_i32_1 = arith.constant 0 : i32
    return %c0_i32, %c0_i32_0 : i32, i32
  }
  func.func @transform_8(%arg0: i32) -> (i32, i32) {
    %c0_i32 = arith.constant 0 : i32
    %c0_i32_0 = arith.constant 0 : i32
    %c0_i32_1 = arith.constant 0 : i32
    return %c0_i32, %c0_i32_0 : i32, i32
  }
  func.func @transform_9(%arg0: i32) -> (i32, i32) {
    %c0_i32 = arith.constant 0 : i32
    %c0_i32_0 = arith.constant 0 : i32
    %c0_i32_1 = arith.constant 0 : i32
    return %c0_i32, %c0_i32_0 : i32, i32
  }
  func.func @transform_10(%arg0: i32) -> (i32, i32) {
    %c0_i32 = arith.constant 0 : i32
    %c0_i32_0 = arith.constant 0 : i32
    %c0_i32_1 = arith.constant 0 : i32
    return %c0_i32, %c0_i32_0 : i32, i32
  }
  func.func @transform_11(%arg0: i32) -> (i32, i32) {
    %c0_i32 = arith.constant 0 : i32
    %c0_i32_0 = arith.constant 0 : i32
    %c0_i32_1 = arith.constant 0 : i32
    return %c0_i32, %c0_i32_0 : i32, i32
  }
  func.func @transform_12(%arg0: i32) -> (i32, i32) {
    %c0_i32 = arith.constant 0 : i32
    %c0_i32_0 = arith.constant 0 : i32
    %c0_i32_1 = arith.constant 0 : i32
    return %c0_i32, %c0_i32_0 : i32, i32
  }
  func.func @transform_13(%arg0: i32) -> (i32, i32) {
    %c0_i32 = arith.constant 0 : i32
    %c0_i32_0 = arith.constant 0 : i32
    %c0_i32_1 = arith.constant 0 : i32
    return %c0_i32, %c0_i32_0 : i32, i32
  }
  func.func @transform_14(%arg0: i32) -> (i32, i32) {
    %c0_i32 = arith.constant 0 : i32
    %c0_i32_0 = arith.constant 0 : i32
    %c0_i32_1 = arith.constant 0 : i32
    return %c0_i32, %c0_i32_0 : i32, i32
  }
  func.func @transform_15(%arg0: i32) -> (i32, i32) {
    %c0_i32 = arith.constant 0 : i32
    %c0_i32_0 = arith.constant 0 : i32
    %c0_i32_1 = arith.constant 0 : i32
    return %c0_i32, %c0_i32_0 : i32, i32
  }
  func.func @transform_16(%arg0: i32) -> (i32, i32) {
    %c0_i32 = arith.constant 0 : i32
    %c0_i32_0 = arith.constant 0 : i32
    %c0_i32_1 = arith.constant 0 : i32
    return %c0_i32, %c0_i32_0 : i32, i32
  }
  func.func @transform_17(%arg0: i32) -> (i32, i32) {
    %c0_i32 = arith.constant 0 : i32
    %c0_i32_0 = arith.constant 0 : i32
    %c0_i32_1 = arith.constant 0 : i32
    return %c0_i32, %c0_i32_0 : i32, i32
  }
  func.func @transform_18(%arg0: i32) -> (i32, i32) {
    %c0_i32 = arith.constant 0 : i32
    %c0_i32_0 = arith.constant 0 : i32
    %c0_i32_1 = arith.constant 0 : i32
    return %c0_i32, %c0_i32_0 : i32, i32
  }
  func.func @transform_19(%arg0: i32) -> (i32, i32) {
    %c0_i32 = arith.constant 0 : i32
    %c0_i32_0 = arith.constant 0 : i32
    %c0_i32_1 = arith.constant 0 : i32
    return %c0_i32, %c0_i32_0 : i32, i32
  }
  func.func @transform_20(%arg0: i32) -> (i32, i32) {
    %c0_i32 = arith.constant 0 : i32
    %c0_i32_0 = arith.constant 0 : i32
    %c0_i32_1 = arith.constant 0 : i32
    return %c0_i32, %c0_i32_0 : i32, i32
  }
  func.func @transform_21(%arg0: i32) -> (i32, i32) {
    %c0_i32 = arith.constant 0 : i32
    %c0_i32_0 = arith.constant 0 : i32
    %c0_i32_1 = arith.constant 0 : i32
    return %c0_i32, %c0_i32_0 : i32, i32
  }
  func.func @transform_22(%arg0: i32) -> (i32, i32) {
    %c0_i32 = arith.constant 0 : i32
    %c0_i32_0 = arith.constant 0 : i32
    %c0_i32_1 = arith.constant 0 : i32
    return %c0_i32, %c0_i32_0 : i32, i32
  }
  func.func @transform_23(%arg0: i32) -> (i32, i32) {
    %c0_i32 = arith.constant 0 : i32
    %c0_i32_0 = arith.constant 0 : i32
    %c0_i32_1 = arith.constant 0 : i32
    return %c0_i32, %c0_i32_0 : i32, i32
  }
  func.func @transform_24(%arg0: i32) -> (i32, i32) {
    %c0_i32 = arith.constant 0 : i32
    %c0_i32_0 = arith.constant 0 : i32
    %c0_i32_1 = arith.constant 0 : i32
    return %c0_i32, %c0_i32_0 : i32, i32
  }
  func.func @transform_25(%arg0: i32) -> (i32, i32) {
    %c0_i32 = arith.constant 0 : i32
    %c0_i32_0 = arith.constant 0 : i32
    %c0_i32_1 = arith.constant 0 : i32
    return %c0_i32, %c0_i32_0 : i32, i32
  }
  func.func @transform_26(%arg0: i32) -> (i32, i32) {
    %c0_i32 = arith.constant 0 : i32
    %c0_i32_0 = arith.constant 0 : i32
    %c0_i32_1 = arith.constant 0 : i32
    return %c0_i32, %c0_i32_0 : i32, i32
  }
  func.func @transform_27(%arg0: i32) -> (i32, i32) {
    %c0_i32 = arith.constant 0 : i32
    %c0_i32_0 = arith.constant 0 : i32
    %c0_i32_1 = arith.constant 0 : i32
    return %c0_i32, %c0_i32_0 : i32, i32
  }
  func.func @transform_28(%arg0: i32) -> (i32, i32) {
    %c0_i32 = arith.constant 0 : i32
    %c0_i32_0 = arith.constant 0 : i32
    %c0_i32_1 = arith.constant 0 : i32
    return %c0_i32, %c0_i32_0 : i32, i32
  }
  func.func @transform_29(%arg0: i32) -> (i32, i32) {
    %c0_i32 = arith.constant 0 : i32
    %c0_i32_0 = arith.constant 0 : i32
    %c0_i32_1 = arith.constant 0 : i32
    return %c0_i32, %c0_i32_0 : i32, i32
  }
  func.func @transform_30(%arg0: i32) -> (i32, i32) {
    %c0_i32 = arith.constant 0 : i32
    %c0_i32_0 = arith.constant 0 : i32
    %c0_i32_1 = arith.constant 0 : i32
    return %c0_i32, %c0_i32_0 : i32, i32
  }
  func.func @transform_31(%arg0: i32) -> (i32, i32) {
    %c0_i32 = arith.constant 0 : i32
    %c0_i32_0 = arith.constant 0 : i32
    %c0_i32_1 = arith.constant 0 : i32
    return %c0_i32, %c0_i32_0 : i32, i32
  }
  func.func @transform_32(%arg0: i32) -> (i32, i32) {
    %c0_i32 = arith.constant 0 : i32
    %c0_i32_0 = arith.constant 0 : i32
    %c0_i32_1 = arith.constant 0 : i32
    return %c0_i32, %c0_i32_0 : i32, i32
  }
  func.func @transform_33(%arg0: i32) -> (i32, i32) {
    %c0_i32 = arith.constant 0 : i32
    %c0_i32_0 = arith.constant 0 : i32
    %c0_i32_1 = arith.constant 0 : i32
    return %c0_i32, %c0_i32_0 : i32, i32
  }
  func.func @transform_34(%arg0: i32) -> (i32, i32) {
    %c0_i32 = arith.constant 0 : i32
    %c0_i32_0 = arith.constant 0 : i32
    %c0_i32_1 = arith.constant 0 : i32
    return %c0_i32, %c0_i32_0 : i32, i32
  }
  func.func @transform_35(%arg0: i32) -> (i32, i32) {
    %c0_i32 = arith.constant 0 : i32
    %c0_i32_0 = arith.constant 0 : i32
    %c0_i32_1 = arith.constant 0 : i32
    return %c0_i32, %c0_i32_0 : i32, i32
  }
  func.func @transform_36(%arg0: i32) -> (i32, i32) {
    %c0_i32 = arith.constant 0 : i32
    %c0_i32_0 = arith.constant 0 : i32
    %c0_i32_1 = arith.constant 0 : i32
    return %c0_i32, %c0_i32_0 : i32, i32
  }
  func.func @transform_37(%arg0: i32) -> (i32, i32) {
    %c0_i32 = arith.constant 0 : i32
    %c0_i32_0 = arith.constant 0 : i32
    %c0_i32_1 = arith.constant 0 : i32
    return %c0_i32, %c0_i32_0 : i32, i32
  }
  func.func @transform_38(%arg0: i32) -> (i32, i32) {
    %c0_i32 = arith.constant 0 : i32
    %c0_i32_0 = arith.constant 0 : i32
    %c0_i32_1 = arith.constant 0 : i32
    return %c0_i32, %c0_i32_0 : i32, i32
  }
  func.func @transform_39(%arg0: i32) -> (i32, i32) {
    %c0_i32 = arith.constant 0 : i32
    %c0_i32_0 = arith.constant 0 : i32
    %c0_i32_1 = arith.constant 0 : i32
    return %c0_i32, %c0_i32_0 : i32, i32
  }
  func.func @transform_40(%arg0: i32) -> (i32, i32) {
    %c0_i32 = arith.constant 0 : i32
    %c0_i32_0 = arith.constant 0 : i32
    %c0_i32_1 = arith.constant 0 : i32
    return %c0_i32, %c0_i32_0 : i32, i32
  }
  func.func @transform_41(%arg0: i32) -> (i32, i32) {
    %c0_i32 = arith.constant 0 : i32
    %c0_i32_0 = arith.constant 0 : i32
    %c0_i32_1 = arith.constant 0 : i32
    return %c0_i32, %c0_i32_0 : i32, i32
  }
  func.func @transform_42(%arg0: i32) -> (i32, i32) {
    %c0_i32 = arith.constant 0 : i32
    %c0_i32_0 = arith.constant 0 : i32
    %c0_i32_1 = arith.constant 0 : i32
    return %c0_i32, %c0_i32_0 : i32, i32
  }
  func.func @transform_43(%arg0: i32) -> (i32, i32) {
    %c0_i32 = arith.constant 0 : i32
    %c0_i32_0 = arith.constant 0 : i32
    %c0_i32_1 = arith.constant 0 : i32
    return %c0_i32, %c0_i32_0 : i32, i32
  }
  func.func @transform_44(%arg0: i32) -> (i32, i32) {
    %c0_i32 = arith.constant 0 : i32
    %c0_i32_0 = arith.constant 0 : i32
    %c0_i32_1 = arith.constant 0 : i32
    return %c0_i32, %c0_i32_0 : i32, i32
  }
  func.func @transform_45(%arg0: i32) -> (i32, i32) {
    %c0_i32 = arith.constant 0 : i32
    %c0_i32_0 = arith.constant 0 : i32
    %c0_i32_1 = arith.constant 0 : i32
    return %c0_i32, %c0_i32_0 : i32, i32
  }
  func.func @transform_46(%arg0: i32) -> (i32, i32) {
    %c0_i32 = arith.constant 0 : i32
    %c0_i32_0 = arith.constant 0 : i32
    %c0_i32_1 = arith.constant 0 : i32
    return %c0_i32, %c0_i32_0 : i32, i32
  }
  func.func @transform_47(%arg0: i32) -> (i32, i32) {
    %c0_i32 = arith.constant 0 : i32
    %c0_i32_0 = arith.constant 0 : i32
    %c0_i32_1 = arith.constant 0 : i32
    return %c0_i32, %c0_i32_0 : i32, i32
  }
  func.func @transform_48(%arg0: i32) -> (i32, i32) {
    %c0_i32 = arith.constant 0 : i32
    %c0_i32_0 = arith.constant 0 : i32
    %c0_i32_1 = arith.constant 0 : i32
    return %c0_i32, %c0_i32_0 : i32, i32
  }
  func.func @transform_49(%arg0: i32) -> (i32, i32) {
    %c0_i32 = arith.constant 0 : i32
    %c0_i32_0 = arith.constant 0 : i32
    %c0_i32_1 = arith.constant 0 : i32
    return %c0_i32, %c0_i32_0 : i32, i32
  }
  func.func @transform_50(%arg0: i32) -> (i32, i32) {
    %c0_i32 = arith.constant 0 : i32
    %c0_i32_0 = arith.constant 0 : i32
    %c0_i32_1 = arith.constant 0 : i32
    return %c0_i32, %c0_i32_0 : i32, i32
  }
  func.func @transform_51(%arg0: i32) -> (i32, i32, i32) {
    %c0_i32 = arith.constant 0 : i32
    %c0_i32_0 = arith.constant 0 : i32
    %c0_i32_1 = arith.constant 0 : i32
    return %arg0, %c0_i32, %c0_i32_0 : i32, i32, i32
  }
  func.func @transform_52(%arg0: i32) -> (i32, i32, i32) {
    %c0_i32 = arith.constant 0 : i32
    %c0_i32_0 = arith.constant 0 : i32
    %c0_i32_1 = arith.constant 0 : i32
    return %arg0, %c0_i32, %c0_i32_0 : i32, i32, i32
  }
  func.func @transform_53(%arg0: i32) -> (i32, i32, i32) {
    %c0_i32 = arith.constant 0 : i32
    %c0_i32_0 = arith.constant 0 : i32
    %c0_i32_1 = arith.constant 0 : i32
    return %arg0, %c0_i32, %c0_i32_0 : i32, i32, i32
  }
}

</mosaic_0001>

<bundles_post_ra>
// kernel: forward.1
= control target key start
LH: loop header
LB: loop body
LE: loop exit
PB: predicated region body
PF: predicated region fallthrough
CT: control target
= control target key end

     0   :  { %s7218_s6 = smov 1   ;;  %s7219_s10 = smov 2   ;;  %s8381_s0 = inlined_call_operand.smem [shape: u32[54], index: -1, kind: input, shape index: {}] }
   0x1   :  { %s7307_s5 = sld [smem:[%s8381_s0]]   ;;  %s7220_s14 = smov 3  }
   0x2   :  { %s7312_s9 = sld [smem:[%s8381_s0 + %s7218_s6]]   ;;  %s7221_s18 = smov 4  }
   0x3   :  { %s7317_s13 = sld [smem:[%s8381_s0 + %s7219_s10]]   ;;  %s7222_s22 = smov 5  }
   0x4   :  { %s7322_s17 = sld [smem:[%s8381_s0 + %s7220_s14]]   ;;  %s7223_s26 = smov 6  }
   0x5   :  { %s7327_s21 = sld [smem:[%s8381_s0 + %s7221_s18]]   ;;  %s7224_s30 = smov 7  }
   0x6   :  { %s7332_s25 = sld [smem:[%s8381_s0 + %s7222_s22]]   ;;  %s7225_s4 = smov 8  }
   0x7   :  { %8414 = sst [smem:[#allocation27_spill]] %s7307_s5  ;;  %s7226_s10 = smov 9  }
   0x8   :  { %8415 = sst [smem:[#allocation28_spill]] %s7312_s9  ;;  %s7227_s15 = smov 10  }
   0x9   :  { %8416 = sst [smem:[#allocation29_spill]] %s7317_s13  ;;  %s7228_s20 = smov 11  }
   0xa   :  { %s7337_s29 = sld [smem:[%s8381_s0 + %s7223_s26]]   ;;  %s7229_s26 = smov 12  }
   0xb   :  { %s7342_s3 = sld [smem:[%s8381_s0 + %s7224_s30]]   ;;  %s7230_s1 = smov 13  }
   0xc   :  { %8417 = sst [smem:[#allocation30_spill]] %s7332_s25  ;;  %s7231_s7 = smov 14  }
   0xd   :  { %s7347_s8 = sld [smem:[%s8381_s0 + %s7225_s4]]   ;;  %s7233_s22 = smov 16  }
   0xe   :  { %s7352_s14 = sld [smem:[%s8381_s0 + %s7226_s10]]   ;;  %s7234_s28 = smov 17  }
   0xf   :  { %s7357_s19 = sld [smem:[%s8381_s0 + %s7227_s15]]   ;;  %s7232_s15 = smov 15  }
  0x10   :  { %s7362_s24 = sld [smem:[%s8381_s0 + %s7228_s20]]   ;;  %s7267_s10 = smov 50  }
  0x11   :  { %8418 = sst [smem:[#allocation31_spill]] %s7342_s3  ;;  %s7268_s16 = smov 51  }
  0x12   :  { %s7367_s30 = sld [smem:[%s8381_s0 + %s7229_s26]]   ;;  %s7269_s23 = smov 52  }
  0x13   :  { %8419 = sst [smem:[#allocation32_spill]] %s7347_s8 }
  0x14   :  { %8420 = sst [smem:[#allocation33_spill]] %s7352_s14 }
  0x15   :  { %8421 = sst [smem:[#allocation34_spill]] %s7357_s19 }
  0x16   :  { %8422 = sst [smem:[#allocation35_spill]] %s7362_s24 }
  0x17   :  { %s7372_s6 = sld [smem:[%s8381_s0 + %s7230_s1]]   ;;  %s7270_s1 = smov 53  }
  0x18   :  { %8423 = sst [smem:[#allocation36_spill]] %s7367_s30 }
  0x19   :  { %s7377_s12 = sld [smem:[%s8381_s0 + %s7231_s7]]   ;;  %s7235_s7 = smov 18  }
  0x1a   :  { %s7382_s20 = sld [smem:[%s8381_s0 + %s7232_s15]]   ;;  %s7236_s15 = smov 19  }
  0x1b   :  { %s7387_s27 = sld [smem:[%s8381_s0 + %s7233_s22]]   ;;  %s7237_s22 = smov 20  }
  0x1c   :  { %s7392_s4 = sld [smem:[%s8381_s0 + %s7234_s28]]   ;;  %s7238_s28 = smov 21  }
  0x1d   :  { %8424 = sst [smem:[#allocation37_spill]] %s7372_s6 }
  0x1e   :  { %s7397_s13 = sld [smem:[%s8381_s0 + %s7235_s7]]   ;;  %s7239_s7 = smov 22  }
  0x1f   :  { %8425 = sst [smem:[#allocation38_spill]] %s7377_s12 }
  0x20   :  { %8426 = sst [smem:[#allocation39_spill]] %s7382_s20 }
  0x21   :  { %s7402_s5 = sld [smem:[%s8381_s0 + %s7236_s15]]   ;;  %s7240_s15 = smov 23  }
  0x22   :  { %8427 = sst [smem:[#allocation40_spill]] %s7392_s4 }
  0x23   :  { %s7407_s20 = sld [smem:[%s8381_s0 + %s7237_s22]]   ;;  %s7241_s22 = smov 24  }
  0x24   :  { %8428 = sst [smem:[#allocation41_spill]] %s7397_s13 }
  0x25   :  { %s7412_s12 = sld [smem:[%s8381_s0 + %s7238_s28]]   ;;  %s7242_s28 = smov 25  }
  0x26   :  { %s7417_s13 = sld [smem:[%s8381_s0 + %s7239_s7]]   ;;  %s7243_s7 = smov 26  }
  0x27   :  { %8429 = sst [smem:[#allocation42_spill]] %s7402_s5 }
  0x28   :  { %s7422_s5 = sld [smem:[%s8381_s0 + %s7240_s15]]   ;;  %s7244_s15 = smov 27  }
  0x29   :  { %8430 = sst [smem:[#allocation43_spill]] %s7407_s20 }
  0x2a   :  { %s7427_s20 = sld [smem:[%s8381_s0 + %s7241_s22]]   ;;  %s7245_s22 = smov 28  }
  0x2b   :  { %8431 = sst [smem:[#allocation44_spill]] %s7412_s12 }
  0x2c   :  { %8432 = sst [smem:[#allocation45_spill]] %s7417_s13 }
  0x2d   :  { %s7432_s4 = sld [smem:[%s8381_s0 + %s7242_s28]]   ;;  %s7246_s28 = smov 29  }
  0x2e   :  { %8433 = sst [smem:[#allocation46_spill]] %s7422_s5 }
  0x2f   :  { %s7437_s13 = sld [smem:[%s8381_s0 + %s7243_s7]]   ;;  %s7247_s7 = smov 30  }
  0x30   :  { %8434 = sst [smem:[#allocation47_spill]] %s7427_s20 }
  0x31   :  { %s7442_s5 = sld [smem:[%s8381_s0 + %s7244_s15]]   ;;  %s7248_s15 = smov 31  }
  0x32   :  { %s7447_s20 = sld [smem:[%s8381_s0 + %s7245_s22]]   ;;  %s7249_s22 = smov 32  }
  0x33   :  { %8435 = sst [smem:[#allocation48_spill]] %s7432_s4 }
  0x34   :  { %s7452_s4 = sld [smem:[%s8381_s0 + %s7246_s28]]   ;;  %s7250_s28 = smov 33  }
  0x35   :  { %s7457_s25 = sld [smem:[%s8381_s0 + %s7247_s7]]   ;;  %s7251_s7 = smov 34  }
  0x36   :  { %s7565_s30 = sld [smem:[%s8381_s0 + %s7269_s23]]  }
  0x37   :  { %8436 = sst [smem:[#allocation49_spill]] %s7442_s5 }
  0x38   :  { %8437 = sst [smem:[#allocation50_spill]] %s7447_s20 }
  0x39   :  { %s7462_s5 = sld [smem:[%s8381_s0 + %s7248_s15]]   ;;  %s7252_s15 = smov 35  }
  0x3a   :  { %8438 = sst [smem:[#allocation51_spill]] %s7452_s4 }
  0x3b   :  { %8439 = sst [smem:[#allocation52_spill]] %s7457_s25 }
  0x3c   :  { %s7467_s20 = sld [smem:[%s8381_s0 + %s7249_s22]]   ;;  %s7253_s22 = smov 36  }
  0x3d   :  { %s7472_s4 = sld [smem:[%s8381_s0 + %s7250_s28]]   ;;  %s7254_s28 = smov 37  }
  0x3e   :  { %s7477_s25 = sld [smem:[%s8381_s0 + %s7251_s7]]   ;;  %s7255_s7 = smov 38  }
  0x3f   :  { %8440 = sst [smem:[#allocation53_spill]] %s7462_s5 }
  0x40   :  { %s7482_s6 = sld [smem:[%s8381_s0 + %s7252_s15]]   ;;  %s7256_s15 = smov 39  }
  0x41   :  { %s7570_s19 = sld [smem:[%s8381_s0 + %s7270_s1]]  }
  0x42   :  { %8441 = sst [smem:[#allocation54_spill]] %s7467_s20 }
  0x43   :  { %8442 = sst [smem:[#allocation55_spill]] %s7472_s4 }
  0x44   :  { %8443 = sst [smem:[#allocation56_spill]] %s7477_s25 }
  0x45   :  { %s7487_s20 = sld [smem:[%s8381_s0 + %s7253_s22]]   ;;  %s7257_s22 = smov 40  }
  0x46   :  { %8444 = sst [smem:[#allocation57_spill]] %s7482_s6 }
  0x47   :  { %s7492_s4 = sld [smem:[%s8381_s0 + %s7254_s28]]   ;;  %s7258_s28 = smov 41  }
  0x48   :  { %s7497_s25 = sld [smem:[%s8381_s0 + %s7255_s7]]   ;;  %s7259_s7 = smov 42  }
  0x49   :  { %s7502_s6 = sld [smem:[%s8381_s0 + %s7256_s15]]   ;;  %s7260_s15 = smov 43  }
  0x4b   :  { %8445 = sst [smem:[#allocation58_spill]] %s7487_s20 }
  0x4c   :  { %s7507_s20 = sld [smem:[%s8381_s0 + %s7257_s22]]   ;;  %s7261_s22 = smov 44  }
  0x4d   :  { %8446 = sst [smem:[#allocation59_spill]] %s7492_s4 }
  0x4e   :  { %8447 = sst [smem:[#allocation60_spill]] %s7497_s25 }
  0x4f   :  { %8448 = sst [smem:[#allocation61_spill]] %s7502_s6 }
  0x50   :  { %s7512_s4 = sld [smem:[%s8381_s0 + %s7258_s28]]   ;;  %s7262_s28 = smov 45  }
  0x51   :  { %s7517_s25 = sld [smem:[%s8381_s0 + %s7259_s7]]   ;;  %s7263_s7 = smov 46  }
  0x52   :  { %8449 = sst [smem:[#allocation62_spill]] %s7507_s20 }
  0x53   :  { %s7522_s6 = sld [smem:[%s8381_s0 + %s7260_s15]]   ;;  %s7264_s15 = smov 47  }
  0x54   :  { %s7527_s20 = sld [smem:[%s8381_s0 + %s7261_s22]]   ;;  %s7265_s22 = smov 48  }
  0x55   :  { %s7532_s24 = sld [smem:[%s8381_s0 + %s7262_s28]]   ;;  %s7266_s28 = smov 49  }
  0x56   :  { %8450 = sst [smem:[#allocation63_spill]] %s7512_s4 }
  0x57   :  { %s7537_s14 = sld [smem:[%s8381_s0 + %s7263_s7]]  }
  0x58   :  { %s7542_s3 = sld [smem:[%s8381_s0 + %s7264_s15]]  }
  0x59   :  { %8451 = sst [smem:[#allocation64_spill]] %s7522_s6 }
  0x5a   :  { %8452 = sst [smem:[#allocation65_spill]] %s7527_s20 }
  0x5b   :  { %8453 = sst [smem:[#allocation66_spill]] %s7532_s24 }
  0x5c   :  { %s7547_s20 = sld [smem:[%s8381_s0 + %s7265_s22]]  }
  0x5d   :  { %8454 = sst [smem:[#allocation67_spill]] %s7537_s14 }
  0x5e   :  { %8455 = sst [smem:[#allocation68_spill]] %s7542_s3 }
  0x5f   :  { %s5752_s24 = sld [smem:[%s8381_s0 + %s7266_s28]]  }
  0x60   :  { %s7555_s14 = sld [smem:[%s8381_s0 + %s7267_s10]]  }
  0x61   :  { %s7560_s3 = sld [smem:[%s8381_s0 + %s7268_s16]]  }
  0x65   :  { %v113_v0 = vstv %s5752_s24 }
  0x66   :  { %114 = vst [vmem:[#allocation2] sm:$0x1] %v113_v0 }
  0x67   :  { %115 = vsyncpa [#allocation4], 0 }
  0x68   :  { %116 = vsyncpa [#allocation7], 0 }
  0x69   :  { %117 = vsyncpa [#allocation10], 0 }
  0x6a   :  { %118 = vsyncpa [#allocation13], 0 }
  0x6b   :  { %119 = vsyncpa [#allocation16], 0 }
  0x6c   :  { %120 = vsyncpa [#allocation5], 0 }
  0x6d   :  { %122 = vsyncpa [#allocation5 + $0x1], 0 }
  0x6e   :  { %123 = vsyncpa [#allocation19], 0 }
  0x6f   :  { %125 = vsyncpa [#allocation19 + $0x1], 0  ;;  %s7572_s10 = smov 0   ;;  %s7574_s7 = smov 0  }
  0x70   :  { %s7576_s11 = smov 0   ;;  %s7578_s16 = smov 0  }
  0x71 LB: > { %s8456_s8 = sld [smem:[#allocation32_spill]]  ;;  %s8458_s4 = sld [smem:[#allocation63_spill]]  ;;  %s7204_s10 = sphi %s7572_s10, %s8535_s10   ;;  %s7216_s16 = sphi %s7578_s16, %s8532_s16   ;;  %s7212_s11 = sphi %s7576_s11, %s8534_s11   ;;  %s7208_s7 = sphi %s7574_s7, %s8536_s7  }
  0x72   : > { %s8457_s6 = sld [smem:[#allocation64_spill]]  ;;  %s8459_s12 = sld [smem:[#allocation44_spill]] }
  0x73   : > { %s8460_s5 = sld [smem:[#allocation53_spill]]  ;;  %8461 = sst [smem:[#allocation69_spill]] %s7204_s10 }
  0x74   : > { %8462 = sst [smem:[#allocation70_spill]] %s7212_s11  ;;  %s7593_s0 = sadd.s32 4294967295, %s7216_s16  }
  0x75   : > { %s5758_s24 = sadd.s32 4294967294, %s7216_s16   ;;  %s7597_s15 = sadd.s32 1, %s7216_s16  }
  0x76   : > { %8463 = sst [smem:[#allocation71_spill]] %s7597_s15  ;;  %s1224_s18 = sadd.s32 1, %s7212_s11 }
  0x77   : > { %s1221_s23 = ssub.s32 %s7216_s16, %s7597_s15  ;;  %p1234_p0 = scmp.ne.s32.totalorder %s7212_s11, %s7208_s7 }
  0x78   : > { %p1222_p1 = scmp.eq.s32.totalorder %s1221_s23, 0  ;;  %p1235_p2 = scmp.eq.s32.totalorder %s7593_s0, 1 }
  0x79   : > { %p1240_p3 = scmp.ne.s32.totalorder %s7208_s7, %s7204_s10  ;;  %p1241_p4 = scmp.eq.s32.totalorder %s5758_s24, 1 }
  0x7a   : > { %s7608_s22 = scalar_select %p1222_p1, %s7212_s11, %s1224_s18  }
  0x7b   : > { %p7610_p5 = por %p1235_p2, %p1234_p0  ;;  %p7614_p6 = por %p1241_p4, %p1240_p3 }
  0x7c   : > { %8464 = sst [smem:[#allocation72_spill]] %s7608_s22  ;;  %p5759_p7 = scmp.ge.s32.totalorder %s7216_s16, 1 }
  0x7d   : > { %s8465_s26 = scalar_select %p7610_p5, 1, 0 }
  0x7e   : > { %s8466_s1 = scalar_select %p7614_p6, 1, 0 }
  0x7f   : > { %p1300_p8 = scmp.lt.s32.totalorder %s7216_s16, 3  ;;  %p8397_p9 = scmp.eq.s32.totalorder %s7593_s0, 0 }
  0x80   : > { %8467 = sst [smem:[#allocation73_spill]] %s8466_s1  ;;  %s7271_s2 = smov [#allocation6]  }
  0x81   : > { %p7621_p10 = pnand %p5759_p7, %p1300_p8  ;;  %s1375_s24 = sshll.u32 %s7271_s2, 4  ;;  %s1376_s24 = int_to_ptr.vmem [resolvable:$true] %s1375_s24 }
  0x82   : > { %s7272_s18 = smov [#allocation9]   ;;  %s7273_s11 = smov [#allocation12]  }
  0x83   : > { %s8468_s28 = scalar_select %p7621_p10, 1, 0 }
  0x84   : > { %p6599_p11 = pneg %p7621_p10  ;;  %s1421_s23 = sshll.u32 %s7272_s18, 4  ;;  %s7633_s23 = int_to_ptr.vmem [resolvable:$true] %s1421_s23 }
  0x85   : > { %s1469_s15 = sshll.u32 %s7273_s11, 4  ;;  %s6878_s1 = scalar_lea.hbm %s8459_s12, 128  ;;  %s7635_s15 = int_to_ptr.vmem [resolvable:$true] %s1469_s15 }
  0x86   : > { %p7629_p12 = pnand %p8397_p9, %p6599_p11  ;;  %p6879_p13 = scmp.ne.s32.totalorder %s8459_s12, %s6878_s1 }
  0x87   : > { %p6885_p3 = scmp.lt.u32.totalorder %s6878_s1, %s8459_s12 }
  0x88   : > { %p7641_p0 = pneg %p7629_p12 }
  0x8a   : > { %p6881_p1 = pnand %p7641_p0, %p6879_p13 }
  0x8c   : > { %p6882_p2 = pneg %p6881_p1 }
  0x8e   : > { %p6887_p4 = pnand %p6885_p3, %p6882_p2 }
  0x90   : > { %6890 = shalt.err (!%p6887_p4)
}
  0x91   : > { %s6891_s18 = scalar_lea.vmem %s1376_s24, 128  ;;  %p6899_p9 = scmp.lt.s32.totalorder %s1376_s24, %s1376_s24 }
  0x92   : > { %p6892_p7 = scmp.ne.s32.totalorder %s1376_s24, %s6891_s18  ;;  %p6900_p6 = scmp.lt.s32.totalorder %s6891_s18, %s6891_s18 }
  0x94   : > { %p6894_p8 = pnand %p6892_p7, %p7641_p0  ;;  %p6901_p5 = por %p6900_p6, %p6899_p9 }
  0x96   : > { %p6895_p11 = pneg %p6894_p8 }
  0x98   : > { %p6902_p10 = pnand %p6901_p5, %p6895_p11 }
  0x9a   : > { %6905 = shalt.err (!%p6902_p10)
}
  0x9b   : > { %6605 = dma.hbm_to_vmem [thread:$0]  (!%p7629_p12), %s8459_s12, 128, %s1376_s24, [#allocation7]  }
  0x9c   : > { %s6906_s11 = scalar_lea.hbm %s8460_s5, 128 }
  0x9d   : > { %p6907_p13 = scmp.ne.s32.totalorder %s8460_s5, %s6906_s11  ;;  %p6913_p3 = scmp.lt.u32.totalorder %s6906_s11, %s8460_s5 }
  0x9f   : > { %p6909_p1 = pnand %p6907_p13, %p7641_p0 }
  0xa1   : > { %p6910_p2 = pneg %p6909_p1 }
  0xa3   : > { %p6915_p4 = pnand %p6913_p3, %p6910_p2 }
  0xa5   : > { %6918 = shalt.err (!%p6915_p4)
}
  0xa6   : > { %s6919_s1 = scalar_lea.vmem %s7633_s23, 128  ;;  %p6927_p10 = scmp.lt.s32.totalorder %s7633_s23, %s7633_s23 }
  0xa7   : > { %p6920_p5 = scmp.ne.s32.totalorder %s7633_s23, %s6919_s1  ;;  %p6928_p7 = scmp.lt.s32.totalorder %s6919_s1, %s6919_s1 }
  0xa9   : > { %p6922_p6 = pnand %p6920_p5, %p7641_p0  ;;  %p6929_p8 = por %p6928_p7, %p6927_p10 }
  0xab   : > { %p6923_p9 = pneg %p6922_p6 }
  0xad   : > { %p6930_p11 = pnand %p6929_p8, %p6923_p9 }
  0xaf   : > { %6933 = shalt.err (!%p6930_p11)
}
  0xb0   : > { %6611 = dma.hbm_to_vmem [thread:$0]  (!%p7629_p12), %s8460_s5, 128, %s7633_s23, [#allocation10]  }
  0xb1   : > { %s6934_s24 = scalar_lea.hbm %s7517_s25, 512 }
  0xb2   : > { %p6935_p13 = scmp.ne.s32.totalorder %s7517_s25, %s6934_s24  ;;  %p6941_p3 = scmp.lt.u32.totalorder %s6934_s24, %s7517_s25 }
  0xb4   : > { %p6937_p1 = pnand %p6935_p13, %p7641_p0 }
  0xb6   : > { %p6938_p2 = pneg %p6937_p1 }
  0xb8   : > { %p6943_p4 = pnand %p6941_p3, %p6938_p2 }
  0xba   : > { %6946 = shalt.err (!%p6943_p4)
}
  0xbb   : > { %s6947_s18 = scalar_lea.vmem %s7635_s15, 512  ;;  %p6955_p10 = scmp.lt.s32.totalorder %s7635_s15, %s7635_s15 }
  0xbc   : > { %p6948_p5 = scmp.ne.s32.totalorder %s7635_s15, %s6947_s18  ;;  %p6956_p7 = scmp.lt.s32.totalorder %s6947_s18, %s6947_s18 }
  0xbe   : > { %p6950_p6 = pnand %p6948_p5, %p7641_p0  ;;  %p6957_p8 = por %p6956_p7, %p6955_p10 }
  0xc0   : > { %p6951_p9 = pneg %p6950_p6 }
  0xc2   : > { %p6958_p11 = pnand %p6957_p8, %p6951_p9 }
  0xc4   : > { %6961 = shalt.err (!%p6958_p11)
}
  0xc5   : > { %s7274_s23 = smov 128   ;;  %s7275_s11 = smov 8  }
  0xc6   : > { %6617 = dma.hbm_to_vmem [thread:$0]  (!%p7629_p12), %s7517_s25, 512, %s7635_s15, [#allocation13], %s7274_s23, %s7274_s23, %s7275_s11  }
  0xc7   : > { %s7276_s1 = smov [#allocation3]   ;;  %s7277_s5 = smov [#allocation8]  }
  0xc8   : > { %s1352_s24 = sshll.u32 %s7276_s1, 4  ;;  %s1398_s12 = sshll.u32 %s7277_s5, 4  ;;  %s1353_s24 = int_to_ptr.vmem [resolvable:$true] %s1352_s24  ;;  %s1399_s12 = int_to_ptr.vmem [resolvable:$true] %s1398_s12 }
  0xc9   : > { %s6962_s18 = scalar_lea.hbm %s7387_s27, 128 }
  0xca   : > { %p6963_p13 = scmp.ne.s32.totalorder %s7387_s27, %s6962_s18  ;;  %p6969_p3 = scmp.lt.u32.totalorder %s6962_s18, %s7387_s27 }
  0xcc   : > { %p6965_p1 = pnand %p6963_p13, %p7641_p0 }
  0xce   : > { %p6966_p2 = pneg %p6965_p1 }
  0xd0   : > { %p6971_p4 = pnand %p6969_p3, %p6966_p2 }
  0xd2   : > { %6974 = shalt.err (!%p6971_p4)
}
  0xd3   : > { %s6975_s10 = scalar_lea.vmem %s1353_s24, 128  ;;  %p6983_p10 = scmp.lt.s32.totalorder %s1353_s24, %s1353_s24 }
  0xd4   : > { %p6976_p5 = scmp.ne.s32.totalorder %s1353_s24, %s6975_s10  ;;  %p6984_p7 = scmp.lt.s32.totalorder %s6975_s10, %s6975_s10 }
  0xd6   : > { %p6978_p6 = pnand %p6976_p5, %p7641_p0  ;;  %p6985_p8 = por %p6984_p7, %p6983_p10 }
  0xd8   : > { %p6979_p9 = pneg %p6978_p6 }
  0xda   : > { %p6986_p11 = pnand %p6985_p8, %p6979_p9 }
  0xdc   : > { %6989 = shalt.err (!%p6986_p11)
}
  0xdd   : > { %6602 = dma.hbm_to_vmem [thread:$0]  (!%p7629_p12), %s7387_s27, 128, %s1353_s24, [#allocation4]  }
  0xde   : > { %s6990_s5 = scalar_lea.hbm %s7437_s13, 128 }
  0xdf   : > { %p6991_p13 = scmp.ne.s32.totalorder %s7437_s13, %s6990_s5  ;;  %p6997_p3 = scmp.lt.u32.totalorder %s6990_s5, %s7437_s13 }
  0xe1   : > { %p6993_p1 = pnand %p6991_p13, %p7641_p0 }
  0xe3   : > { %p6994_p2 = pneg %p6993_p1 }
  0xe5   : > { %p6999_p4 = pnand %p6997_p3, %p6994_p2 }
  0xe7   : > { %7002 = shalt.err (!%p6999_p4)
}
  0xe8   : > { %s7003_s10 = scalar_lea.vmem %s1399_s12, 128  ;;  %p7011_p10 = scmp.lt.s32.totalorder %s1399_s12, %s1399_s12 }
  0xe9   : > { %p7004_p5 = scmp.ne.s32.totalorder %s1399_s12, %s7003_s10  ;;  %p7012_p7 = scmp.lt.s32.totalorder %s7003_s10, %s7003_s10 }
  0xeb   : > { %p7006_p6 = pnand %p7004_p5, %p7641_p0  ;;  %p7013_p8 = por %p7012_p7, %p7011_p10 }
  0xed   : > { %p7007_p9 = pneg %p7006_p6 }
  0xef   : > { %p7014_p11 = pnand %p7013_p8, %p7007_p9 }
  0xf1   : > { %7017 = shalt.err (!%p7014_p11)
}
  0xf2   : > { %6608 = dma.hbm_to_vmem [thread:$0]  (!%p7629_p12), %s7437_s13, 128, %s1399_s12, [#allocation7]  }
  0xf3   : > { %s7278_s15 = smov [#allocation11]   ;;  %s7279_s11 = smov [#allocation14]  }
  0xf4   : > { %s1459_s23 = sshll.u32 %s7278_s15, 4  ;;  %s1483_s1 = sshll.u32 %s7279_s11, 4  ;;  %s1460_s23 = int_to_ptr.vmem [resolvable:$true] %s1459_s23  ;;  %s1484_s1 = int_to_ptr.vmem [resolvable:$true] %s1483_s1 }
  0xf5   : > { %s7018_s24 = scalar_lea.hbm %s8458_s4, 16 }
  0xf6   : > { %p7019_p13 = scmp.ne.s32.totalorder %s8458_s4, %s7018_s24  ;;  %p7025_p3 = scmp.lt.u32.totalorder %s7018_s24, %s8458_s4 }
  0xf8   : > { %p7021_p1 = pnand %p7019_p13, %p7641_p0 }
  0xfa   : > { %p7022_p2 = pneg %p7021_p1 }
  0xfc   : > { %p7027_p4 = pnand %p7025_p3, %p7022_p2 }
  0xfe   : > { %7030 = shalt.err (!%p7027_p4)
}
  0xff   : > { %s7031_s18 = scalar_lea.vmem %s1460_s23, 16  ;;  %s7038_s12 = scalar_lea.vmem %s1460_s23, 32 }
 0x100   : > { %p7032_p5 = scmp.ne.s32.totalorder %s1460_s23, %s7031_s18  ;;  %p7039_p10 = scmp.lt.s32.totalorder %s1460_s23, %s1460_s23 }
 0x101   : > { %p7040_p7 = scmp.lt.s32.totalorder %s7038_s12, %s7031_s18 }
 0x102   : > { %p7034_p6 = pnand %p7032_p5, %p7641_p0 }
 0x103   : > { %p7041_p8 = por %p7040_p7, %p7039_p10 }
 0x104   : > { %p7035_p9 = pneg %p7034_p6 }
 0x106   : > { %p7042_p11 = pnand %p7041_p8, %p7035_p9 }
 0x108   : > { %7045 = shalt.err (!%p7042_p11)
}
 0x109   : > { %6614 = dma.hbm_to_vmem [thread:$0]  (!%p7629_p12), %s8458_s4, 16, %s1460_s23, [#allocation10]  }
 0x10a   : > { %s7046_s5 = scalar_lea.hbm %s8457_s6, 16 }
 0x10b   : > { %p7047_p13 = scmp.ne.s32.totalorder %s8457_s6, %s7046_s5  ;;  %p7053_p3 = scmp.lt.u32.totalorder %s7046_s5, %s8457_s6 }
 0x10d   : > { %p7049_p1 = pnand %p7047_p13, %p7641_p0 }
 0x10f   : > { %p7050_p2 = pneg %p7049_p1 }
 0x111   : > { %p7055_p4 = pnand %p7053_p3, %p7050_p2 }
 0x113   : > { %7058 = shalt.err (!%p7055_p4)
}
 0x114   : > { %s7059_s10 = scalar_lea.vmem %s1484_s1, 16  ;;  %s7066_s15 = scalar_lea.vmem %s1484_s1, 32 }
 0x115   : > { %p7060_p5 = scmp.ne.s32.totalorder %s1484_s1, %s7059_s10  ;;  %p7067_p10 = scmp.lt.s32.totalorder %s1484_s1, %s1484_s1 }
 0x116   : > { %p7068_p7 = scmp.lt.s32.totalorder %s7066_s15, %s7059_s10 }
 0x117   : > { %p7062_p6 = pnand %p7060_p5, %p7641_p0 }
 0x118   : > { %p7069_p8 = por %p7068_p7, %p7067_p10 }
 0x119   : > { %p7063_p9 = pneg %p7062_p6 }
 0x11b   : > { %p7070_p11 = pnand %p7069_p8, %p7063_p9 }
 0x11d   : > { %7073 = shalt.err (!%p7070_p11)
}
 0x11e   : > { %6620 = dma.hbm_to_vmem [thread:$0]  (!%p7629_p12), %s8457_s6, 16, %s1484_s1, [#allocation13]  }
 0x11f   : > { %s7280_s23 = smov [#allocation15]   ;;  %s7074_s24 = scalar_lea.hbm %s7547_s20, 16 }
 0x120   : > { %s1506_s11 = sshll.u32 %s7280_s23, 4  ;;  %p7075_p13 = scmp.ne.s32.totalorder %s7547_s20, %s7074_s24  ;;  %s1507_s11 = int_to_ptr.vmem [resolvable:$true] %s1506_s11 }
 0x121   : > { %p7081_p3 = scmp.lt.u32.totalorder %s7074_s24, %s7547_s20 }
 0x122   : > { %p7077_p1 = pnand %p7075_p13, %p7641_p0 }
 0x124   : > { %p7078_p2 = pneg %p7077_p1 }
 0x126   : > { %p7083_p4 = pnand %p7081_p3, %p7078_p2 }
 0x128   : > { %7086 = shalt.err (!%p7083_p4)
}
 0x129   : > { %s7087_s18 = scalar_lea.vmem %s1507_s11, 16  ;;  %s7094_s12 = scalar_lea.vmem %s1507_s11, 32 }
 0x12a   : > { %p7088_p5 = scmp.ne.s32.totalorder %s1507_s11, %s7087_s18  ;;  %p7095_p10 = scmp.lt.s32.totalorder %s1507_s11, %s1507_s11 }
 0x12b   : > { %p7096_p7 = scmp.lt.s32.totalorder %s7094_s12, %s7087_s18 }
 0x12c   : > { %p7090_p6 = pnand %p7088_p5, %p7641_p0 }
 0x12d   : > { %p7097_p8 = por %p7096_p7, %p7095_p10 }
 0x12e   : > { %p7091_p9 = pneg %p7090_p6 }
 0x130   : > { %p7098_p11 = pnand %p7097_p8, %p7091_p9 }
 0x132   : > { %7101 = shalt.err (!%p7098_p11)
}
 0x133   : > { %6623 = dma.hbm_to_vmem [thread:$0]  (!%p7629_p12), %s7547_s20, 16, %s1507_s11, [#allocation16]  }
 0x134   : > { %p8471_p13 = scmp.ne.s32.totalorder %s8468_s28, 0 }
 0x135   : > { %p8472_p1 = scmp.eq.s32.totalorder (!%p8471_p13), %s7593_s0, 0 }
 0x136   : > { %1545 = sbr.rel (%p8471_p13) target bundleno = 8729 (0x2219), region = 224 }
 0x13d   : > { %7175 = dma.done.wait (%p8472_p1), [#allocation4], 128   ;;  %p8473_p2 = pmov %p8472_p1 }
 0x13e   : > { %p8474_p0 = pmov %p8472_p1 }
 0x13f   : > { %7177 = vsyncadd (%p8473_p2), [#allocation4], 4294967168 }
 0x140   : > { %7179 = dma.done.wait (%p8474_p0), [#allocation7], 256   ;;  %p8475_p3 = pmov %p8474_p0 }
 0x141   : > { %p8476_p4 = pmov %p8474_p0 }
 0x142   : > { %7181 = vsyncadd (%p8475_p3), [#allocation7], 4294967040 }
 0x143   : > { %7183 = dma.done.wait (%p8476_p4), [#allocation10], 144   ;;  %p8477_p12 = pmov %p8474_p0 }
 0x144   : > { %p8478_p5 = pmov %p8474_p0 }
 0x145   : > { %7185 = vsyncadd (%p8477_p12), [#allocation10], 4294967152 }
 0x146   : > { %7187 = dma.done.wait (%p8478_p5), [#allocation13], 528   ;;  %p8479_p6 = pmov %p8474_p0 }
 0x147   : > { %p8480_p9 = pmov %p8474_p0 }
 0x148   : > { %7189 = vsyncadd (%p8479_p6), [#allocation13], 4294966768 }
 0x149   : > { %7191 = dma.done.wait (%p8480_p9), [#allocation16], 16   ;;  %p8481_p10 = pmov %p8474_p0 }
 0x14a   : > { %s8482_s9 = sld [smem:[#allocation28_spill]]  ;;  %p1712_p7 = scmp.lt.s32.totalorder %s7593_s0, 1  ;;  %v1732_v1 = vlaneseq  ;;  %v1765_v6 = vld [vmem:[%s7322_s17] sm:$0xff]  ;;  %v1766_v7 = vld [vmem:[%s7322_s17 + $0x8] sm:$0xff]  ;;  %v1767_v9 = vld [vmem:[%s7322_s17 + $0x10] sm:$0xff]  ;;  %v7281_v15 = vmov 0.0  }
 0x14b   : > { %7193 = vsyncadd (%p8481_p10), [#allocation16], 4294967280  ;;  %v6356_v8 = vpack.c.bf16 %v1766_v7, %v1765_v6  ;;  %v1768_v10 = vld [vmem:[%s7322_s17 + $0x18] sm:$0xff]  ;;  %v1769_v13 = vld [vmem:[%s7322_s17 + $0x20] sm:$0xff]  ;;  %vm1811_vm3 = vcmask 1041408   ;;  %vm1804_vm8 = vcmask 408576  }
 0x14c   : > { %s7757_s22 = scalar_select %p1712_p7, %s7593_s0, 1  ;;  %v7759_v2 = vshrl.u32 %v1732_v1, 7  ;;  %v6360_v11 = vpack.c.bf16 %v1768_v10, %v1767_v9  ;;  %v1770_v14 = vld [vmem:[%s7322_s17 + $0x28] sm:$0xff]  ;;  %v1771_v21 = vld [vmem:[%s7322_s17 + $0x30] sm:$0x3]  ;;  %v1890_v22 = vld [vmem:[%s7327_s21] sm:$0xff] }
 0x14d   : > { %6357 = vmatprep.subr.bf16.mxu1 %v6356_v8  ;;  %v6364_v18 = vpack.c.bf16 %v1770_v14, %v1769_v13  ;;  %v1891_v23 = vld [vmem:[%s7327_s21 + $0x8] sm:$0xff]  ;;  %v1892_v33 = vld [vmem:[%s7327_s21 + $0x10] sm:$0xff]  ;;  %v1893_v34 = vld [vmem:[%s7327_s21 + $0x18] sm:$0xff]  ;;  %vm1896_vm9 = vcmask 392192   ;;  %s8483_s2 = sld [smem:[#allocation34_spill]]  ;;  %s8484_s1 = sld [smem:[#allocation36_spill]] }
 0x14e   : > { %v7766_v3 = vsub.s32 0, %v7759_v2  ;;  %v1734_v4 = vadd.s32 8, %v7759_v2  ;;  %v1735_v12 = vadd.s32 16, %v7759_v2  ;;  %6359 = vmatpush3.bf16.msra.mxu1 %v6356_v8  ;;  %v1736_v19 = vadd.s32 24, %v7759_v2  ;;  %v1894_v37 = vld [vmem:[%s7327_s21 + $0x20] sm:$0xff]  ;;  %v1895_v38 = vld [vmem:[%s7327_s21 + $0x28] sm:$0xff] }
 0x14f   : > { %6361 = vmatprep.subr.bf16.mxu1 %v6360_v11  ;;  %v1737_v24 = vadd.s32 32, %v7759_v2  ;;  %v6368_v25 = vpack.c.bf16 %v1891_v23, %v1890_v22  ;;  %v1738_v27 = vadd.s32 40, %v7759_v2  ;;  %v1739_v29 = vadd.s32 48, %v7759_v2  ;;  %v1978_v40 = vld [vmem:[%s7337_s29] sm:$0xff]  ;;  %v1979_v41 = vld [vmem:[%s7337_s29 + $0x8] sm:$0xff]  ;;  %v2085_v46 = vld [vmem:[%s8456_s8 + $0x10] sm:$0xff] }
 0x150   : > { %s7763_s28 = scalar_lea.vmem %s8482_s9, %s7757_s22  ;;  %v6372_v35 = vpack.c.bf16 %v1893_v34, %v1892_v33  ;;  %v6376_v39 = vpack.c.bf16 %v1895_v38, %v1894_v37  ;;  %v2083_v42 = vld [vmem:[%s8456_s8] sm:$0xff]  ;;  %v6380_v43 = vpack.c.bf16 %v1979_v41, %v1978_v40  ;;  %v2084_v44 = vld [vmem:[%s8456_s8 + $0x8] sm:$0xff]  ;;  %v2086_v47 = vld [vmem:[%s8456_s8 + $0x18] sm:$0xff]  ;;  %vm1989_vm10 = vcmask 261120   ;;  %s8485_s5 = sld [smem:[#allocation31_spill]] }
 0x151   : > { %v6877_v5 = vld [vmem:[%s7763_s28] ss:$0 sm:$0xff]  ;;  %v6388_v45 = vpack.c.bf16 %v2084_v44, %v2083_v42  ;;  %v6392_v48 = vpack.c.bf16 %v2086_v47, %v2085_v46  ;;  %v1980_v49 = vld [vmem:[%s7337_s29 + $0x10] sm:$0xff]  ;;  %v1981_v50 = vld [vmem:[%s7337_s29 + $0x18] sm:$0xff]  ;;  %s8486_s10 = sld [smem:[#allocation33_spill]]  ;;  %s8487_s15 = sld [smem:[#allocation35_spill]] }
 0x152   : > { %vm1744_vm0 = vcmp.eq.s32.totalorder %v7759_v2, %v6877_v5  ;;  %vm1745_vm1 = vcmp.eq.s32.totalorder %v1734_v4, %v6877_v5  ;;  %vm1746_vm2 = vcmp.eq.s32.totalorder %v1735_v12, %v6877_v5  ;;  %6363 = vmatpush3.bf16.msra.mxu1 %v6360_v11  ;;  %vm1747_vm4 = vcmp.eq.s32.totalorder %v1736_v19, %v6877_v5  ;;  %s8488_s23 = sld [smem:[#allocation37_spill]]  ;;  %s8489_s11 = sld [smem:[#allocation30_spill]] }
 0x153   : > { %v5784_v16 = vsel %vm1744_vm0, 1.0, %v7281_v15  ;;  %v5785_v17 = vsel %vm1745_vm1, 1.0, %v7281_v15  ;;  %6365 = vmatprep.subr.bf16.mxu1 %v6364_v18  ;;  %v5786_v20 = vsel %vm1746_vm2, 1.0, %v7281_v15  ;;  %v5787_v26 = vsel %vm1747_vm4, 1.0, %v7281_v15  ;;  %6389 = vmatprep.subr.bf16.mxu0 %v6388_v45  ;;  %v2177_v56 = vld [vmem:[%s8483_s2] sm:$0xff]  ;;  %v2178_v57 = vld [vmem:[%s8483_s2 + $0x8] sm:$0xff] }
 0x154   : > { %1772 = vxpose.xlu0.b32.start [1/7] (short) (narrow) %v5784_v16, 16  ;;  %vm1748_vm5 = vcmp.eq.s32.totalorder %v1737_v24, %v6877_v5  ;;  %vm1749_vm6 = vcmp.eq.s32.totalorder %v1738_v27, %v6877_v5  ;;  %vm1750_vm7 = vcmp.eq.s32.totalorder %v1739_v29, %v6877_v5  ;;  %6391 = vmatpush3.bf16.msra.mxu0 %v6388_v45  ;;  %v2281_v58 = vld [vmem:[%s8484_s1] sm:$0xff]  ;;  %v2282_v60 = vld [vmem:[%s8484_s1 + $0x8] sm:$0xff]  ;;  %v2179_v62 = vld [vmem:[%s8483_s2 + $0x10] sm:$0xff]  ;;  %s8491_s18 = sld [smem:[#allocation40_spill]]  ;;  %s8492_s12 = sld [smem:[#allocation38_spill]] }
 0x155   : > { %v5788_v28 = vsel %vm1748_vm5, 1.0, %v7281_v15  ;;  %v5789_v30 = vsel %vm1749_vm6, 1.0, %v7281_v15  ;;  %v5790_v31 = vsel %vm1750_vm7, 1.0, %v7281_v15  ;;  %6393 = vmatprep.subr.bf16.mxu0 %v6392_v48  ;;  %v6384_v53 = vpack.c.bf16 %v1981_v50, %v1980_v49  ;;  %v2180_v63 = vld [vmem:[%s8483_s2 + $0x18] sm:$0xff]  ;;  %v2283_v0 = vld [vmem:[%s8484_s1 + $0x10] sm:$0xff]  ;;  %s8511_s2 = sld [smem:[#allocation56_spill]] }
 0x156   : > { %6367 = vmatpush3.bf16.msra.mxu1 %v6364_v18  ;;  %v6396_v59 = vpack.c.bf16 %v2178_v57, %v2177_v56  ;;  %v6404_v61 = vpack.c.bf16 %v2282_v60, %v2281_v58  ;;  %v6400_v1 = vpack.c.bf16 %v2180_v63, %v2179_v62  ;;  %v2284_v4 = vld [vmem:[%s8484_s1 + $0x18] sm:$0xff]  ;;  %v5796_v6 = vld [vmem:[%s8485_s5] ss:$0 sm:$0xff]  ;;  %s8493_s5 = sld [smem:[#allocation39_spill]]  ;;  %vm2426_vm11 = vcmask 1042432   ;;  %s8512_s4 = sld [smem:[#allocation57_spill]] }
 0x157   : > { %6063 = vmatprep.subr.msk.mxu1 %vm1811_vm3, %v1771_v21  ;;  %v6408_v5 = vpack.c.bf16 %v2284_v4, %v2283_v0  ;;  %v5804_v33 = vld [vmem:[%s8487_s15] ss:$0 sm:$0xff]  ;;  %vm2454_vm12 = vcmask 1046528   ;;  %vm2474_vm13 = vcmask 1045504   ;;  %vm2494_vm14 = vcmask 1044480   ;;  %s8495_s15 = sld [smem:[#allocation45_spill]] }
 0x158   : > { %1773 = vxpose.xlu0.b32.cont [2/7] (short) (narrow) %v5785_v17, 16  ;;  %6395 = vmatpush3.bf16.msra.mxu0 %v6392_v48  ;;  %s8490_s24 = smov %s8489_s11  ;;  %v5809_v46 = vld [vmem:[%s8488_s23] ss:$0 sm:$0xff]  ;;  %vm2514_vm15 = vcmask 1043456   ;;  %s8496_s23 = sld [smem:[#allocation42_spill]]  ;;  %vm3687_vm0 = vcmask 64512  }
 0x159   : > { %6405 = vmatprep.subr.bf16.mxu0 %v6404_v61  ;;  %v2375_v58 = vld [vmem:[%s8489_s11] sm:$0xff]  ;;  %v2376_v60 = vld [vmem:[%s8490_s24 + $0x8] sm:$0xff]  ;;  %s8497_s11 = sld [smem:[#allocation43_spill]]  ;;  %vm8054_vm1 = vmpackc.low %vm3687_vm0, %vm3687_vm0  ;;  %vm3784_vm5 = vcmask 130048   ;;  %vm4528_vm6 = vcmask 195584   ;;  %vm7294_vm7 = vmmov 0  }
 0x15a   : > { %6064 = vmatpush3.msk.msra.mxu1 %vm1811_vm3, %v1771_v21  ;;  %p8528_p11 = scmp.ne.s32.totalorder %s8465_s26, 0  ;;  %s7297_s6 = smov [#allocation18]  }
 0x15b   : > { %6369 = vmatprep.subr.bf16.mxu1 %v6368_v25  ;;  %s7106_s8 = sshll.u32 %s7297_s6, 4  ;;  %s7107_s8 = int_to_ptr.vmem [resolvable:$false] %s7106_s8 }
 0x15c   : > { %1774 = vxpose.xlu0.b32.cont [3/7] (short) (narrow) %v5786_v20, 16  ;;  %v5801_v20 = vld [vmem:[%s8486_s10] ss:$0 sm:$0xff]  ;;  %s8494_s10 = sld [smem:[#allocation41_spill]]  ;;  %s7108_s9 = scalar_lea.vmem %s7107_s8, 256 }
 0x160   : > { %1775 = vxpose.xlu0.b32.cont [4/7] (short) (narrow) %v5787_v26, 16 }
 0x164   : > { %1776 = vxpose.xlu0.b32.cont [5/7] (short) (narrow) %v5788_v28, 16 }
 0x168   : > { %1777 = vxpose.xlu0.b32.cont [6/7] (short) (narrow) %v5789_v30, 16 }
 0x16c   : > { %1778 = vxpose.xlu0.b32.end [7/7] (short) (narrow) %v5790_v31, 16 }
 0x1d4   : > { %v1788_v32 = vpop.trf.xlu0 }
 0x1d5   : > { %6065 = vmatprep.mubr.msk.f32.mxu1 %vm1804_vm8, %v1788_v32 }
 0x1d8   : > { %v1789_v36 = vpop.trf.xlu0 }
 0x1d9   : > { %6066 = vmatmul.mubr.msk.f32.vlgmr.msra.gmra.mrb[0].mxu1 %vm1804_vm8, %v1789_v36  ;;  %vm4781_vm8 = vcmask 523264  }
 0x1da   : > { %6371 = vmatpush3.bf16.msra.mxu1 %v6368_v25 }
 0x1db   : > { %6373 = vmatprep.subr.bf16.mxu1 %v6372_v35 }
 0x1de   : > { %6375 = vmatpush3.bf16.msra.mxu1 %v6372_v35 }
 0x1df   : > { %6377 = vmatprep.subr.bf16.mxu1 %v6376_v39 }
 0x1e2   : > { %6379 = vmatpush3.bf16.msra.mxu1 %v6376_v39 }
 0x1e3   : > { %6381 = vmatprep.subr.bf16.mxu1 %v6380_v43 }
 0x2ac   : > { %v6067_v51 = vpop.f32.mrb[0].mxu1 }
 0x2ad   : > { %v1881_v52 = vpop.f32.mrb[1].mxu1 }
 0x2ae   : > { %6080 = vmatprep.mubr.msk.f32.mxu1 %vm1896_vm9, %v1881_v52 }
 0x2af   : > { %6081 = vmatmul.mubr.msk.f32.vlgmr.msra.gmra.mrb[2].mxu1 %vm1896_vm9, %v6067_v51  ;;  %vm6530_vm9 = vmpackc.low %vm1989_vm10, %vm1989_vm10 }
 0x2b0   : > { %6383 = vmatpush3.bf16.msra.mxu1 %v6380_v43 }
 0x2b1   : > { %6385 = vmatprep.subr.bf16.mxu1 %v6384_v53 }
 0x2b4   : > { %6387 = vmatpush3.bf16.msra.mxu1 %v6384_v53 }
 0x2b5   : > { %6397 = vmatprep.subr.bf16.mxu1 %v6396_v59 }
 0x382   : > { %v6082_v54 = vpop.f32.mrb[2].mxu1 }
 0x383   : > { %v1969_v55 = vpop.f32.mrb[3].mxu1 }
 0x384   : > { %6091 = vmatprep.mubr.msk.f32.mxu1 %vm1989_vm10, %v1969_v55  ;;  %6102 = vmatprep.mubr.msk.f32.mxu0 %vm1989_vm10, %v1969_v55 }
 0x385   : > { %6092 = vmatmul.mubr.msk.f32.vlgmr.msra.gmra.mrb[4].mxu1 %vm1989_vm10, %v6082_v54  ;;  %6103 = vmatmul.mubr.msk.f32.vlgmr.msra.gmra.mrb[0].mxu0 %vm1989_vm10, %v6082_v54 }
 0x386   : > { %6399 = vmatpush3.bf16.msra.mxu1 %v6396_v59  ;;  %6407 = vmatpush3.bf16.msra.mxu0 %v6404_v61 }
 0x387   : > { %6401 = vmatprep.subr.bf16.mxu1 %v6400_v1  ;;  %6409 = vmatprep.subr.bf16.mxu0 %v6408_v5 }
 0x38a   : > { %6403 = vmatpush3.bf16.msra.mxu1 %v6400_v1  ;;  %6411 = vmatpush3.bf16.msra.mxu0 %v6408_v5 }
 0x458   : > { %v6093_v7 = vpop.f32.mrb[4].mxu1  ;;  %v6104_v8 = vpop.f32.mrb[0].mxu0 }
 0x459   : > { %v2068_v9 = vadd.f32 %v6093_v7, %v5796_v6  ;;  %v2062_v10 = vpop.f32.mrb[5].mxu1  ;;  %v2160_v11 = vpop.f32.mrb[1].mxu0  ;;  %v2166_v21 = vadd.f32 %v6104_v8, %v5801_v20 }
 0x45a   : > { %v2063_v12 = vadd.f32 %v5796_v6, %v2062_v10  ;;  %v2161_v23 = vadd.f32 %v5801_v20, %v2160_v11 }
 0x45b   : > { %v5800_v13 = vmul.f32 -1.442695, %v2068_v9 }
 0x45c   : > { %v5799_v14 = vmul.f32 -1.442695, %v2063_v12 }
 0x45d   : > { %6796 = vpow2.f32 %v5800_v13  ;;  %v2562_v13 = vld [vmem:[%s8491_s18] sm:$0xff] }
 0x45e   : > { %6798 = vpow2.f32 %v5799_v14  ;;  %v2563_v14 = vld [vmem:[%s8491_s18 + $0x8] sm:$0xff] }
 0x467   : > { %v6797_v16 = vpop.eup %6796 }
 0x468   : > { %v6799_v17 = vpop.eup %6798  ;;  %v2078_v18 = vadd.f32 1.0, %v6797_v16  ;;  %v2564_v16 = vld [vmem:[%s8491_s18 + $0x10] sm:$0xff] }
 0x469   : > { %v2077_v19 = vadd.f32 1.0, %v6799_v17  ;;  %v6412_v17 = vpack.c.bf16 %v2563_v14, %v2562_v13 }
 0x46a   : > { %6800 = vrcp.f32 %v2078_v18  ;;  %v2565_v18 = vld [vmem:[%s8491_s18 + $0x18] sm:$0xff] }
 0x46b   : > { %6802 = vrcp.f32 %v2077_v19  ;;  %v6416_v19 = vpack.c.bf16 %v2565_v18, %v2564_v16  ;;  %6413 = vmatprep.subr.bf16.mxu1 %v6412_v17 }
 0x474   : > { %v6801_v22 = vpop.eup %6800 }
 0x475   : > { %v6803_v24 = vpop.eup %6802  ;;  %v2170_v25 = vmul.f32 %v6801_v22, %v2166_v21  ;;  %v2172_v26 = vsub.f32 1.0, %v6801_v22 }
 0x476   : > { %v2169_v27 = vmul.f32 %v6803_v24, %v2161_v23  ;;  %v2171_v28 = vsub.f32 1.0, %v6803_v24 }
 0x477   : > { %v2174_v29 = vmul.f32 %v6082_v54, %v2172_v26 }
 0x478   : > { %v2173_v30 = vmul.f32 %v2171_v28, %v1969_v55 }
 0x479   : > { %v2176_v31 = vadd.f32 %v2174_v29, %v2170_v25  ;;  %v5813_v29 = vld [vmem:[%s8493_s5] ss:$0 sm:$0xff]  ;;  %s8499_s5 = sld [smem:[#allocation49_spill]] }
 0x47a   : > { %v2175_v32 = vadd.f32 %v2173_v30, %v2169_v27  ;;  %v5812_v27 = vld [vmem:[%s8492_s12] ss:$0 sm:$0xff]  ;;  %s8498_s12 = sld [smem:[#allocation46_spill]] }
 0x47c   : > { %6113 = vmatprep.mubr.msk.f32.mxu1 %vm1989_vm10, %v2175_v32  ;;  %6124 = vmatprep.mubr.msk.f32.mxu0 %vm1989_vm10, %v2175_v32 }
 0x47d   : > { %6114 = vmatmul.mubr.msk.f32.vlgmr.msra.gmra.mrb[6].mxu1 %vm1989_vm10, %v2176_v31  ;;  %6125 = vmatmul.mubr.msk.f32.vlgmr.msra.gmra.mrb[2].mxu0 %vm1989_vm10, %v2176_v31 }
 0x47e   : > { %6415 = vmatpush3.bf16.msra.mxu1 %v6412_v17 }
 0x47f   : > { %6417 = vmatprep.subr.bf16.mxu1 %v6416_v19 }
 0x482   : > { %6419 = vmatpush3.bf16.msra.mxu1 %v6416_v19 }
 0x550   : > { %v6115_v34 = vpop.f32.mrb[6].mxu1  ;;  %v6126_v35 = vpop.f32.mrb[2].mxu0 }
 0x551   : > { %v2266_v36 = vadd.f32 %v6115_v34, %v5804_v33  ;;  %v2260_v37 = vpop.f32.mrb[7].mxu1  ;;  %v2358_v38 = vpop.f32.mrb[3].mxu0  ;;  %v2364_v47 = vadd.f32 %v6126_v35, %v5809_v46  ;;  %v7850_v34 = vsub.s32 2, %v7759_v2 }
 0x552   : > { %v2261_v39 = vadd.f32 %v5804_v33, %v2260_v37  ;;  %v2359_v49 = vadd.f32 %v5809_v46, %v2358_v38  ;;  %v2435_v33 = vld [vmem:[#allocation3] sm:$0x7f]  ;;  %v7853_v37 = vsub.s32 3, %v7759_v2  ;;  %v7856_v38 = vsub.s32 4, %v7759_v2 }
 0x553   : > { %v5808_v40 = vmul.f32 -1.442695, %v2266_v36 }
 0x554   : > { %v5807_v41 = vmul.f32 -1.442695, %v2261_v39  ;;  %v7859_v39 = vsub.s32 5, %v7759_v2 }
 0x555   : > { %6804 = vpow2.f32 %v5808_v40 }
 0x556   : > { %6806 = vpow2.f32 %v5807_v41 }
 0x55f   : > { %v6805_v42 = vpop.eup %6804 }
 0x560   : > { %v6807_v43 = vpop.eup %6806  ;;  %v2276_v44 = vadd.f32 1.0, %v6805_v42 }
 0x561   : > { %v2275_v45 = vadd.f32 1.0, %v6807_v43  ;;  %v7863_v43 = vsub.s32 6, %v7759_v2 }
 0x562   : > { %6808 = vrcp.f32 %v2276_v44  ;;  %v2439_v44 = vrot.slane %v2435_v33, %v7766_v3 }
 0x563   : > { %6810 = vrcp.f32 %v2275_v45  ;;  %v2467_v45 = vrot.slane %v2435_v33, %v7850_v34 }
 0x56c   : > { %v6809_v48 = vpop.eup %6808 }
 0x56d   : > { %v6811_v50 = vpop.eup %6810  ;;  %v2368_v51 = vmul.f32 %v6809_v48, %v2364_v47  ;;  %v2370_v52 = vsub.f32 1.0, %v6809_v48  ;;  %v2487_v48 = vrot.slane %v2435_v33, %v7853_v37 }
 0x56e   : > { %v2367_v53 = vmul.f32 %v6811_v50, %v2359_v49  ;;  %v2369_v54 = vsub.f32 1.0, %v6811_v50  ;;  %v2507_v49 = vrot.slane %v2435_v33, %v7856_v38  ;;  %v2527_v50 = vrot.slane %v2435_v33, %v7859_v39 }
 0x56f   : > { %v2372_v55 = vmul.f32 %v2370_v52, %v2176_v31  ;;  %v7847_v31 = vsub.s32 1, %v7759_v2 }
 0x570   : > { %v2371_v56 = vmul.f32 %v2369_v54, %v2175_v32 }
 0x571   : > { %v2374_v57 = vadd.f32 %v2372_v55, %v2368_v51  ;;  %v2447_v42 = vrot.slane %v2435_v33, %v7847_v31 }
 0x572   : > { %v2373_v59 = vadd.f32 %v2371_v56, %v2367_v53  ;;  %v2546_v53 = vrot.slane %v2435_v33, %v7863_v43 }
 0x573   : > { %v7832_v63 = vadd.f32 %v2376_v60, %v2374_v57 }
 0x574   : > { %v7828_v61 = vadd.f32 %v2375_v58, %v2373_v59 }
 0x575   : > { %v2384_v0 = vsel %vm1989_vm10, %v7832_v63, 0.0 }
 0x576   : > { %v2381_v62 = vsel %vm1989_vm10, %v7828_v61, 0.0 }
 0x577   : > { %2382 = vadd.xlane.f32.xlu1 %v2381_v62 }
 0x57b   : > { %2385 = vadd.xlane.f32.xlu1 %v2384_v0 }
 0x604   : > { %v2383_v1 = vpop.xlane.xlu1 %2382 }
 0x605   : > { %v2388_v4 = vmul.f32 0.03125, %v2383_v1 }
 0x607   : > { %v2390_v5 = vsub.f32 %v7828_v61, %v2388_v4 }
 0x608   : > { %v2386_v6 = vpop.xlane.xlu1 %2385 }
 0x609   : > { %v2389_v7 = vmul.f32 0.03125, %v2386_v6  ;;  %v2392_v8 = vmul.f32 %v2390_v5, %v2390_v5 }
 0x60b   : > { %v2391_v9 = vsub.f32 %v7832_v63, %v2389_v7  ;;  %v2394_v10 = vsel %vm1989_vm10, %v2392_v8, 0.0 }
 0x60c   : > { %2395 = vadd.xlane.f32.xlu1 %v2394_v10 }
 0x60d   : > { %v2393_v11 = vmul.f32 %v2391_v9, %v2391_v9 }
 0x60f   : > { %v2397_v12 = vsel %vm1989_vm10, %v2393_v11, 0.0 }
 0x610   : > { %2398 = vadd.xlane.f32.xlu1 %v2397_v12 }
 0x699   : > { %v2396_v20 = vpop.xlane.xlu1 %2395 }
 0x69a   : > { %v2400_v21 = vmul.f32 0.03125, %v2396_v20 }
 0x69c   : > { %v2402_v22 = vadd.f32 1e-05, %v2400_v21 }
 0x69d   : > { %v2399_v23 = vpop.xlane.xlu1 %2398 }
 0x69e   : > { %6812 = vrsqrt.f32 %v2402_v22  ;;  %v2401_v24 = vmul.f32 0.03125, %v2399_v23 }
 0x6a0   : > { %v2403_v25 = vadd.f32 1e-05, %v2401_v24 }
 0x6a2   : > { %6814 = vrsqrt.f32 %v2403_v25 }
 0x6a8   : > { %v6813_v26 = vpop.eup %6812 }
 0x6a9   : > { %v2406_v28 = vmul.f32 %v6813_v26, %v2390_v5 }
 0x6ab   : > { %v2414_v30 = vmul.f32 %v5812_v27, %v2406_v28 }
 0x6ac   : > { %v6815_v32 = vpop.eup %6814 }
 0x6ad   : > { %v2422_v35 = vadd.f32 %v5813_v29, %v2414_v30  ;;  %v2407_v36 = vmul.f32 %v6815_v32, %v2391_v9 }
 0x6af   : > { %v2427_v40 = vrot.slane %v2422_v35, 5  ;;  %v2415_v41 = vmul.f32 %v5812_v27, %v2407_v36 }
 0x6b1   : > { %v2433_v46 = vsel %vm2426_vm11, 0.0, %v2427_v40  ;;  %v2423_v47 = vadd.f32 %v5813_v29, %v2415_v41 }
 0x6b2   : > { %v2448_v52 = vmul.f32 %v2447_v42, %v2433_v46  ;;  %v2440_v2 = vmul.f32 %v2439_v44, %v2433_v46  ;;  %v2468_v54 = vmul.f32 %v2467_v45, %v2433_v46  ;;  %v2488_v57 = vmul.f32 %v2487_v48, %v2433_v46 }
 0x6b3   : > { %v2428_v51 = vrot.slane %v2423_v47, 5  ;;  %v2508_v58 = vmul.f32 %v2507_v49, %v2433_v46  ;;  %v2528_v0 = vmul.f32 %v2527_v50, %v2433_v46  ;;  %v2547_v6 = vmul.f32 %v2546_v53, %v2433_v46 }
 0x6b4   : > { %v2455_v1 = vrot.slane %v2448_v52, 1  ;;  %v2475_v8 = vrot.slane %v2468_v54, 2  ;;  %v2495_v11 = vrot.slane %v2488_v57, 3 }
 0x6b5   : > { %v2429_v55 = vsel %vm2426_vm11, %v2427_v40, %v2428_v51  ;;  %v2434_v56 = vsel %vm2426_vm11, %v2428_v51, 0.0  ;;  %v2515_v13 = vrot.slane %v2508_v58, 4 }
 0x6b6   : > { %v2449_v59 = vmul.f32 %v2447_v42, %v2429_v55  ;;  %v2469_v60 = vmul.f32 %v2467_v45, %v2429_v55  ;;  %v2489_v62 = vmul.f32 %v2487_v48, %v2429_v55  ;;  %v2509_v4 = vmul.f32 %v2507_v49, %v2429_v55 }
 0x6b7   : > { %v2529_v5 = vmul.f32 %v2527_v50, %v2429_v55  ;;  %v2450_v10 = vmul.f32 %v2447_v42, %v2434_v56  ;;  %v2470_v14 = vmul.f32 %v2467_v45, %v2434_v56  ;;  %v2441_v16 = vmul.f32 %v2439_v44, %v2429_v55 }
 0x6b8   : > { %v2456_v7 = vrot.slane %v2449_v59, 1  ;;  %v2476_v9 = vrot.slane %v2469_v60, 2  ;;  %v2496_v12 = vrot.slane %v2489_v62, 3  ;;  %v2548_v18 = vmul.f32 %v2546_v53, %v2429_v55 }
 0x6b9   : > { %v2458_v19 = vrot.slane %v2450_v10, 1  ;;  %v2516_v22 = vrot.slane %v2509_v4, 4  ;;  %v2535_v23 = vrot.slane %v2529_v5, 5  ;;  %v2478_v25 = vrot.slane %v2470_v14, 2 }
 0x6ba   : > { %v2457_v17 = vsel %vm2454_vm12, %v2455_v1, %v2456_v7  ;;  %v2477_v21 = vsel %vm2474_vm13, %v2475_v8, %v2476_v9  ;;  %v2490_v26 = vmul.f32 %v2487_v48, %v2434_v56  ;;  %v2510_v27 = vmul.f32 %v2507_v49, %v2434_v56 }
 0x6bb   : > { %v2462_v20 = vadd.f32 %v2457_v17, %v2440_v2  ;;  %v2459_v24 = vsel %vm2454_vm12, %v2456_v7, %v2458_v19  ;;  %v2497_v29 = vsel %vm2494_vm14, %v2495_v11, %v2496_v12  ;;  %v2530_v32 = vmul.f32 %v2527_v50, %v2434_v56 }
 0x6bc   : > { %v2463_v30 = vadd.f32 %v2459_v24, %v2441_v16  ;;  %v2479_v33 = vsel %vm2474_vm13, %v2476_v9, %v2478_v25  ;;  %v2498_v35 = vrot.slane %v2490_v26, 3  ;;  %v2518_v36 = vrot.slane %v2510_v27, 4  ;;  %v2837_v24 = vld [vmem:[%s8495_s15 + $0x10] sm:$0xff]  ;;  %v2838_v26 = vld [vmem:[%s8495_s15 + $0x18] sm:$0xff] }
 0x6bd   : > { %v2482_v28 = vadd.f32 %v2477_v21, %v2462_v20  ;;  %v2549_v40 = vmul.f32 %v2546_v53, %v2434_v56  ;;  %v2534_v42 = vrot.slane %v2528_v0, 5  ;;  %v2517_v45 = vsel %vm2514_vm15, %v2515_v13, %v2516_v22  ;;  %v5814_v0 = vld [vmem:[%s8494_s10] ss:$0 sm:$0xff]  ;;  %s8500_s10 = sld [smem:[#allocation47_spill]] }
 0x6be   : > { %v2483_v44 = vadd.f32 %v2479_v33, %v2463_v30  ;;  %v2554_v46 = vrot.slane %v2548_v18, 6  ;;  %v2499_v47 = vsel %vm2494_vm14, %v2496_v12, %v2498_v35  ;;  %v2537_v48 = vrot.slane %v2530_v32, 5 }
 0x6bf   : > { %v2502_v41 = vadd.f32 %v2497_v29, %v2482_v28  ;;  %v2536_v52 = vsel %vm2426_vm11, %v2534_v42, %v2535_v23  ;;  %v2553_v50 = vrot.slane %v2547_v6, 6  ;;  %v2519_v2 = vsel %vm2514_vm15, %v2516_v22, %v2518_v36  ;;  %v2835_v22 = vld [vmem:[%s8495_s15] sm:$0xff] }
 0x6c0   : > { %v2503_v51 = vadd.f32 %v2499_v47, %v2483_v44  ;;  %v2556_v54 = vrot.slane %v2549_v40, 6  ;;  %v2538_v57 = vsel %vm2426_vm11, %v2535_v23, %v2537_v48  ;;  %v2836_v23 = vld [vmem:[%s8495_s15 + $0x8] sm:$0xff]  ;;  %v6424_v27 = vpack.c.bf16 %v2838_v26, %v2837_v24  ;;  %v5817_v40 = vld [vmem:[%s8496_s23] ss:$0 sm:$0xff]  ;;  %s8501_s23 = sld [smem:[#allocation48_spill]] }
 0x6c1   : > { %v2522_v49 = vadd.f32 %v2517_v45, %v2502_v41  ;;  %v2555_v56 = vsel %vm1811_vm3, %v2553_v50, %v2554_v46  ;;  %v6420_v25 = vpack.c.bf16 %v2836_v23, %v2835_v22  ;;  %v5818_v42 = vld [vmem:[%s8497_s11] ss:$0 sm:$0xff]  ;;  %s8502_s11 = sld [smem:[#allocation50_spill]] }
 0x6c2   : > { %v2523_v53 = vadd.f32 %v2519_v2, %v2503_v51  ;;  %v2557_v60 = vsel %vm1811_vm3, %v2554_v46, %v2556_v54  ;;  %v2712_v46 = vld [vmem:[#allocation6] sm:$0x7f] }
 0x6c3   : > { %v2541_v55 = vadd.f32 %v2536_v52, %v2522_v49  ;;  %6421 = vmatprep.subr.bf16.mxu0 %v6420_v25  ;;  %v2724_v52 = vrot.slane %v2712_v46, %v7847_v31  ;;  %v2716_v50 = vrot.slane %v2712_v46, %v7766_v3  ;;  %v2743_v2 = vrot.slane %v2712_v46, %v7850_v34 }
 0x6c4   : > { %v2542_v59 = vadd.f32 %v2538_v57, %v2523_v53  ;;  %6423 = vmatpush3.bf16.msra.mxu0 %v6420_v25  ;;  %v2762_v53 = vrot.slane %v2712_v46, %v7853_v37  ;;  %v2800_v57 = vrot.slane %v2712_v46, %v7859_v39 }
 0x6c5   : > { %v2560_v58 = vadd.f32 %v2555_v56, %v2541_v55  ;;  %6425 = vmatprep.subr.bf16.mxu0 %v6424_v27  ;;  %v2781_v56 = vrot.slane %v2712_v46, %v7856_v38 }
 0x6c6   : > { %v2561_v62 = vadd.f32 %v2557_v60, %v2542_v59  ;;  %v2819_v60 = vrot.slane %v2712_v46, %v7863_v43 }
 0x6c7   : > { %6135 = vmatprep.mubr.msk.f32.mxu1 %vm1989_vm10, %v2560_v58 }
 0x6c8   : > { %6136 = vmatmul.mubr.msk.f32.vlgmr.msra.gmra.mrb[8].mxu1 %vm1989_vm10, %v2561_v62  ;;  %6427 = vmatpush3.bf16.msra.mxu0 %v6424_v27 }
 0x79b   : > { %v6137_v1 = vpop.f32.mrb[8].mxu1 }
 0x79c   : > { %v2651_v4 = vadd.f32 %v6137_v1, %v5814_v0  ;;  %v2645_v5 = vpop.f32.mrb[9].mxu1 }
 0x79d   : > { %v2646_v6 = vadd.f32 %v5814_v0, %v2645_v5 }
 0x79e   : > { %v2655_v7 = vmax.f32 %v2651_v4, 0.0 }
 0x79f   : > { %v2654_v8 = vmax.f32 %v2646_v6, 0.0 }
 0x7a0   : > { %v7893_v10 = vadd.f32 %v2655_v7, %v7832_v63 }
 0x7a1   : > { %v7890_v9 = vadd.f32 %v2654_v8, %v7828_v61 }
 0x7a2   : > { %v2663_v12 = vsel %vm1989_vm10, %v7893_v10, 0.0 }
 0x7a3   : > { %v2660_v11 = vsel %vm1989_vm10, %v7890_v9, 0.0 }
 0x7a4   : > { %2661 = vadd.xlane.f32.xlu1 %v2660_v11 }
 0x7a8   : > { %2664 = vadd.xlane.f32.xlu1 %v2663_v12 }
 0x831   : > { %v2662_v13 = vpop.xlane.xlu1 %2661 }
 0x832   : > { %v2666_v14 = vmul.f32 0.03125, %v2662_v13 }
 0x834   : > { %v2668_v61 = vsub.f32 %v7890_v9, %v2666_v14 }
 0x835   : > { %v2665_v16 = vpop.xlane.xlu1 %2664 }
 0x836   : > { %v2667_v17 = vmul.f32 0.03125, %v2665_v16  ;;  %v2670_v63 = vmul.f32 %v2668_v61, %v2668_v61 }
 0x838   : > { %v2669_v18 = vsub.f32 %v7893_v10, %v2667_v17  ;;  %v2672_v19 = vsel %vm1989_vm10, %v2670_v63, 0.0 }
 0x839   : > { %2673 = vadd.xlane.f32.xlu1 %v2672_v19 }
 0x83a   : > { %v2671_v20 = vmul.f32 %v2669_v18, %v2669_v18 }
 0x83c   : > { %v2675_v21 = vsel %vm1989_vm10, %v2671_v20, 0.0 }
 0x83d   : > { %2676 = vadd.xlane.f32.xlu0 %v2675_v21 }
 0x8c6   : > { %v2674_v28 = vpop.xlane.xlu1 %2673 }
 0x8c7   : > { %v2678_v29 = vmul.f32 0.03125, %v2674_v28 }
 0x8c9   : > { %v2680_v30 = vadd.f32 1e-05, %v2678_v29 }
 0x8ca   : > { %v2677_v32 = vpop.xlane.xlu0 %2676 }
 0x8cb   : > { %6816 = vrsqrt.f32 %v2680_v30  ;;  %v2679_v33 = vmul.f32 0.03125, %v2677_v32 }
 0x8cd   : > { %v2681_v35 = vadd.f32 1e-05, %v2679_v33 }
 0x8cf   : > { %6818 = vrsqrt.f32 %v2681_v35 }
 0x8d5   : > { %v6817_v36 = vpop.eup %6816 }
 0x8d6   : > { %v2684_v41 = vmul.f32 %v6817_v36, %v2668_v61 }
 0x8d8   : > { %v2692_v44 = vmul.f32 %v5817_v40, %v2684_v41 }
 0x8d9   : > { %v6819_v45 = vpop.eup %6818 }
 0x8da   : > { %v2700_v47 = vadd.f32 %v5818_v42, %v2692_v44  ;;  %v2685_v48 = vmul.f32 %v6819_v45, %v2669_v18 }
 0x8dc   : > { %v2704_v49 = vrot.slane %v2700_v47, 5  ;;  %v2693_v51 = vmul.f32 %v5817_v40, %v2685_v48 }
 0x8de   : > { %v2710_v54 = vsel %vm2426_vm11, 0.0, %v2704_v49  ;;  %v2701_v55 = vadd.f32 %v5818_v42, %v2693_v51 }
 0x8df   : > { %v2725_v59 = vmul.f32 %v2724_v52, %v2710_v54  ;;  %v2717_v62 = vmul.f32 %v2716_v50, %v2710_v54  ;;  %v2744_v0 = vmul.f32 %v2743_v2, %v2710_v54  ;;  %v2763_v5 = vmul.f32 %v2762_v53, %v2710_v54 }
 0x8e0   : > { %v2705_v58 = vrot.slane %v2701_v55, 5  ;;  %v2782_v6 = vmul.f32 %v2781_v56, %v2710_v54  ;;  %v2801_v12 = vmul.f32 %v2800_v57, %v2710_v54  ;;  %v2820_v16 = vmul.f32 %v2819_v60, %v2710_v54 }
 0x8e1   : > { %v2731_v13 = vrot.slane %v2725_v59, 1  ;;  %v2750_v63 = vrot.slane %v2744_v0, 2  ;;  %v2769_v20 = vrot.slane %v2763_v5, 3 }
 0x8e2   : > { %v2706_v1 = vsel %vm2426_vm11, %v2704_v49, %v2705_v58  ;;  %v2711_v4 = vsel %vm2426_vm11, %v2705_v58, 0.0  ;;  %v2788_v22 = vrot.slane %v2782_v6, 4 }
 0x8e3   : > { %v2726_v7 = vmul.f32 %v2724_v52, %v2706_v1  ;;  %v2745_v8 = vmul.f32 %v2743_v2, %v2706_v1  ;;  %v2764_v11 = vmul.f32 %v2762_v53, %v2706_v1  ;;  %v2783_v14 = vmul.f32 %v2781_v56, %v2706_v1 }
 0x8e4   : > { %v2802_v61 = vmul.f32 %v2800_v57, %v2706_v1  ;;  %v2727_v19 = vmul.f32 %v2724_v52, %v2711_v4  ;;  %v2746_v23 = vmul.f32 %v2743_v2, %v2711_v4  ;;  %v2718_v24 = vmul.f32 %v2716_v50, %v2706_v1 }
 0x8e5   : > { %v2732_v17 = vrot.slane %v2726_v7, 1  ;;  %v2751_v18 = vrot.slane %v2745_v8, 2  ;;  %v2770_v21 = vrot.slane %v2764_v11, 3  ;;  %v2821_v26 = vmul.f32 %v2819_v60, %v2706_v1 }
 0x8e6   : > { %v2734_v27 = vrot.slane %v2727_v19, 1  ;;  %v2789_v30 = vrot.slane %v2783_v14, 4  ;;  %v2808_v32 = vrot.slane %v2802_v61, 5  ;;  %v2753_v35 = vrot.slane %v2746_v23, 2 }
 0x8e7   : > { %v2733_v25 = vsel %vm2454_vm12, %v2731_v13, %v2732_v17  ;;  %v2752_v29 = vsel %vm2474_vm13, %v2750_v63, %v2751_v18  ;;  %v2765_v36 = vmul.f32 %v2762_v53, %v2711_v4  ;;  %v2784_v40 = vmul.f32 %v2781_v56, %v2711_v4 }
 0x8e8   : > { %v2738_v28 = vadd.f32 %v2733_v25, %v2717_v62  ;;  %v2735_v33 = vsel %vm2454_vm12, %v2732_v17, %v2734_v27  ;;  %v2771_v42 = vsel %vm2494_vm14, %v2769_v20, %v2770_v21  ;;  %v2803_v45 = vmul.f32 %v2800_v57, %v2711_v4 }
 0x8e9   : > { %v2739_v44 = vadd.f32 %v2735_v33, %v2718_v24  ;;  %v2754_v46 = vsel %vm2474_vm13, %v2751_v18, %v2753_v35  ;;  %v2772_v47 = vrot.slane %v2765_v36, 3  ;;  %v2791_v48 = vrot.slane %v2784_v40, 4  ;;  %v3110_v33 = vld [vmem:[%s8499_s5 + $0x10] sm:$0xff]  ;;  %v3111_v36 = vld [vmem:[%s8499_s5 + $0x18] sm:$0xff] }
 0x8ea   : > { %v2757_v41 = vadd.f32 %v2752_v29, %v2738_v28  ;;  %v2822_v49 = vmul.f32 %v2819_v60, %v2711_v4  ;;  %v2807_v52 = vrot.slane %v2801_v12, 5  ;;  %v2790_v2 = vsel %vm2514_vm15, %v2788_v22, %v2789_v30  ;;  %v5819_v12 = vld [vmem:[%s8498_s12] ss:$0 sm:$0xff]  ;;  %s8503_s12 = sld [smem:[#allocation54_spill]] }
 0x8eb   : > { %v2758_v50 = vadd.f32 %v2754_v46, %v2739_v44  ;;  %v2827_v54 = vrot.slane %v2821_v26, 6  ;;  %v2773_v55 = vsel %vm2494_vm14, %v2770_v21, %v2772_v47  ;;  %v2810_v53 = vrot.slane %v2803_v45, 5 }
 0x8ec   : > { %v2776_v51 = vadd.f32 %v2771_v42, %v2757_v41  ;;  %v2809_v59 = vsel %vm2426_vm11, %v2807_v52, %v2808_v32  ;;  %v2826_v57 = vrot.slane %v2820_v16, 6  ;;  %v2792_v62 = vsel %vm2514_vm15, %v2789_v30, %v2791_v48  ;;  %v3108_v30 = vld [vmem:[%s8499_s5] sm:$0xff] }
 0x8ed   : > { %v2777_v58 = vadd.f32 %v2773_v55, %v2758_v50  ;;  %v2829_v0 = vrot.slane %v2822_v49, 6  ;;  %v2811_v5 = vsel %vm2426_vm11, %v2808_v32, %v2810_v53  ;;  %v3109_v32 = vld [vmem:[%s8499_s5 + $0x8] sm:$0xff]  ;;  %v6432_v40 = vpack.c.bf16 %v3111_v36, %v3110_v33  ;;  %v5822_v49 = vld [vmem:[%s8500_s10] ss:$0 sm:$0xff]  ;;  %s8504_s10 = sld [smem:[#allocation51_spill]] }
 0x8ee   : > { %v2795_v56 = vadd.f32 %v2790_v2, %v2776_v51  ;;  %v2828_v4 = vsel %vm1811_vm3, %v2826_v57, %v2827_v54  ;;  %v6428_v35 = vpack.c.bf16 %v3109_v32, %v3108_v30  ;;  %v5823_v52 = vld [vmem:[%s8501_s23] ss:$0 sm:$0xff]  ;;  %s8505_s23 = sld [smem:[#allocation52_spill]] }
 0x8ef   : > { %v2796_v60 = vadd.f32 %v2792_v62, %v2777_v58  ;;  %v2830_v8 = vsel %vm1811_vm3, %v2827_v54, %v2829_v0  ;;  %v2985_v54 = vld [vmem:[#allocation8] sm:$0x7f] }
 0x8f0   : > { %v2814_v1 = vadd.f32 %v2809_v59, %v2795_v56  ;;  %6429 = vmatprep.subr.bf16.mxu1 %v6428_v35  ;;  %v2997_v59 = vrot.slane %v2985_v54, %v7847_v31  ;;  %v2989_v57 = vrot.slane %v2985_v54, %v7766_v3  ;;  %v3016_v62 = vrot.slane %v2985_v54, %v7850_v34 }
 0x8f1   : > { %v2815_v7 = vadd.f32 %v2811_v5, %v2796_v60  ;;  %6431 = vmatpush3.bf16.msra.mxu1 %v6428_v35  ;;  %v3035_v60 = vrot.slane %v2985_v54, %v7853_v37  ;;  %v3073_v5 = vrot.slane %v2985_v54, %v7859_v39 }
 0x8f2   : > { %v2833_v6 = vadd.f32 %v2828_v4, %v2814_v1  ;;  %6433 = vmatprep.subr.bf16.mxu1 %v6432_v40  ;;  %v3054_v4 = vrot.slane %v2985_v54, %v7856_v38 }
 0x8f3   : > { %v2834_v11 = vadd.f32 %v2830_v8, %v2815_v7  ;;  %v3092_v8 = vrot.slane %v2985_v54, %v7863_v43 }
 0x8f4   : > { %6146 = vmatprep.mubr.msk.f32.mxu0 %vm1989_vm10, %v2833_v6 }
 0x8f5   : > { %6147 = vmatmul.mubr.msk.f32.vlgmr.msra.gmra.mrb[4].mxu0 %vm1989_vm10, %v2834_v11  ;;  %6435 = vmatpush3.bf16.msra.mxu1 %v6432_v40 }
 0x9c8   : > { %v6148_v13 = vpop.f32.mrb[4].mxu0 }
 0x9c9   : > { %v2924_v14 = vadd.f32 %v6148_v13, %v5819_v12  ;;  %v2918_v61 = vpop.f32.mrb[5].mxu0 }
 0x9ca   : > { %v2919_v16 = vadd.f32 %v5819_v12, %v2918_v61 }
 0x9cb   : > { %v2928_v17 = vmax.f32 %v2924_v14, 0.0 }
 0x9cc   : > { %v2927_v63 = vmax.f32 %v2919_v16, 0.0 }
 0x9cd   : > { %v7938_v19 = vadd.f32 %v2928_v17, %v7893_v10 }
 0x9ce   : > { %v7935_v18 = vadd.f32 %v2927_v63, %v7890_v9 }
 0x9cf   : > { %v2936_v21 = vsel %vm1989_vm10, %v7938_v19, 0.0 }
 0x9d0   : > { %v2933_v20 = vsel %vm1989_vm10, %v7935_v18, 0.0 }
 0x9d1   : > { %2934 = vadd.xlane.f32.xlu1 %v2933_v20 }
 0x9d5   : > { %2937 = vadd.xlane.f32.xlu1 %v2936_v21 }
 0xa5e   : > { %v2935_v22 = vpop.xlane.xlu1 %2934 }
 0xa5f   : > { %v2939_v23 = vmul.f32 0.03125, %v2935_v22 }
 0xa61   : > { %v2941_v9 = vsub.f32 %v7935_v18, %v2939_v23 }
 0xa62   : > { %v2938_v24 = vpop.xlane.xlu1 %2937 }
 0xa63   : > { %v2940_v25 = vmul.f32 0.03125, %v2938_v24  ;;  %v2943_v10 = vmul.f32 %v2941_v9, %v2941_v9 }
 0xa65   : > { %v2942_v26 = vsub.f32 %v7938_v19, %v2940_v25  ;;  %v2945_v27 = vsel %vm1989_vm10, %v2943_v10, 0.0 }
 0xa66   : > { %2946 = vadd.xlane.f32.xlu1 %v2945_v27 }
 0xa67   : > { %v2944_v28 = vmul.f32 %v2942_v26, %v2942_v26 }
 0xa69   : > { %v2948_v29 = vsel %vm1989_vm10, %v2944_v28, 0.0 }
 0xa6a   : > { %2949 = vadd.xlane.f32.xlu1 %v2948_v29 }
 0xaf3   : > { %v2947_v41 = vpop.xlane.xlu1 %2946 }
 0xaf4   : > { %v2951_v42 = vmul.f32 0.03125, %v2947_v41 }
 0xaf6   : > { %v2953_v44 = vadd.f32 1e-05, %v2951_v42 }
 0xaf7   : > { %v2950_v45 = vpop.xlane.xlu1 %2949 }
 0xaf8   : > { %6820 = vrsqrt.f32 %v2953_v44  ;;  %v2952_v46 = vmul.f32 0.03125, %v2950_v45 }
 0xafa   : > { %v2954_v47 = vadd.f32 1e-05, %v2952_v46 }
 0xafc   : > { %6822 = vrsqrt.f32 %v2954_v47 }
 0xb02   : > { %v6821_v48 = vpop.eup %6820 }
 0xb03   : > { %v2957_v51 = vmul.f32 %v6821_v48, %v2941_v9 }
 0xb05   : > { %v2965_v50 = vmul.f32 %v5822_v49, %v2957_v51 }
 0xb06   : > { %v6823_v2 = vpop.eup %6822 }
 0xb07   : > { %v2973_v55 = vadd.f32 %v5823_v52, %v2965_v50  ;;  %v2958_v53 = vmul.f32 %v6823_v2, %v2942_v26 }
 0xb09   : > { %v2977_v56 = vrot.slane %v2973_v55, 5  ;;  %v2966_v58 = vmul.f32 %v5822_v49, %v2958_v53 }
 0xb0b   : > { %v2983_v0 = vsel %vm2426_vm11, 0.0, %v2977_v56  ;;  %v2974_v1 = vadd.f32 %v5823_v52, %v2966_v58 }
 0xb0c   : > { %v2998_v7 = vmul.f32 %v2997_v59, %v2983_v0  ;;  %v2990_v11 = vmul.f32 %v2989_v57, %v2983_v0  ;;  %v3017_v12 = vmul.f32 %v3016_v62, %v2983_v0  ;;  %v3036_v61 = vmul.f32 %v3035_v60, %v2983_v0 }
 0xb0d   : > { %v2978_v6 = vrot.slane %v2974_v1, 5  ;;  %v3055_v16 = vmul.f32 %v3054_v4, %v2983_v0  ;;  %v3074_v21 = vmul.f32 %v3073_v5, %v2983_v0  ;;  %v3093_v24 = vmul.f32 %v3092_v8, %v2983_v0 }
 0xb0e   : > { %v3004_v22 = vrot.slane %v2998_v7, 1  ;;  %v3023_v10 = vrot.slane %v3017_v12, 2  ;;  %v3042_v28 = vrot.slane %v3036_v61, 3 }
 0xb0f   : > { %v2979_v13 = vsel %vm2426_vm11, %v2977_v56, %v2978_v6  ;;  %v2984_v14 = vsel %vm2426_vm11, %v2978_v6, 0.0  ;;  %v3061_v30 = vrot.slane %v3055_v16, 4 }
 0xb10   : > { %v2999_v17 = vmul.f32 %v2997_v59, %v2979_v13  ;;  %v3018_v63 = vmul.f32 %v3016_v62, %v2979_v13  ;;  %v3037_v20 = vmul.f32 %v3035_v60, %v2979_v13  ;;  %v3056_v23 = vmul.f32 %v3054_v4, %v2979_v13 }
 0xb11   : > { %v3075_v9 = vmul.f32 %v3073_v5, %v2979_v13  ;;  %v3000_v27 = vmul.f32 %v2997_v59, %v2984_v14  ;;  %v3019_v32 = vmul.f32 %v3016_v62, %v2984_v14  ;;  %v2991_v33 = vmul.f32 %v2989_v57, %v2979_v13 }
 0xb12   : > { %v3005_v25 = vrot.slane %v2999_v17, 1  ;;  %v3024_v26 = vrot.slane %v3018_v63, 2  ;;  %v3043_v29 = vrot.slane %v3037_v20, 3  ;;  %v3094_v36 = vmul.f32 %v3092_v8, %v2979_v13 }
 0xb13   : > { %v3007_v40 = vrot.slane %v3000_v27, 1  ;;  %v3062_v44 = vrot.slane %v3056_v23, 4  ;;  %v3081_v45 = vrot.slane %v3075_v9, 5  ;;  %v3026_v47 = vrot.slane %v3019_v32, 2 }
 0xb14   : > { %v3006_v35 = vsel %vm2454_vm12, %v3004_v22, %v3005_v25  ;;  %v3025_v42 = vsel %vm2474_vm13, %v3023_v10, %v3024_v26  ;;  %v3038_v48 = vmul.f32 %v3035_v60, %v2984_v14  ;;  %v3057_v49 = vmul.f32 %v3054_v4, %v2984_v14 }
 0xb15   : > { %v3011_v41 = vadd.f32 %v3006_v35, %v2990_v11  ;;  %v3008_v46 = vsel %vm2454_vm12, %v3005_v25, %v3007_v40  ;;  %v3044_v52 = vsel %vm2494_vm14, %v3042_v28, %v3043_v29  ;;  %v3076_v2 = vmul.f32 %v3073_v5, %v2984_v14 }
 0xb16   : > { %v3012_v50 = vadd.f32 %v3008_v46, %v2991_v33  ;;  %v3027_v54 = vsel %vm2474_vm13, %v3024_v26, %v3026_v47  ;;  %v3045_v55 = vrot.slane %v3038_v48, 3  ;;  %v3064_v53 = vrot.slane %v3057_v49, 4  ;;  %v3383_v46 = vld [vmem:[%s8503_s12 + $0x10] sm:$0xff]  ;;  %v3384_v48 = vld [vmem:[%s8503_s12 + $0x18] sm:$0xff] }
 0xb17   : > { %v3030_v51 = vadd.f32 %v3025_v42, %v3011_v41  ;;  %v3095_v56 = vmul.f32 %v3092_v8, %v2984_v14  ;;  %v3080_v59 = vrot.slane %v3074_v21, 5  ;;  %v3063_v62 = vsel %vm2514_vm15, %v3061_v30, %v3062_v44  ;;  %v5824_v21 = vld [vmem:[%s8502_s11] ss:$0 sm:$0xff]  ;;  %s8506_s11 = sld [smem:[#allocation55_spill]] }
 0xb18   : > { %v3031_v57 = vadd.f32 %v3027_v54, %v3012_v50  ;;  %v3100_v0 = vrot.slane %v3094_v36, 6  ;;  %v3046_v1 = vsel %vm2494_vm14, %v3043_v29, %v3045_v55  ;;  %v3083_v60 = vrot.slane %v3076_v2, 5 }
 0xb19   : > { %v3049_v58 = vadd.f32 %v3044_v52, %v3030_v51  ;;  %v3082_v7 = vsel %vm2426_vm11, %v3080_v59, %v3081_v45  ;;  %v3099_v5 = vrot.slane %v3093_v24, 6  ;;  %v3065_v11 = vsel %vm2514_vm15, %v3062_v44, %v3064_v53  ;;  %v3381_v44 = vld [vmem:[%s8503_s12] sm:$0xff] }
 0xb1a   : > { %v3050_v6 = vadd.f32 %v3046_v1, %v3031_v57  ;;  %v3102_v12 = vrot.slane %v3095_v56, 6  ;;  %v3084_v61 = vsel %vm2426_vm11, %v3081_v45, %v3083_v60  ;;  %v3382_v45 = vld [vmem:[%s8503_s12 + $0x8] sm:$0xff]  ;;  %v6440_v49 = vpack.c.bf16 %v3384_v48, %v3383_v46  ;;  %v5827_v56 = vld [vmem:[%s8504_s10] ss:$0 sm:$0xff]  ;;  %s8507_s10 = sld [smem:[#allocation58_spill]] }
 0xb1b   : > { %v3068_v4 = vadd.f32 %v3063_v62, %v3049_v58  ;;  %v3101_v14 = vsel %vm1811_vm3, %v3099_v5, %v3100_v0  ;;  %v6436_v47 = vpack.c.bf16 %v3382_v45, %v3381_v44  ;;  %v5828_v59 = vld [vmem:[%s8505_s23] ss:$0 sm:$0xff] }
 0xb1c   : > { %v3069_v8 = vadd.f32 %v3065_v11, %v3050_v6  ;;  %v3103_v63 = vsel %vm1811_vm3, %v3100_v0, %v3102_v12  ;;  %v3258_v0 = vld [vmem:[#allocation9] sm:$0x7f] }
 0xb1d   : > { %v3087_v13 = vadd.f32 %v3082_v7, %v3068_v4  ;;  %6437 = vmatprep.subr.bf16.mxu0 %v6436_v47  ;;  %v3270_v7 = vrot.slane %v3258_v0, %v7847_v31  ;;  %v3262_v5 = vrot.slane %v3258_v0, %v7766_v3  ;;  %v3289_v11 = vrot.slane %v3258_v0, %v7850_v34 }
 0xb1e   : > { %v3088_v17 = vadd.f32 %v3084_v61, %v3069_v8  ;;  %6439 = vmatpush3.bf16.msra.mxu0 %v6436_v47  ;;  %v3308_v8 = vrot.slane %v3258_v0, %v7853_v37  ;;  %v3346_v61 = vrot.slane %v3258_v0, %v7859_v39 }
 0xb1f   : > { %v3106_v16 = vadd.f32 %v3101_v14, %v3087_v13  ;;  %6441 = vmatprep.subr.bf16.mxu0 %v6440_v49  ;;  %v3327_v14 = vrot.slane %v3258_v0, %v7856_v38 }
 0xb20   : > { %v3107_v20 = vadd.f32 %v3103_v63, %v3088_v17  ;;  %v3365_v63 = vrot.slane %v3258_v0, %v7863_v43  ;;  %s8508_s23 = smov %s8507_s10 }
 0xb21   : > { %6157 = vmatprep.mubr.msk.f32.mxu1 %vm1989_vm10, %v3106_v16 }
 0xb22   : > { %6158 = vmatmul.mubr.msk.f32.vlgmr.msra.gmra.mrb[10].mxu1 %vm1989_vm10, %v3107_v20  ;;  %6443 = vmatpush3.bf16.msra.mxu0 %v6440_v49 }
 0xbf5   : > { %v6159_v22 = vpop.f32.mrb[10].mxu1 }
 0xbf6   : > { %v3197_v23 = vadd.f32 %v6159_v22, %v5824_v21  ;;  %v3191_v9 = vpop.f32.mrb[11].mxu1 }
 0xbf7   : > { %v3192_v24 = vadd.f32 %v5824_v21, %v3191_v9 }
 0xbf8   : > { %v3201_v25 = vmax.f32 %v3197_v23, 0.0 }
 0xbf9   : > { %v3200_v10 = vmax.f32 %v3192_v24, 0.0 }
 0xbfa   : > { %v7983_v27 = vadd.f32 %v3201_v25, %v7938_v19 }
 0xbfb   : > { %v7980_v26 = vadd.f32 %v3200_v10, %v7935_v18 }
 0xbfc   : > { %v3209_v29 = vsel %vm1989_vm10, %v7983_v27, 0.0 }
 0xbfd   : > { %v3206_v28 = vsel %vm1989_vm10, %v7980_v26, 0.0 }
 0xbfe   : > { %3207 = vadd.xlane.f32.xlu1 %v3206_v28 }
 0xc02   : > { %3210 = vadd.xlane.f32.xlu1 %v3209_v29 }
 0xc8b   : > { %v3208_v30 = vpop.xlane.xlu1 %3207 }
 0xc8c   : > { %v3212_v32 = vmul.f32 0.03125, %v3208_v30 }
 0xc8e   : > { %v3214_v18 = vsub.f32 %v7980_v26, %v3212_v32 }
 0xc8f   : > { %v3211_v33 = vpop.xlane.xlu1 %3210 }
 0xc90   : > { %v3213_v35 = vmul.f32 0.03125, %v3211_v33  ;;  %v3216_v19 = vmul.f32 %v3214_v18, %v3214_v18 }
 0xc92   : > { %v3215_v36 = vsub.f32 %v7983_v27, %v3213_v35  ;;  %v3218_v40 = vsel %vm1989_vm10, %v3216_v19, 0.0 }
 0xc93   : > { %3219 = vadd.xlane.f32.xlu1 %v3218_v40 }
 0xc94   : > { %v3217_v41 = vmul.f32 %v3215_v36, %v3215_v36 }
 0xc96   : > { %v3221_v42 = vsel %vm1989_vm10, %v3217_v41, 0.0 }
 0xc97   : > { %3222 = vadd.xlane.f32.xlu1 %v3221_v42 }
 0xd20   : > { %v3220_v51 = vpop.xlane.xlu1 %3219 }
 0xd21   : > { %v3224_v52 = vmul.f32 0.03125, %v3220_v51 }
 0xd23   : > { %v3226_v50 = vadd.f32 1e-05, %v3224_v52 }
 0xd24   : > { %v3223_v2 = vpop.xlane.xlu1 %3222 }
 0xd25   : > { %6824 = vrsqrt.f32 %v3226_v50  ;;  %v3225_v54 = vmul.f32 0.03125, %v3223_v2 }
 0xd27   : > { %v3227_v55 = vadd.f32 1e-05, %v3225_v54 }
 0xd29   : > { %6826 = vrsqrt.f32 %v3227_v55 }
 0xd2f   : > { %v6825_v53 = vpop.eup %6824 }
 0xd30   : > { %v3230_v58 = vmul.f32 %v6825_v53, %v3214_v18 }
 0xd32   : > { %v3238_v57 = vmul.f32 %v5827_v56, %v3230_v58 }
 0xd33   : > { %v6827_v62 = vpop.eup %6826 }
 0xd34   : > { %v3246_v1 = vadd.f32 %v5828_v59, %v3238_v57  ;;  %v3231_v60 = vmul.f32 %v6827_v62, %v3215_v36 }
 0xd36   : > { %v3250_v4 = vrot.slane %v3246_v1, 5  ;;  %v3239_v6 = vmul.f32 %v5827_v56, %v3231_v60 }
 0xd38   : > { %v3256_v12 = vsel %vm2426_vm11, 0.0, %v3250_v4  ;;  %v3247_v13 = vadd.f32 %v5828_v59, %v3239_v6 }
 0xd39   : > { %v3271_v17 = vmul.f32 %v3270_v7, %v3256_v12  ;;  %v3263_v20 = vmul.f32 %v3262_v5, %v3256_v12  ;;  %v3290_v21 = vmul.f32 %v3289_v11, %v3256_v12  ;;  %v3309_v34 = vmul.f32 %v3308_v8, %v3256_v12 }
 0xd3a   : > { %v3251_v16 = vrot.slane %v3247_v13, 5  ;;  %v3328_v23 = vmul.f32 %v3327_v14, %v3256_v12  ;;  %v3347_v37 = vmul.f32 %v3346_v61, %v3256_v12  ;;  %v3366_v39 = vmul.f32 %v3365_v63, %v3256_v12 }
 0xd3b   : > { %v3277_v10 = vrot.slane %v3271_v17, 1  ;;  %v3296_v30 = vrot.slane %v3290_v21, 2  ;;  %v3315_v18 = vrot.slane %v3309_v34, 3 }
 0xd3c   : > { %v3252_v31 = vsel %vm2426_vm11, %v3250_v4, %v3251_v16  ;;  %v3257_v22 = vsel %vm2426_vm11, %v3251_v16, 0.0  ;;  %v3334_v35 = vrot.slane %v3328_v23, 4  ;;  %v3353_v62 = vrot.slane %v3347_v37, 5 }
 0xd3d   : > { %v3272_v9 = vmul.f32 %v3270_v7, %v3252_v31  ;;  %v3291_v24 = vmul.f32 %v3289_v11, %v3252_v31  ;;  %v3310_v25 = vmul.f32 %v3308_v8, %v3252_v31  ;;  %v3329_v38 = vmul.f32 %v3327_v14, %v3252_v31 }
 0xd3e   : > { %v3348_v28 = vmul.f32 %v3346_v61, %v3252_v31  ;;  %v3273_v43 = vmul.f32 %v3270_v7, %v3257_v22  ;;  %v3292_v19 = vmul.f32 %v3289_v11, %v3257_v22  ;;  %v3264_v36 = vmul.f32 %v3262_v5, %v3252_v31 }
 0xd3f   : > { %v3278_v29 = vrot.slane %v3272_v9, 1  ;;  %v3297_v32 = vrot.slane %v3291_v24, 2  ;;  %v3316_v33 = vrot.slane %v3310_v25, 3  ;;  %v3367_v41 = vmul.f32 %v3365_v63, %v3252_v31 }
 0xd40   : > { %v3280_v42 = vrot.slane %v3273_v43, 1  ;;  %v3335_v46 = vrot.slane %v3329_v38, 4  ;;  %v3354_v47 = vrot.slane %v3348_v28, 5  ;;  %v3299_v49 = vrot.slane %v3292_v19, 2 }
 0xd41   : > { %v3279_v40 = vsel %vm2454_vm12, %v3277_v10, %v3278_v29  ;;  %v3298_v45 = vsel %vm2474_vm13, %v3296_v30, %v3297_v32  ;;  %v3311_v51 = vmul.f32 %v3308_v8, %v3257_v22  ;;  %v3330_v52 = vmul.f32 %v3327_v14, %v3257_v22 }
 0xd42   : > { %v3284_v44 = vadd.f32 %v3279_v40, %v3263_v20  ;;  %v3281_v48 = vsel %vm2454_vm12, %v3278_v29, %v3280_v42  ;;  %v3317_v2 = vsel %vm2494_vm14, %v3315_v18, %v3316_v33  ;;  %v3349_v55 = vmul.f32 %v3346_v61, %v3257_v22  ;;  %v3522_v40 = vld [vmem:[%s8508_s23 + $0x8] sm:$0xff] }
 0xd43   : > { %v3285_v54 = vadd.f32 %v3281_v48, %v3264_v36  ;;  %v3300_v53 = vsel %vm2474_vm13, %v3297_v32, %v3299_v49  ;;  %v3318_v56 = vrot.slane %v3311_v51, 3  ;;  %v3337_v58 = vrot.slane %v3330_v52, 4  ;;  %v3521_v36 = vld [vmem:[%s8507_s10] sm:$0xff]  ;;  %s7286_s10 = smov 88  }
 0xd44   : > { %v3303_v50 = vadd.f32 %v3298_v45, %v3284_v44  ;;  %v3368_v59 = vmul.f32 %v3365_v63, %v3257_v22  ;;  %v3336_v1 = vsel %vm2514_vm15, %v3334_v35, %v3335_v46  ;;  %v3373_v60 = vrot.slane %v3367_v41, 6  ;;  %v5829_v22 = vld [vmem:[%s8506_s11] ss:$0 sm:$0xff]  ;;  %s8509_s11 = sld [smem:[#allocation59_spill]]  ;;  %v3523_v45 = vld [vmem:[%s8508_s23 + $0x10] sm:$0xff] }
 0xd45   : > { %v3304_v0 = vadd.f32 %v3300_v53, %v3285_v54  ;;  %v3319_v4 = vsel %vm2494_vm14, %v3316_v33, %v3318_v56  ;;  %v3356_v6 = vrot.slane %v3349_v55, 5  ;;  %v3355_v11 = vsel %vm2426_vm11, %v3353_v62, %v3354_v47  ;;  %v5833_v62 = vld [vmem:[%s8512_s4] ss:$0 sm:$0xff]  ;;  %s7283_s4 = smov 120  }
 0xd46   : > { %v3322_v57 = vadd.f32 %v3317_v2, %v3303_v50  ;;  %v3372_v12 = vrot.slane %v3366_v39, 6  ;;  %v3338_v13 = vsel %vm2514_vm15, %v3335_v46, %v3337_v58  ;;  %v3375_v8 = vrot.slane %v3368_v59, 6  ;;  %v3524_v46 = vld [vmem:[%s8508_s23 + $0x18] sm:$0xff]  ;;  %v5832_v59 = vld [vmem:[%s8511_s2] ss:$0 sm:$0xff]  ;;  %s7285_s2 = smov 112  }
 0xd47   : > { %v3323_v5 = vadd.f32 %v3319_v4, %v3304_v0  ;;  %v3357_v17 = vsel %vm2426_vm11, %v3354_v47, %v3356_v6  ;;  %v6444_v42 = vpack.c.bf16 %v3522_v40, %v3521_v36  ;;  %v6448_v48 = vpack.c.bf16 %v3524_v46, %v3523_v45 }
 0xd48   : > { %v3341_v7 = vadd.f32 %v3336_v1, %v3322_v57  ;;  %v3374_v16 = vsel %vm1811_vm3, %v3372_v12, %v3373_v60  ;;  %v3376_v21 = vsel %vm1811_vm3, %v3373_v60, %v3375_v8  ;;  %vm5318_vm13 = vcmask 785408  }
 0xd49   : > { %v3342_v61 = vadd.f32 %v3338_v13, %v3323_v5  ;;  %6445 = vmatprep.subr.bf16.mxu1 %v6444_v42 }
 0xd4a   : > { %v3360_v14 = vadd.f32 %v3355_v11, %v3341_v7  ;;  %s8510_s1 = smov %s8509_s11  ;;  %v3606_v41 = vld [vmem:[%s8509_s11] sm:$0xff]  ;;  %6447 = vmatpush3.bf16.msra.mxu1 %v6444_v42  ;;  %s7287_s11 = smov 104  }
 0xd4b   : > { %v3361_v20 = vadd.f32 %v3357_v17, %v3342_v61  ;;  %v3607_v44 = vld [vmem:[%s8510_s1 + $0x8] sm:$0xff]  ;;  %v3608_v49 = vld [vmem:[%s8510_s1 + $0x10] sm:$0xff]  ;;  %v3609_v51 = vld [vmem:[%s8510_s1 + $0x18] sm:$0xff]  ;;  %6449 = vmatprep.subr.bf16.mxu1 %v6448_v48  ;;  %s8522_s1 = sld [smem:[#allocation66_spill]] }
 0xd4c   : > { %v3379_v63 = vadd.f32 %v3374_v16, %v3360_v14  ;;  %v6452_v47 = vpack.c.bf16 %v3607_v44, %v3606_v41  ;;  %v6456_v52 = vpack.c.bf16 %v3609_v51, %v3608_v49 }
 0xd4d   : > { %v3380_v31 = vadd.f32 %v3376_v21, %v3361_v20  ;;  %v6876_v20 = vld [vmem:[%s7763_s28] sm:$0x1]  ;;  %s8406_s28 = smov 96  }
 0xd4e   : > { %6168 = vmatprep.mubr.msk.f32.mxu0 %vm1989_vm10, %v3379_v63  ;;  %6453 = vmatprep.subr.bf16.mxu0 %v6452_v47  ;;  %v7282_v63 = vmov 0   ;;  %vm1729_vm2 = vcmp.ne.s32.totalorder %v6876_v20, 0 }
 0xd4f   : > { %6169 = vmatmul.mubr.msk.f32.vlgmr.msra.gmra.mrb[6].mxu0 %vm1989_vm10, %v3380_v31  ;;  %6451 = vmatpush3.bf16.msra.mxu1 %v6448_v48  ;;  %v5783_v21 = vsel %vm1729_vm2, 1.0, %v7281_v15 }
 0xd50   : > { %6455 = vmatpush3.bf16.msra.mxu0 %v6452_v47  ;;  %6794 = vset.pattern.permute.xlu0 %v7282_v63  ;;  %vm3775_vm3 = vcmp.gt.f32.partialorder %v5783_v21, 0.0 }
 0xd51   : > { %6457 = vmatprep.subr.bf16.mxu0 %v6456_v52  ;;  %6795 = vset.pattern.permute.xlu1 %v7282_v63  ;;  %v3776_v31 = vsel %vm3775_vm3, 1, %v7282_v63 }
 0xd54   : > { %6459 = vmatpush3.bf16.msra.mxu0 %v6456_v52 }
 0xe22   : > { %v6170_v34 = vpop.f32.mrb[6].mxu0 }
 0xe23   : > { %v3470_v23 = vadd.f32 %v6170_v34, %v5829_v22  ;;  %v3464_v9 = vpop.f32.mrb[7].mxu0 }
 0xe24   : > { %v3465_v24 = vadd.f32 %v5829_v22, %v3464_v9  ;;  %v3780_v22 = vrot.slane %v3776_v31, %v7766_v3 }
 0xe25   : > { %v3474_v25 = vmax.f32 %v3470_v23, 0.0 }
 0xe26   : > { %v3473_v37 = vmax.f32 %v3465_v24, 0.0  ;;  %vm8078_vm4 = vcmp.eq.s32.totalorder %v3780_v22, 1 }
 0xe27   : > { %v8028_v38 = vadd.f32 %v3474_v25, %v7983_v27 }
 0xe28   : > { %v8025_v10 = vadd.f32 %v3473_v37, %v7980_v26 }
 0xe29   : > { %v3482_v39 = vsel %vm1989_vm10, %v8028_v38, 0.0 }
 0xe2a   : > { %v3479_v28 = vsel %vm1989_vm10, %v8025_v10, 0.0 }
 0xe2b   : > { %3480 = vadd.xlane.f32.xlu1 %v3479_v28 }
 0xe2f   : > { %3483 = vadd.xlane.f32.xlu1 %v3482_v39 }
 0xeb8   : > { %v3481_v29 = vpop.xlane.xlu1 %3480 }
 0xeb9   : > { %v3485_v30 = vmul.f32 0.03125, %v3481_v29 }
 0xebb   : > { %v3487_v26 = vsub.f32 %v8025_v10, %v3485_v30 }
 0xebc   : > { %v3484_v27 = vpop.xlane.xlu1 %3483 }
 0xebd   : > { %v3486_v32 = vmul.f32 0.03125, %v3484_v27  ;;  %v3489_v43 = vmul.f32 %v3487_v26, %v3487_v26 }
 0xebf   : > { %v3488_v18 = vsub.f32 %v8028_v38, %v3486_v32  ;;  %v3491_v33 = vsel %vm1989_vm10, %v3489_v43, 0.0 }
 0xec0   : > { %3492 = vadd.xlane.f32.xlu1 %v3491_v33 }
 0xec1   : > { %v3490_v35 = vmul.f32 %v3488_v18, %v3488_v18 }
 0xec3   : > { %v3494_v19 = vsel %vm1989_vm10, %v3490_v35, 0.0 }
 0xec4   : > { %3495 = vadd.xlane.f32.xlu1 %v3494_v19 }
 0xf4d   : > { %v3493_v50 = vpop.xlane.xlu1 %3492 }
 0xf4e   : > { %v3497_v2 = vmul.f32 0.03125, %v3493_v50 }
 0xf50   : > { %v3499_v54 = vadd.f32 1e-05, %v3497_v2 }
 0xf51   : > { %v3496_v55 = vpop.xlane.xlu1 %3495 }
 0xf52   : > { %6828 = vrsqrt.f32 %v3499_v54  ;;  %v3498_v53 = vmul.f32 0.03125, %v3496_v55 }
 0xf54   : > { %v3500_v56 = vadd.f32 1e-05, %v3498_v53 }
 0xf56   : > { %6830 = vrsqrt.f32 %v3500_v56 }
 0xf5c   : > { %v6829_v58 = vpop.eup %6828 }
 0xf5d   : > { %v3503_v57 = vmul.f32 %v6829_v58, %v3487_v26 }
 0xf5f   : > { %v3511_v0 = vmul.f32 %v5832_v59, %v3503_v57 }
 0xf60   : > { %v6831_v1 = vpop.eup %6830 }
 0xf61   : > { %v3504_v60 = vmul.f32 %v6831_v1, %v3488_v18  ;;  %v3519_v4 = vadd.f32 %v5833_v62, %v3511_v0 }
 0xf63   : > { %v3512_v6 = vmul.f32 %v5832_v59, %v3504_v60  ;;  %6179 = vmatprep.mubr.msk.f32.mxu1 %vm1989_vm10, %v3519_v4  ;;  %6190 = vmatprep.mubr.msk.f32.mxu0 %vm1989_vm10, %v3519_v4 }
 0xf65   : > { %v3520_v7 = vadd.f32 %v5833_v62, %v3512_v6 }
 0xf67   : > { %6180 = vmatmul.mubr.msk.f32.vlgmr.msra.gmra.mrb[12].mxu1 %vm1989_vm10, %v3520_v7  ;;  %6191 = vmatmul.mubr.msk.f32.vlgmr.msra.gmra.mrb[8].mxu0 %vm1989_vm10, %v3520_v7 }
0x103a   : > { %v6181_v5 = vpop.f32.mrb[12].mxu1  ;;  %v6192_v11 = vpop.f32.mrb[8].mxu0 }
0x103b   : > { %v3597_v12 = vpop.f32.mrb[13].mxu1  ;;  %v3676_v13 = vpop.f32.mrb[9].mxu0  ;;  %v8068_v17 = vmul.f32 0.35355338, %v6192_v11 }
0x103c   : > { %v8058_v14 = vmul.f32 0.35355338, %v3676_v13  ;;  %v6460_v61 = vpack.c.bf16 %v6181_v5, %v3597_v12  ;;  %v8060_v16 = vpack.i.bf16 %v6181_v5, %v3597_v12 }
0x103e   : > { %6462 = vmatprep.subr.msk.bf16.mxu1 %vm8054_vm1, %v6460_v61  ;;  %6197 = vmatprep.mubr.msk.f32.mxu1 %vm3687_vm0, %v8058_v14 }
0x103f   : > { %6465 = vmatpush3.bf16.xpose.msk.msra.mxu1 %vm8054_vm1, %v6460_v61 }
0x1046   : > { %6198 = vmatmul.mubr.msk.f32.vlgmr.msra.gmra.mrb[14].mxu1 %vm3687_vm0, %v8068_v17 }
0x1119   : > { %v6199_v23 = vpop.f32.mrb[14].mxu1 }
0x111a   : > { %v3783_v9 = vsel %vm8078_vm4, %v6199_v23, -1e+30  ;;  %v3766_v24 = vpop.f32.mrb[15].mxu1 }
0x111b   : > { %v3782_v25 = vsel %vm8078_vm4, %v3766_v24, -1e+30  ;;  %v3788_v37 = vsel %vm3784_vm5, %v3783_v9, -inf }
0x111c   : > { %3789 = vmax.xlane.f32.xlu1 %v3788_v37  ;;  %v3785_v28 = vsel %vm3784_vm5, %v3782_v25, -inf }
0x111d   : > { %3786 = vmax.xlane.f32.xlu0 %v3785_v28 }
0x11a9   : > { %v3790_v39 = vpop.xlane.xlu1 %3789 }
0x11aa   : > { %v3792_v29 = vsub.f32 %v3783_v9, %v3790_v39  ;;  %v3787_v30 = vpop.xlane.xlu0 %3786 }
0x11ab   : > { %v3791_v26 = vsub.f32 %v3782_v25, %v3787_v30 }
0x11ac   : > { %v3795_v27 = vmul.f32 1.442695, %v3792_v29 }
0x11ad   : > { %v3793_v32 = vmul.f32 1.442695, %v3791_v26 }
0x11ae   : > { %6832 = vpow2.f32 %v3795_v27 }
0x11af   : > { %6834 = vpow2.f32 %v3793_v32 }
0x11b8   : > { %v6833_v43 = vpop.eup %6832 }
0x11b9   : > { %v6835_v18 = vpop.eup %6834  ;;  %v3800_v33 = vsel %vm3784_vm5, %v6833_v43, 0.0 }
0x11ba   : > { %3801 = vadd.xlane.f32.xlu1 %v3800_v33  ;;  %v3797_v35 = vsel %vm3784_vm5, %v6835_v18, 0.0 }
0x11bb   : > { %3798 = vadd.xlane.f32.xlu0 %v3797_v35 }
0x11cb   : > { %6765 = vrot.lane.b32.xlu1 %v8060_v16, %s7283_s4 }
0x11cf   : > { %3894 = vrot.lane.b32.xlu1 %v8058_v14, %s7283_s4 }
0x11d1   : > { %6760 = vrot.lane.b32.xlu0 %v8060_v16, %s8406_s28 }
0x11d5   : > { %3896 = vrot.lane.b32.xlu0 %v8068_v17, %s7283_s4  ;;  %s7288_s4 = smov 80  }
0x1247   : > { %v3802_v19 = vpop.xlane.xlu1 %3801 }
0x1248   : > { %6836 = vrcp.f32 %v3802_v19  ;;  %v3799_v36 = vpop.xlane.xlu0 %3798 }
0x1249   : > { %6838 = vrcp.f32 %v3799_v36 }
0x124b   : > { %v6766_v40 = vpop.permute.xlu1 %6765 }
0x124c   : > { %v6761_v41 = vpop.permute.xlu0 %6760  ;;  %v6768_v42 = vunpack.i.h.bf16 %v6766_v40  ;;  %v6767_v44 = vunpack.i.l.bf16 %v6766_v40 }
0x124d   : > { %v6763_v45 = vunpack.i.h.bf16 %v6761_v41  ;;  %v6762_v46 = vunpack.i.l.bf16 %v6761_v41 }
0x124e   : > { %v6470_v48 = vpack.c.bf16 %v6768_v42, %v6767_v44 }
0x124f   : > { %v6466_v47 = vpack.c.bf16 %v6763_v45, %v6762_v46  ;;  %v3895_v2 = vpop.permute.xlu1 %3894 }
0x1250   : > { %v3897_v54 = vpop.permute.xlu0 %3896 }
0x1251   : > { %6467 = vmatprep.subr.bf16.mxu0 %v6466_v47 }
0x1252   : > { %v6837_v49 = vpop.eup %6836  ;;  %6469 = vmatpush3.bf16.msra.mxu0 %v6466_v47 }
0x1253   : > { %v6839_v51 = vpop.eup %6838  ;;  %6472 = vmatprep.subr.msk.bf16.mxu0 %vm8054_vm1, %v6470_v48  ;;  %v3806_v50 = vmul.f32 %v6837_v49, %v6833_v43 }
0x1254   : > { %v3804_v52 = vmul.f32 %v6839_v51, %v6835_v18 }
0x1256   : > { %6204 = vmatprep.mubr.msk.f32.mxu0 %vm3784_vm5, %v3804_v52 }
0x1257   : > { %6205 = vmatmul.mubr.msk.f32.vlgmr.msra.gmra.mrb[10].mxu0 %vm3784_vm5, %v3806_v50 }
0x1258   : > { %6211 = vmatprep.mubr.msk.f32.mxu0 %vm3687_vm0, %v3895_v2 }
0x125b   : > { %6475 = vmatpush3.bf16.xpose.msk.msra.mxu0 %vm8054_vm1, %v6470_v48 }
0x1262   : > { %6212 = vmatmul.mubr.msk.f32.vlgmr.msra.gmra.mrb[12].mxu0 %vm3687_vm0, %v3897_v54 }
0x132a   : > { %v8103_v55 = vpop.f32.mrb[10].mxu0 }
0x132b   : > { %v8105_v53 = vpop.f32.mrb[11].mxu0 }
0x1335   : > { %v6213_v56 = vpop.f32.mrb[12].mxu0 }
0x1336   : > { %v3986_v58 = vsel %vm8078_vm4, %v6213_v56, -1e+30  ;;  %v3976_v59 = vpop.f32.mrb[13].mxu0 }
0x1337   : > { %v3985_v57 = vsel %vm8078_vm4, %v3976_v59, -1e+30  ;;  %v3990_v62 = vsel %vm3784_vm5, %v3986_v58, -inf }
0x1338   : > { %3991 = vmax.xlane.f32.xlu0 %v3990_v62  ;;  %v3987_v0 = vsel %vm3784_vm5, %v3985_v57, -inf }
0x1339   : > { %3988 = vmax.xlane.f32.xlu1 %v3987_v0 }
0x13c5   : > { %v3992_v1 = vpop.xlane.xlu0 %3991 }
0x13c6   : > { %v3994_v60 = vsub.f32 %v3986_v58, %v3992_v1  ;;  %v3989_v4 = vpop.xlane.xlu1 %3988 }
0x13c7   : > { %v3993_v6 = vsub.f32 %v3985_v57, %v3989_v4 }
0x13c8   : > { %v3997_v7 = vmul.f32 1.442695, %v3994_v60 }
0x13c9   : > { %v3995_v5 = vmul.f32 1.442695, %v3993_v6 }
0x13ca   : > { %6840 = vpow2.f32 %v3997_v7 }
0x13cb   : > { %6842 = vpow2.f32 %v3995_v5 }
0x13d4   : > { %v6841_v11 = vpop.eup %6840 }
0x13d5   : > { %v6843_v12 = vpop.eup %6842  ;;  %v4002_v13 = vsel %vm3784_vm5, %v6841_v11, 0.0 }
0x13d6   : > { %4003 = vadd.xlane.f32.xlu1 %v4002_v13  ;;  %v3999_v61 = vsel %vm3784_vm5, %v6843_v12, 0.0 }
0x13d7   : > { %4000 = vadd.xlane.f32.xlu0 %v3999_v61 }
0x13e7   : > { %6775 = vrot.lane.b32.xlu1 %v8060_v16, %s7285_s2 }
0x13eb   : > { %4096 = vrot.lane.b32.xlu1 %v8058_v14, %s7285_s2 }
0x13ed   : > { %6770 = vrot.lane.b32.xlu0 %v8060_v16, %s7286_s10  ;;  %s7290_s10 = smov 72  }
0x13f1   : > { %4098 = vrot.lane.b32.xlu0 %v8068_v17, %s7285_s2  ;;  %s7289_s2 = smov 8  }
0x1463   : > { %v4004_v20 = vpop.xlane.xlu1 %4003 }
0x1464   : > { %6844 = vrcp.f32 %v4004_v20  ;;  %v4001_v21 = vpop.xlane.xlu0 %4000 }
0x1465   : > { %6846 = vrcp.f32 %v4001_v21 }
0x1467   : > { %v6776_v31 = vpop.permute.xlu1 %6775 }
0x1468   : > { %v6771_v22 = vpop.permute.xlu0 %6770  ;;  %v6778_v23 = vunpack.i.h.bf16 %v6776_v31  ;;  %v6777_v9 = vunpack.i.l.bf16 %v6776_v31 }
0x1469   : > { %v6773_v24 = vunpack.i.h.bf16 %v6771_v22  ;;  %v6772_v25 = vunpack.i.l.bf16 %v6771_v22 }
0x146a   : > { %v6480_v28 = vpack.c.bf16 %v6778_v23, %v6777_v9 }
0x146b   : > { %v6476_v37 = vpack.c.bf16 %v6773_v24, %v6772_v25  ;;  %v4097_v27 = vpop.permute.xlu1 %4096 }
0x146c   : > { %v4099_v32 = vpop.permute.xlu0 %4098 }
0x146d   : > { %6477 = vmatprep.subr.bf16.mxu1 %v6476_v37 }
0x146e   : > { %v6845_v39 = vpop.eup %6844  ;;  %6479 = vmatpush3.bf16.msra.mxu1 %v6476_v37 }
0x146f   : > { %v6847_v29 = vpop.eup %6846  ;;  %6482 = vmatprep.subr.msk.bf16.mxu1 %vm8054_vm1, %v6480_v28  ;;  %v4008_v26 = vmul.f32 %v6845_v39, %v6841_v11 }
0x1470   : > { %v4006_v30 = vmul.f32 %v6847_v29, %v6843_v12 }
0x1472   : > { %6218 = vmatprep.mubr.msk.f32.mxu1 %vm3784_vm5, %v4006_v30 }
0x1473   : > { %6219 = vmatmul.mubr.msk.f32.vlgmr.msra.gmra.mrb[16].mxu1 %vm3784_vm5, %v4008_v26 }
0x1474   : > { %6225 = vmatprep.mubr.msk.f32.mxu1 %vm3687_vm0, %v4097_v27 }
0x1477   : > { %6485 = vmatpush3.bf16.xpose.msk.msra.mxu1 %vm8054_vm1, %v6480_v28 }
0x147e   : > { %6226 = vmatmul.mubr.msk.f32.vlgmr.msra.gmra.mrb[18].mxu1 %vm3687_vm0, %v4099_v32 }
0x1546   : > { %v8127_v43 = vpop.f32.mrb[16].mxu1 }
0x1547   : > { %v8129_v18 = vpop.f32.mrb[17].mxu1 }
0x1551   : > { %v6227_v33 = vpop.f32.mrb[18].mxu1 }
0x1552   : > { %v4188_v35 = vsel %vm8078_vm4, %v6227_v33, -1e+30  ;;  %v4178_v19 = vpop.f32.mrb[19].mxu1 }
0x1553   : > { %v4187_v36 = vsel %vm8078_vm4, %v4178_v19, -1e+30  ;;  %v4192_v40 = vsel %vm3784_vm5, %v4188_v35, -inf }
0x1554   : > { %4193 = vmax.xlane.f32.xlu0 %v4192_v40  ;;  %v4189_v41 = vsel %vm3784_vm5, %v4187_v36, -inf }
0x1555   : > { %4190 = vmax.xlane.f32.xlu1 %v4189_v41 }
0x15e1   : > { %v4194_v42 = vpop.xlane.xlu0 %4193 }
0x15e2   : > { %v4196_v44 = vsub.f32 %v4188_v35, %v4194_v42  ;;  %v4191_v45 = vpop.xlane.xlu1 %4190 }
0x15e3   : > { %v4195_v46 = vsub.f32 %v4187_v36, %v4191_v45 }
0x15e4   : > { %v4199_v47 = vmul.f32 1.442695, %v4196_v44 }
0x15e5   : > { %v4197_v48 = vmul.f32 1.442695, %v4195_v46 }
0x15e6   : > { %6848 = vpow2.f32 %v4199_v47 }
0x15e7   : > { %6850 = vpow2.f32 %v4197_v48 }
0x15f0   : > { %v6849_v49 = vpop.eup %6848 }
0x15f1   : > { %v6851_v51 = vpop.eup %6850  ;;  %v4204_v52 = vsel %vm3784_vm5, %v6849_v49, 0.0 }
0x15f2   : > { %4205 = vadd.xlane.f32.xlu1 %v4204_v52  ;;  %v4201_v50 = vsel %vm3784_vm5, %v6851_v51, 0.0 }
0x15f3   : > { %4202 = vadd.xlane.f32.xlu0 %v4201_v50 }
0x1603   : > { %6785 = vrot.lane.b32.xlu1 %v8060_v16, %s7287_s11 }
0x1607   : > { %4298 = vrot.lane.b32.xlu1 %v8058_v14, %s7287_s11 }
0x1609   : > { %6780 = vrot.lane.b32.xlu0 %v8060_v16, %s7288_s4  ;;  %s7292_s4 = smov 24  }
0x160d   : > { %4300 = vrot.lane.b32.xlu0 %v8068_v17, %s7287_s11  ;;  %s7291_s11 = smov 16  }
0x167f   : > { %v4206_v2 = vpop.xlane.xlu1 %4205 }
0x1680   : > { %6852 = vrcp.f32 %v4206_v2  ;;  %v4203_v54 = vpop.xlane.xlu0 %4202 }
0x1681   : > { %6854 = vrcp.f32 %v4203_v54 }
0x1683   : > { %v6786_v56 = vpop.permute.xlu1 %6785 }
0x1684   : > { %v6781_v58 = vpop.permute.xlu0 %6780  ;;  %v6788_v59 = vunpack.i.h.bf16 %v6786_v56  ;;  %v6787_v57 = vunpack.i.l.bf16 %v6786_v56 }
0x1685   : > { %v6783_v62 = vunpack.i.h.bf16 %v6781_v58  ;;  %v6782_v0 = vunpack.i.l.bf16 %v6781_v58 }
0x1686   : > { %v6490_v60 = vpack.c.bf16 %v6788_v59, %v6787_v57 }
0x1687   : > { %v6486_v1 = vpack.c.bf16 %v6783_v62, %v6782_v0  ;;  %v4299_v7 = vpop.permute.xlu1 %4298 }
0x1688   : > { %v4301_v5 = vpop.permute.xlu0 %4300 }
0x1689   : > { %6487 = vmatprep.subr.bf16.mxu0 %v6486_v1 }
0x168a   : > { %v6853_v4 = vpop.eup %6852  ;;  %6489 = vmatpush3.bf16.msra.mxu0 %v6486_v1 }
0x168b   : > { %v6855_v14 = vpop.eup %6854  ;;  %6492 = vmatprep.subr.msk.bf16.mxu0 %vm8054_vm1, %v6490_v60  ;;  %v4210_v6 = vmul.f32 %v6853_v4, %v6849_v49 }
0x168c   : > { %v4208_v17 = vmul.f32 %v6855_v14, %v6851_v51 }
0x168e   : > { %6232 = vmatprep.mubr.msk.f32.mxu0 %vm3784_vm5, %v4208_v17 }
0x168f   : > { %6233 = vmatmul.mubr.msk.f32.vlgmr.msra.gmra.mrb[14].mxu0 %vm3784_vm5, %v4210_v6 }
0x1690   : > { %6239 = vmatprep.mubr.msk.f32.mxu0 %vm3687_vm0, %v4299_v7 }
0x1693   : > { %6495 = vmatpush3.bf16.xpose.msk.msra.mxu0 %vm8054_vm1, %v6490_v60 }
0x169a   : > { %6240 = vmatmul.mubr.msk.f32.vlgmr.msra.gmra.mrb[16].mxu0 %vm3687_vm0, %v4301_v5 }
0x1762   : > { %v6234_v11 = vpop.f32.mrb[14].mxu0 }
0x1763   : > { %v4289_v12 = vpop.f32.mrb[15].mxu0 }
0x176d   : > { %v6241_v13 = vpop.f32.mrb[16].mxu0 }
0x176e   : > { %v4390_v61 = vsel %vm8078_vm4, %v6241_v13, -1e+30  ;;  %v4380_v20 = vpop.f32.mrb[17].mxu0  ;;  %v4671_v13 = vld [vmem:[#allocation12] sm:$0xff] }
0x176f   : > { %v4389_v21 = vsel %vm8078_vm4, %v4380_v20, -1e+30  ;;  %v4394_v31 = vsel %vm3784_vm5, %v4390_v61, -inf }
0x1770   : > { %4395 = vmax.xlane.f32.xlu0 %v4394_v31  ;;  %v4391_v22 = vsel %vm3784_vm5, %v4389_v21, -inf }
0x1771   : > { %4392 = vmax.xlane.f32.xlu1 %v4391_v22 }
0x17fd   : > { %v4396_v8 = vpop.xlane.xlu0 %4395 }
0x17fe   : > { %v4398_v23 = vsub.f32 %v4390_v61, %v4396_v8  ;;  %v4393_v9 = vpop.xlane.xlu1 %4392  ;;  %v4672_v61 = vld [vmem:[#allocation12 + $0x8] sm:$0xff] }
0x17ff   : > { %v4397_v24 = vsub.f32 %v4389_v21, %v4393_v9  ;;  %v6508_v20 = vpack.c.bf16 %v4672_v61, %v4671_v13 }
0x1800   : > { %v4401_v25 = vmul.f32 1.442695, %v4398_v23 }
0x1801   : > { %v4399_v37 = vmul.f32 1.442695, %v4397_v24  ;;  %6509 = vmatprep.subr.bf16.mxu0 %v6508_v20 }
0x1802   : > { %6856 = vpow2.f32 %v4401_v25  ;;  %6511 = vmatpush3.bf16.msra.mxu0 %v6508_v20 }
0x1803   : > { %6858 = vpow2.f32 %v4399_v37 }
0x180c   : > { %v6857_v28 = vpop.eup %6856 }
0x180d   : > { %v6859_v39 = vpop.eup %6858  ;;  %v4406_v29 = vsel %vm3784_vm5, %v6857_v28, 0.0 }
0x180e   : > { %4407 = vadd.xlane.f32.xlu1 %v4406_v29  ;;  %v4403_v30 = vsel %vm3784_vm5, %v6859_v39, 0.0 }
0x180f   : > { %4404 = vadd.xlane.f32.xlu0 %v4403_v30 }
0x181f   : > { %4502 = vrot.lane.b32.xlu1 %v8129_v18, %s7289_s2 }
0x1823   : > { %4504 = vrot.lane.b32.xlu1 %v8127_v43, %s7289_s2  ;;  %s8517_s2 = sld [smem:[#allocation62_spill]] }
0x1825   : > { %6790 = vrot.lane.b32.xlu0 %v8060_v16, %s7290_s10  ;;  %s8518_s10 = sld [smem:[#allocation60_spill]] }
0x1827   : > { %4512 = vrot.lane.b32.xlu1 %v6234_v11, %s7291_s11 }
0x1829   : > { %4510 = vrot.lane.b32.xlu0 %v4289_v12, %s7291_s11  ;;  %v4577_v17 = vld [vmem:[%s8517_s2] sm:$0xff]  ;;  %v4578_v6 = vld [vmem:[%s8517_s2 + $0x8] sm:$0xff]  ;;  %v4579_v7 = vld [vmem:[%s8517_s2 + $0x10] sm:$0xff]  ;;  %s8519_s11 = sld [smem:[#allocation61_spill]] }
0x182a   : > { %v6500_v5 = vpack.c.bf16 %v4578_v6, %v4577_v17  ;;  %v4580_v11 = vld [vmem:[%s8517_s2 + $0x18] sm:$0xff]  ;;  %s8523_s2 = sld [smem:[#allocation67_spill]] }
0x182b   : > { %v6504_v12 = vpack.c.bf16 %v4580_v11, %v4579_v7  ;;  %v5862_v25 = vld [vmem:[%s8518_s10] ss:$0 sm:$0xff]  ;;  %s8521_s10 = sld [smem:[#allocation27_spill]] }
0x189b   : > { %v4408_v26 = vpop.xlane.xlu1 %4407 }
0x189c   : > { %6860 = vrcp.f32 %v4408_v26  ;;  %v4405_v27 = vpop.xlane.xlu0 %4404 }
0x189d   : > { %6862 = vrcp.f32 %v4405_v27 }
0x189f   : > { %v4503_v42 = vpop.permute.xlu1 %4502 }
0x18a0   : > { %v6791_v32 = vpop.permute.xlu0 %6790  ;;  %v4524_v48 = vsel %vm3687_vm0, %v8105_v53, %v4503_v42 }
0x18a1   : > { %v6793_v33 = vunpack.i.h.bf16 %v6791_v32  ;;  %v6792_v35 = vunpack.i.l.bf16 %v6791_v32 }
0x18a3   : > { %v6496_v19 = vpack.c.bf16 %v6793_v33, %v6792_v35  ;;  %v4505_v44 = vpop.permute.xlu1 %4504  ;;  %v4673_v33 = vld [vmem:[#allocation12 + $0x10] sm:$0xff]  ;;  %v4674_v35 = vld [vmem:[#allocation12 + $0x18] sm:$0xff] }
0x18a4   : > { %v4511_v46 = vpop.permute.xlu0 %4510  ;;  %v4525_v47 = vsel %vm3687_vm0, %v8103_v55, %v4505_v44 }
0x18a5   : > { %6497 = vmatprep.subr.bf16.mxu1 %v6496_v19  ;;  %v4526_v52 = vsel %vm3784_vm5, %v4524_v48, %v4511_v46 }
0x18a6   : > { %v6861_v36 = vpop.eup %6860  ;;  %6499 = vmatpush3.bf16.msra.mxu1 %v6496_v19  ;;  %v6512_v19 = vpack.c.bf16 %v4674_v35, %v4673_v33 }
0x18a7   : > { %v6863_v18 = vpop.eup %6862  ;;  %v4412_v43 = vmul.f32 %v6861_v36, %v6857_v28  ;;  %v4513_v45 = vpop.permute.xlu1 %4512  ;;  %6501 = vmatprep.subr.bf16.mxu1 %v6500_v5  ;;  %v5863_v28 = vld [vmem:[%s8519_s11] ss:$0 sm:$0xff]  ;;  %s8409_s11 = sshll.u32 %s7757_s22, 3 }
0x18a8   : > { %v4410_v40 = vmul.f32 %v6863_v18, %v6859_v39  ;;  %v4527_v49 = vsel %vm3784_vm5, %v4525_v47, %v4513_v45  ;;  %6513 = vmatprep.subr.bf16.mxu0 %v6512_v19  ;;  %s1715_s28 = scalar_lea.vmem %s8521_s10, %s8409_s11  ;;  %s8524_s11 = sld [smem:[#allocation68_spill]] }
0x18a9   : > { %6515 = vmatpush3.bf16.msra.mxu0 %v6512_v19 }
0x18aa   : > { %6246 = vmatprep.mubr.msk.f32.mxu1 %vm3784_vm5, %v4410_v40 }
0x18ab   : > { %6247 = vmatmul.mubr.msk.f32.vlgmr.msra.gmra.mrb[20].mxu1 %vm3784_vm5, %v4412_v43  ;;  %v7293_v43 = vmov 0.0|0.0  }
0x18ac   : > { %6503 = vmatpush3.bf16.msra.mxu1 %v6500_v5  ;;  %6528 = vmatprep.subr.bf16.mxu0 %v7293_v43 }
0x18ad   : > { %6505 = vmatprep.subr.bf16.mxu1 %v6504_v12 }
0x18ae   : > { %v4867_v61 = vld [vmem:[%s8524_s11] sm:$0x1] }
0x18b0   : > { %6507 = vmatpush3.bf16.msra.mxu1 %v6504_v12 }
0x18b1   : > { %6516 = vmatprep.subr.bf16.mxu1 %v7293_v43 }
0x197e   : > { %v6248_v16 = vpop.f32.mrb[20].mxu1 }
0x197f   : > { %4520 = vrot.lane.b32.xlu1 %v6248_v16, %s7292_s4  ;;  %v4491_v41 = vpop.f32.mrb[21].mxu1 }
0x1980   : > { %4518 = vrot.lane.b32.xlu0 %v4491_v41, %s7292_s4  ;;  %s8520_s4 = sld [smem:[#allocation65_spill]] }
0x1986   : > { %v4766_v36 = vld [vmem:[%s8520_s4] sm:$0xff]  ;;  %v4767_v18 = vld [vmem:[%s8520_s4 + $0x8] sm:$0xff]  ;;  %v4768_v40 = vld [vmem:[%s8520_s4 + $0x10] sm:$0xff] }
0x1987   : > { %v6517_v16 = vpack.c.bf16 %v4767_v18, %v4766_v36  ;;  %v4769_v41 = vld [vmem:[%s8520_s4 + $0x18] sm:$0xff]  ;;  %v4770_v44 = vld [vmem:[%s8520_s4 + $0x20] sm:$0xff]  ;;  %v4771_v45 = vld [vmem:[%s8520_s4 + $0x28] sm:$0xff] }
0x1988   : > { %v6520_v42 = vpack.c.bf16 %v4769_v41, %v4768_v40  ;;  %v6523_v46 = vpack.c.bf16 %v4771_v45, %v4770_v44  ;;  %v4772_v47 = vld [vmem:[%s8520_s4 + $0x30] sm:$0xff]  ;;  %v4773_v48 = vld [vmem:[%s8520_s4 + $0x38] sm:$0xff] }
0x19f1   : > { %v4521_v51 = vpop.permute.xlu1 %4520 }
0x19f2   : > { %v4530_v50 = vsel %vm4528_vm6, %v4527_v49, %v4521_v51  ;;  %v4519_v2 = vpop.permute.xlu0 %4518  ;;  %v6526_v49 = vpack.c.bf16 %v4773_v48, %v4772_v47  ;;  %v4765_v51 = vld [vmem:[%s1715_s28] sm:$0xff]  ;;  %s8225_s28 = sand.u32 1, %s7208_s7  }
0x19f3   : > { %v8171_v54 = vadd.f32 %v4530_v50, %v8028_v38  ;;  %v4529_v56 = vsel %vm4528_vm6, %v4526_v52, %v4519_v2  ;;  %v5864_v52 = vld [vmem:[#allocation11] ss:$0 sm:$0xff]  ;;  %s5778_s10 = sshll.u32 %s8225_s28, 3 }
0x19f4   : > { %v8174_v58 = vadd.f32 %v4529_v56, %v8025_v10  ;;  %s8229_s4 = scalar_lea.vmem [#allocation18], %s5778_s10  ;;  %s7295_s10 = smov 32  }
0x19f5   : > { %v4538_v55 = vsel %vm1989_vm10, %v8171_v54, 0.0 }
0x19f6   : > { %4539 = vadd.xlane.f32.xlu1 %v4538_v55  ;;  %v4535_v53 = vsel %vm1989_vm10, %v8174_v58, 0.0 }
0x19f7   : > { %4536 = vadd.xlane.f32.xlu0 %v4535_v53 }
0x1a83   : > { %v4540_v59 = vpop.xlane.xlu1 %4539 }
0x1a84   : > { %v4542_v57 = vmul.f32 0.03125, %v4540_v59  ;;  %v4537_v38 = vpop.xlane.xlu0 %4536 }
0x1a85   : > { %v4541_v62 = vmul.f32 0.03125, %v4537_v38 }
0x1a86   : > { %v4544_v0 = vsub.f32 %v8171_v54, %v4542_v57  ;;  %v5870_v57 = vld [vmem:[%s8522_s1] ss:$0 sm:$0xff]  ;;  %s8525_s1 = sld [smem:[#allocation29_spill]] }
0x1a87   : > { %v4543_v10 = vsub.f32 %v8174_v58, %v4541_v62 }
0x1a88   : > { %v4546_v4 = vmul.f32 %v4544_v0, %v4544_v0 }
0x1a89   : > { %v4545_v1 = vmul.f32 %v4543_v10, %v4543_v10 }
0x1a8a   : > { %v4550_v14 = vsel %vm1989_vm10, %v4546_v4, 0.0 }
0x1a8b   : > { %v4547_v60 = vsel %vm1989_vm10, %v4545_v1, 0.0  ;;  %v5880_v1 = vld [vmem:[#allocation2] ss:$0 sm:$0xff] }
0x1a8c   : > { %4548 = vadd.xlane.f32.xlu0 %v4547_v60 }
0x1a90   : > { %4551 = vadd.xlane.f32.xlu0 %v4550_v14  ;;  %v5867_v14 = vld [vmem:[#allocation14] ss:$0 sm:$0xff] }
0x1aa6   : > { %5041 = vperm.xlu0 %6794, %v5880_v1  }
0x1b19   : > { %v4549_v21 = vpop.xlane.xlu0 %4548 }
0x1b1a   : > { %v4553_v31 = vmul.f32 0.03125, %v4549_v21 }
0x1b1c   : > { %v4555_v22 = vadd.f32 1e-05, %v4553_v31 }
0x1b1d   : > { %v4552_v8 = vpop.xlane.xlu0 %4551 }
0x1b1e   : > { %6864 = vrsqrt.f32 %v4555_v22  ;;  %v4554_v23 = vmul.f32 0.03125, %v4552_v8 }
0x1b20   : > { %v4556_v9 = vadd.f32 1e-05, %v4554_v23 }
0x1b22   : > { %6866 = vrsqrt.f32 %v4556_v9 }
0x1b25   : > { %v5042_v9 = vpop.permute.xlu0 %5041 }
0x1b28   : > { %v6865_v24 = vpop.eup %6864 }
0x1b29   : > { %v4559_v37 = vmul.f32 %v6865_v24, %v4543_v10  ;;  %v5872_v10 = vld [vmem:[%s8523_s2] ss:$0 sm:$0xff]  ;;  %s8526_s2 = sshll.u32 %s7757_s22, 3 }
0x1b2a   : > { %s1722_s11 = scalar_lea.vmem %s8525_s1, %s8526_s2  ;;  %s7296_s1 = smov 64  }
0x1b2b   : > { %v4567_v39 = vmul.f32 %v5862_v25, %v4559_v37  ;;  %s8527_s2 = smov 96  }
0x1b2c   : > { %v6867_v29 = vpop.eup %6866 }
0x1b2d   : > { %v4560_v30 = vmul.f32 %v6867_v29, %v4544_v0  ;;  %v4575_v26 = vadd.f32 %v5863_v28, %v4567_v39  ;;  %v4855_v29 = vld [vmem:[%s1722_s11] sm:$0xff]  ;;  %s5890_s11 = sshll.u32 %s7757_s22, 5  ;;  %s5459_s22 = scalar_lea.sflag [#allocation19], %s8225_s28 }
0x1b2e   : > { %vm5057_vm11 = vcmp.gt.f32.partialorder %v4855_v29, 0.0 }
0x1b2f   : > { %v4568_v27 = vmul.f32 %v5862_v25, %v4560_v30  ;;  %6257 = vmatprep.mubr.msk.f32.mxu1 %vm1989_vm10, %v4575_v26  ;;  %v5058_v30 = vsel %vm5057_vm11, 1, %v7282_v63 }
0x1b31   : > { %v4576_v32 = vadd.f32 %v5863_v28, %v4568_v27 }
0x1b33   : > { %6258 = vmatmul.mubr.msk.f32.vlgmr.msra.gmra.mrb[22].mxu1 %vm1989_vm10, %v4576_v32 }
0x1b34   : > { %6287 = vmatprep.mubr.msk.f32.mxu1 %vm7294_vm7, %v7281_v15  ;;  %6518 = vmatpush3.bf16.msra.mxu1 %v6517_v16 }
0x1b35   : > { %6519 = vmatprep.subr.bf16.mxu1 %v7293_v43 }
0x1b38   : > { %6521 = vmatpush3.bf16.msra.mxu1 %v6520_v42 }
0x1b39   : > { %6522 = vmatprep.subr.bf16.mxu1 %v7293_v43 }
0x1b3c   : > { %6524 = vmatpush3.bf16.msra.mxu1 %v6523_v46 }
0x1b3d   : > { %6525 = vmatprep.subr.bf16.mxu1 %v7293_v43 }
0x1b40   : > { %6527 = vmatpush3.bf16.msra.mxu1 %v6526_v49 }
0x1b41   : > { %6536 = vmatprep.subr.bf16.mxu1 %v7293_v43 }
0x1b43   : > { %6288 = vmatmul.mubr.msk.f32.vlgmr.msra.gmra.mrb[24].mxu1 %vm4781_vm8, %v4765_v51 }
0x1b44   : > { %6308 = vmatprep.mubr.msk.f32.mxu1 %vm7294_vm7, %v7281_v15 }
0x1c06   : > { %v6259_v50 = vpop.f32.mrb[22].mxu1 }
0x1c07   : > { %v4666_v2 = vadd.f32 %v6259_v50, %v5864_v52  ;;  %v4660_v56 = vpop.f32.mrb[23].mxu1 }
0x1c08   : > { %v4661_v55 = vadd.f32 %v5864_v52, %v4660_v56 }
0x1c09   : > { %v4670_v59 = vmax.f32 %v4666_v2, 0.0 }
0x1c0a   : > { %v4669_v53 = vmax.f32 %v4661_v55, 0.0 }
0x1c0c   : > { %6268 = vmatprep.mubr.msk.f32.mxu0 %vm1989_vm10, %v4669_v53 }
0x1c0d   : > { %6269 = vmatmul.mubr.msk.f32.vlgmr.msra.gmra.mrb[18].mxu0 %vm1989_vm10, %v4670_v59 }
0x1c0e   : > { %6294 = vmatprep.mubr.msk.f32.mxu0 %vm7294_vm7, %v7281_v15 }
0x1c16   : > { %v4851_v38 = vpop.f32.mrb[24].mxu1 }
0x1c17   : > { %v6289_v62 = vpop.f32.mrb[25].mxu1  ;;  %v8220_v0 = vadd.f32 %v5870_v57, %v4851_v38 }
0x1c19   : > { %v4863_v60 = vmul.f32 %v5872_v10, %v8220_v0  ;;  %5417 = vst.msk [vmem:[%s8229_s4] sm:$0xff] %vm1989_vm10, %v8220_v0 }
0x1c1b   : > { %v4864_v4 = vsel %vm1989_vm10, %v4863_v60, 0.0  ;;  %v5320_v60 = vld [vmem:[%s7555_s14] sm:$0xff] }
0x1c1c   : > { %4865 = vadd.xlane.f32.xlu1 %v4864_v4  ;;  %v5321_v4 = vld [vmem:[%s7555_s14 + $0x8] sm:$0xff] }
0x1ca9   : > { %v4866_v22 = vpop.xlane.xlu1 %4865 }
0x1ce0   : > { %v6270_v17 = vpop.f32.mrb[18].mxu0 }
0x1ce1   : > { %v4760_v6 = vadd.f32 %v6270_v17, %v5867_v14  ;;  %v4754_v7 = vpop.f32.mrb[19].mxu0  ;;  %v5323_v17 = vld [vmem:[%s7555_s14 + $0x18] sm:$0xff] }
0x1ce2   : > { %v4755_v5 = vadd.f32 %v5867_v14, %v4754_v7  ;;  %v5322_v14 = vld [vmem:[%s7555_s14 + $0x10] sm:$0xff]  ;;  %v5324_v7 = vld [vmem:[%s7555_s14 + $0x20] sm:$0xff] }
0x1ce3   : > { %v8235_v11 = vadd.f32 %v4760_v6, %v8171_v54  ;;  %v5876_v54 = vld [vmem:[#allocation15] ss:$0 sm:$0xff]  ;;  %v6543_v6 = vpack.c.bf16 %v5323_v17, %v5322_v14 }
0x1ce4   : > { %v8238_v12 = vadd.f32 %v4755_v5, %v8174_v58  ;;  %v4954_v58 = vmul.f32 %v5876_v54, %v8220_v0  ;;  %v5325_v5 = vld [vmem:[%s7555_s14 + $0x28] sm:$0xff]  ;;  %v5327_v54 = vld [vmem:[%s7555_s14 + $0x38] sm:$0xff] }
0x1ce6   : > { %v6529_v13 = vpack.c.bf16 %v8235_v11, %v8238_v12 }
0x1ce8   : > { %6531 = vmatpush3.bf16.xpose.msk.msra.mxu0 %vm6530_vm9, %v6529_v13  ;;  %6538 = vmatpush3.bf16.msra.mxu1 %v6529_v13 }
0x1ce9   : > { %6532 = vmatprep.subr.bf16.mxu0 %v7293_v43  ;;  %6316 = vmatprep.subr.mxu1 %v7281_v15 }
0x1cef   : > { %6295 = vmatmul.mubr.msk.f32.vlgmr.msra.gmra.mrb[20].mxu0 %vm1989_vm10, %v4867_v61  ;;  %v5326_v61 = vld [vmem:[%s7555_s14 + $0x30] sm:$0xff] }
0x1cf0   : > { %6535 = vmatpush3.bf16.xpose.msk.msra.mxu0 %vm6530_vm9, %v6529_v13  ;;  %6301 = vmatprep.mubr.msk.f32.mxu0 %vm7294_vm7, %v7281_v15  ;;  %v6546_v13 = vpack.c.bf16 %v5325_v5, %v5324_v7 }
0x1cf1   : > { %6311 = vmatprep.subr.mxu0 %v7281_v15 }
0x1cf7   : > { %6302 = vmatmul.mubr.msk.f32.vlgmr.msra.gmra.mrb[22].mxu0 %vm1989_vm10, %v4954_v58  ;;  %v6549_v58 = vpack.c.bf16 %v5327_v54, %v5326_v61 }
0x1cf8   : > { %6313 = vmatprep.mubr.msk.f32.mxu0 %vm7294_vm7, %v7281_v15 }
0x1dc2   : > { %v4943_v20 = vpop.f32.mrb[20].mxu0 }
0x1dc3   : > { %v6296_v21 = vpop.f32.mrb[21].mxu0  ;;  %v5031_v31 = vrot.slane %v4943_v20, %v7766_v3  ;;  %v5328_v20 = vld [vmem:[%s7555_s14 + $0x40] sm:$0xff] }
0x1dc4   : > { %v5329_v21 = vld [vmem:[%s7555_s14 + $0x48] sm:$0xff] }
0x1dc5   : > { %v5032_v8 = vadd.f32 %v5031_v31, %v4866_v22  ;;  %v6552_v31 = vpack.c.bf16 %v5329_v21, %v5328_v20  ;;  %v5330_v22 = vld [vmem:[%s7555_s14 + $0x50] sm:$0xff] }
0x1dca   : > { %v5024_v23 = vpop.f32.mrb[22].mxu0 }
0x1dcb   : > { %v5033_v24 = vadd.f32 %v5032_v8, %v5024_v23  ;;  %v6303_v25 = vpop.f32.mrb[23].mxu0  ;;  %v5331_v8 = vld [vmem:[%s7555_s14 + $0x58] sm:$0xff] }
0x1dcc   : > { %v6555_v23 = vpack.c.bf16 %v5331_v8, %v5330_v22 }
0x1dcd   : > { %v5044_v37 = vadd.f32 %v5042_v9, %v5033_v24  ;;  %v5332_v9 = vld [vmem:[%s7555_s14 + $0x60] sm:$0xff]  ;;  %v5333_v24 = vld [vmem:[%s7555_s14 + $0x68] sm:$0xff] }
0x1dce   : > { %v6558_v25 = vpack.c.bf16 %v5333_v24, %v5332_v9 }
0x1dcf   : > { %v5045_v28 = vsel %vm8078_vm4, %v5044_v37, -1e+30 }
0x1dd0   : > { %v5046_v39 = vsel %vm3784_vm5, %v5045_v28, -inf }
0x1dd1   : > { %5047 = vmax.xlane.f32.xlu1 %v5046_v39 }
0x1de2   : > { %5060 = vperm.xlu1 %6795, %v5058_v30  }
0x1e5e   : > { %v5048_v3 = vpop.xlane.xlu1 %5047 }
0x1e5f   : > { %v5049_v26 = vsub.f32 %v5045_v28, %v5048_v3  ;;  %v5335_v28 = vld [vmem:[%s7555_s14 + $0x78] sm:$0xff] }
0x1e61   : > { %v5050_v27 = vmul.f32 1.442695, %v5049_v26 }
0x1e62   : > { %v5061_v32 = vpop.permute.xlu1 %5060 }
0x1e63   : > { %6868 = vpow2.f32 %v5050_v27  ;;  %vm5062_vm12 = vcmp.eq.s32.totalorder %v5061_v32, 1 }
0x1e64   : > { %v5063_v33 = vsel %vm5062_vm12, %v5044_v37, -1e+30  ;;  %v5334_v37 = vld [vmem:[%s7555_s14 + $0x70] sm:$0xff] }
0x1e65   : > { %v5064_v34 = vsel %vm3784_vm5, %v5063_v33, -inf  ;;  %v6561_v39 = vpack.c.bf16 %v5335_v28, %v5334_v37 }
0x1e66   : > { %v5065_v35 = vrot.slane %v5064_v34, 4 }
0x1e68   : > { %v5066_v19 = vmax.f32 %v5064_v34, %v5065_v35 }
0x1e6a   : > { %v5067_v36 = vrot.slane %v5066_v19, 2 }
0x1e6c   : > { %v5068_v18 = vmax.f32 %v5066_v19, %v5067_v36 }
0x1e6d   : > { %v6869_v40 = vpop.eup %6868 }
0x1e6e   : > { %v5069_v16 = vrot.slane %v5068_v18, 1  ;;  %v5052_v41 = vsel %vm3784_vm5, %v6869_v40, 0.0 }
0x1e6f   : > { %5053 = vadd.xlane.f32.xlu1 %v5052_v41 }
0x1e70   : > { %v5070_v63 = vmax.f32 %v5068_v18, %v5069_v16 }
0x1e72   : > { %v5071_v42 = vsub.f32 %v5063_v33, %v5070_v63 }
0x1e74   : > { %v5072_v44 = vmul.f32 1.442695, %v5071_v42 }
0x1e76   : > { %6870 = vpow2.f32 %v5072_v44 }
0x1e80   : > { %v6871_v45 = vpop.eup %6870 }
0x1e81   : > { %v5074_v46 = vsel %vm3784_vm5, %v6871_v45, 0.0 }
0x1e82   : > { %v5075_v47 = vrot.slane %v5074_v46, 4 }
0x1e84   : > { %v5076_v48 = vadd.f32 %v5075_v47, %v5074_v46 }
0x1e86   : > { %v5077_v49 = vrot.slane %v5076_v48, 2 }
0x1e88   : > { %v5078_v51 = vadd.f32 %v5077_v49, %v5076_v48 }
0x1e8a   : > { %v5079_v52 = vrot.slane %v5078_v51, 1 }
0x1e8c   : > { %v5080_v50 = vadd.f32 %v5079_v52, %v5078_v51 }
0x1e8e   : > { %6872 = vrcp.f32 %v5080_v50 }
0x1e98   : > { %v6873_v2 = vpop.eup %6872 }
0x1e99   : > { %v5082_v56 = vmul.f32 %v6873_v2, %v6871_v45 }
0x1e9b   : > { %6312 = vmatpush3.xpose.msk.msra.mxu0 %vm3784_vm5, %v5082_v56 }
0x1e9c   : > { %6539 = vmatprep.subr.bf16.mxu0 %v7293_v43 }
0x1efc   : > { %v5054_v55 = vpop.xlane.xlu1 %5053 }
0x1efd   : > { %6874 = vrcp.f32 %v5054_v55 }
0x1f07   : > { %v6875_v53 = vpop.eup %6874 }
0x1f08   : > { %v5056_v59 = vmul.f32 %v6875_v53, %v6869_v40 }
0x1f0a   : > { %6309 = vmatmul.mubr.msk.f32.vlgmr.msra.gmra.mrb[26].mxu1 %vm3784_vm5, %v5056_v59  ;;  %6314 = vmatmul.mubr.msk.f32.vlgmr.msra.gmra.mrb[24].mxu0 %vm3784_vm5, %v5056_v59 }
0x1f0b   : > { %6317 = vmatpush3.msra.mxu1 %v8220_v0  ;;  %6318 = vmatprep.mubr.msk.f32.mxu1 %vm7294_vm7, %v7281_v15 }
0x1f0c   : > { %6353 = vmatprep.mubr.msk.f32.mxu0 %vm7294_vm7, %v7281_v15  ;;  %v6540_v15 = vpack.c.bf16 %v5321_v4, %v5320_v60 }
0x1f0e   : > { %6541 = vmatpush3.bf16.msra.mxu0 %v6540_v15 }
0x1f0f   : > { %6542 = vmatprep.subr.bf16.mxu0 %v7293_v43 }
0x1f12   : > { %6544 = vmatpush3.bf16.msra.mxu0 %v6543_v6 }
0x1f13   : > { %6545 = vmatprep.subr.bf16.mxu0 %v7293_v43 }
0x1f16   : > { %6547 = vmatpush3.bf16.msra.mxu0 %v6546_v13 }
0x1f17   : > { %6548 = vmatprep.subr.bf16.mxu0 %v7293_v43 }
0x1f1a   : > { %6550 = vmatpush3.bf16.msra.mxu0 %v6549_v58 }
0x1f1b   : > { %6551 = vmatprep.subr.bf16.mxu0 %v7293_v43 }
0x1f1e   : > { %6553 = vmatpush3.bf16.msra.mxu0 %v6552_v31 }
0x1f1f   : > { %6554 = vmatprep.subr.bf16.mxu0 %v7293_v43 }
0x1f22   : > { %6556 = vmatpush3.bf16.msra.mxu0 %v6555_v23 }
0x1f23   : > { %6557 = vmatprep.subr.bf16.mxu0 %v7293_v43 }
0x1f26   : > { %6559 = vmatpush3.bf16.msra.mxu0 %v6558_v25 }
0x1f27   : > { %6560 = vmatprep.subr.bf16.mxu0 %v7293_v43 }
0x1f2a   : > { %6562 = vmatpush3.bf16.msra.mxu0 %v6561_v39 }
0x1fdd   : > { %v5152_v57 = vpop.f32.mrb[26].mxu1  ;;  %v5225_v38 = vpop.f32.mrb[24].mxu0 }
0x1fde   : > { %v6315_v62 = vpop.f32.mrb[25].mxu0  ;;  %6319 = vmatmul.mubr.msk.f32.vlgmr.msra.gmra.mrb[28].mxu1 %vm3687_vm0, %v5225_v38  ;;  %5305 = vrot.lane.b32.xlu0 %v5152_v57, %s7295_s10  ;;  %v6310_v10 = vpop.f32.mrb[27].mxu1  ;;  %v5302_v1 = vmul.f32 %v5152_v57, %v8220_v0  ;;  %s8309_s10 = scalar_lea.vmem %s7570_s19, %s5890_s11 }
0x1fe2   : > { %5309 = vrot.lane.b32.xlu0 %v5302_v1, %s7296_s1  ;;  %s5887_s1 = sshll.u32 %s7593_s0, 7 }
0x1fe3   : > { %s8320_s5 = scalar_lea.hbm %s7565_s30, %s5887_s1 }
0x2050   : > { %v5306_v26 = vpop.permute.xlu0 %5305 }
0x2051   : > { %v5316_v43 = vsel %vm1989_vm10, %v8220_v0, %v5306_v26 }
0x2054   : > { %v5310_v27 = vpop.permute.xlu0 %5309 }
0x2055   : > { %v5317_v32 = vsel %vm4781_vm8, %v5316_v43, %v5310_v27 }
0x20b1   : > { %v5298_v29 = vpop.f32.mrb[28].mxu1 }
0x20b2   : > { %v5303_v30 = vmul.f32 %v5298_v29, %v8220_v0  ;;  %v6320_v3 = vpop.f32.mrb[29].mxu1 }
0x20b4   : > { %5313 = vrot.lane.b32.xlu0 %v5303_v30, %s8527_s2  ;;  %s5490_s2 = sshll.u32 %s8229_s4, 4  ;;  %s5491_s2 = int_to_ptr.vmem [resolvable:$true] %s5490_s2 }
0x20b5   : > { %s7102_s11 = scalar_lea.vmem %s5491_s2, 128  ;;  %p7109_p2 = scmp.lt.s32.totalorder %s5491_s2, %s7107_s8 }
0x20b6   : > { %p7103_p8 = scmp.ne.s32.totalorder %s5491_s2, %s7102_s11  ;;  %p7110_p0 = scmp.lt.s32.totalorder %s7108_s9, %s7102_s11 }
0x20b8   : > { %p7104_p13 = pnand %p7103_p8, %p8528_p11  ;;  %p7111_p3 = por %p7110_p0, %p7109_p2 }
0x20ba   : > { %p7105_p1 = pneg %p7104_p13 }
0x20bc   : > { %p7112_p4 = pnand %p7111_p3, %p7105_p1 }
0x20d2   : > { %5418 = vxpose.xlu0.b32.start [1/2] (short) (narrow) %v8238_v12, 32 }
0x20d6   : > { %5419 = vxpose.xlu0.b32.end [2/2] (short) (narrow) %v8235_v11, 32 }
0x2126   : > { %v5314_v33 = vpop.permute.xlu0 %5313 }
0x2127   : > { %v5319_v34 = vsel %vm5318_vm13, %v5317_v32, %v5314_v33 }
0x2128   : > { %6354 = vmatmul.mubr.f32.vlgmr.msra.gmra.mrb[26].mxu0 %v5319_v34 }
0x2152   : > { %v5434_v11 = vpop.trf.xlu0 }
0x2153   : > { %5450 = vst.msk [vmem:[%s8309_s10] sm:$0xff] %vm3784_vm5, %v5434_v11 }
0x2156   : > { %v5435_v12 = vpop.trf.xlu0 }
0x2157   : > { %5451 = vst.msk [vmem:[%s8309_s10 + $0x8] sm:$0xff] %vm3784_vm5, %v5435_v12 }
0x215a   : > { %v5436_v0 = vpop.trf.xlu0 }
0x215b   : > { %5452 = vst.msk [vmem:[%s8309_s10 + $0x10] sm:$0xff] %vm3784_vm5, %v5436_v0 }
0x215c   : > { %7115 = shalt.err (!%p7112_p4)
}
0x215d   : > { %s7116_s4 = scalar_lea.hbm %s8320_s5, 128  ;;  %s7120_s6 = scalar_lea.hbm %s7565_s30, 256 }
0x215e   : > { %p7117_p12 = scmp.ne.s32.totalorder %s8320_s5, %s7116_s4  ;;  %p7121_p9 = scmp.lt.u32.totalorder %s8320_s5, %s7565_s30 }
0x215f   : > { %p7122_p10 = scmp.lt.u32.totalorder %s7120_s6, %s7116_s4  ;;  %p7124_p8 = scmp.lt.u32.totalorder %s7116_s4, %s8320_s5 }
0x2160   : > { %p7118_p5 = pnand %p7117_p12, %p8528_p11 }
0x2161   : > { %p7123_p7 = por %p7122_p10, %p7121_p9 }
0x2162   : > { %p7119_p6 = pneg %p7118_p5 }
0x2163   : > { %p7125_p13 = por %p7124_p8, %p7123_p7 }
0x2165   : > { %p7126_p1 = pnand %p7125_p13, %p7119_p6 }
0x2167   : > { %7129 = shalt.err (!%p7126_p1)
}
0x2168   : > { %6596 = dma.vmem_to_hbm [thread:$0]  (%p8528_p11), %s5491_s2, 128, %s8320_s5, %s5459_s22   ;;  %v5437_v35 = vpop.trf.xlu0  ;;  %vm5415_vm14 = vcmask 253952  }
0x2169   : > { %5453 = vst.msk [vmem:[%s8309_s10 + $0x18] sm:$0xff] %vm3784_vm5, %v5437_v35  ;;  %s5886_s9 = sshll.u32 %s7593_s0, 4  ;;  %s1697_s8 = scalar_lea.vmem [#allocation17], %s8225_s28 }
0x216a   : > { %s5477_s1 = sshll.u32 %s1697_s8, 4  ;;  %s8342_s5 = scalar_lea.hbm %s7560_s3, %s5886_s9  ;;  %s8344_s1 = int_to_ptr.vmem [resolvable:$true] %s5477_s1 }
0x216b   : > { %s5455_s10 = scalar_lea.sflag [#allocation5], %s8225_s28  ;;  %s7130_s2 = scalar_lea.vmem %s8344_s1, 16 }
0x216c   : > { %p7131_p2 = scmp.ne.s32.totalorder %s8344_s1, %s7130_s2  ;;  %s7298_s0 = smov [#allocation17]  }
0x216d   : > { %s7134_s22 = sshll.u32 %s7298_s0, 4  ;;  %s7135_s22 = int_to_ptr.vmem [resolvable:$false] %s7134_s22 }
0x216e   : > { %p7132_p0 = pnand %p7131_p2, %p8528_p11  ;;  %s7136_s11 = scalar_lea.vmem %s7135_s22, 32 }
0x216f   : > { %p7137_p4 = scmp.lt.s32.totalorder %s8344_s1, %s7135_s22  ;;  %p7138_p12 = scmp.lt.s32.totalorder %s7136_s11, %s7130_s2 }
0x2170   : > { %p7133_p3 = pneg %p7132_p0 }
0x2171   : > { %p7139_p5 = por %p7138_p12, %p7137_p4 }
0x2173   : > { %p7140_p6 = pnand %p7139_p5, %p7133_p3 }
0x21fb   : > { %v5402_v19 = vpop.f32.mrb[26].mxu0 }
0x21fc   : > { %v5406_v36 = vsel %vm1989_vm10, %v5402_v19, 0.0  ;;  %v6355_v18 = vpop.f32.mrb[27].mxu0 }
0x21fd   : > { %v5407_v40 = vrot.slane %v5406_v36, 4 }
0x21ff   : > { %v5408_v16 = vadd.f32 %v5407_v40, %v5406_v36 }
0x2201   : > { %v5409_v41 = vrot.slane %v5408_v16, 2 }
0x2203   : > { %v5410_v63 = vadd.f32 %v5409_v41, %v5408_v16 }
0x2205   : > { %v5411_v42 = vrot.slane %v5410_v63, 1 }
0x2207   : > { %v5412_v44 = vadd.f32 %v5411_v42, %v5410_v63 }
0x2209   : > { %v5414_v45 = vmul.f32 0.125, %v5412_v44 }
0x220b   : > { %5416 = vst.msk [vmem:[%s1697_s8] sm:$0x1] %vm5415_vm14, %v5414_v45 }
0x220c   : > { %7143 = shalt.err (!%p7140_p6)
}
0x220d   : > { %s7144_s28 = scalar_lea.hbm %s8342_s5, 16  ;;  %s7148_s4 = scalar_lea.hbm %s7560_s3, 32 }
0x220e   : > { %p7145_p9 = scmp.ne.s32.totalorder %s8342_s5, %s7144_s28  ;;  %p7149_p8 = scmp.lt.u32.totalorder %s8342_s5, %s7560_s3 }
0x220f   : > { %p7150_p13 = scmp.lt.u32.totalorder %s7148_s4, %s7144_s28  ;;  %p7152_p2 = scmp.lt.u32.totalorder %s7144_s28, %s8342_s5 }
0x2210   : > { %p7146_p10 = pnand %p7145_p9, %p8528_p11 }
0x2211   : > { %p7151_p1 = por %p7150_p13, %p7149_p8 }
0x2212   : > { %p7147_p7 = pneg %p7146_p10 }
0x2213   : > { %p7153_p0 = por %p7152_p2, %p7151_p1 }
0x2215   : > { %p7154_p3 = pnand %p7153_p0, %p7147_p7 }
0x2217   : > { %7157 = shalt.err (!%p7154_p3)
}
0x2218   : > { %6595 = dma.vmem_to_hbm [thread:$0]  (%p8528_p11), %s8344_s1, 16, %s8342_s5, %s5455_s10  }
0x2219 PF: > { %s8529_s6 = sld [smem:[#allocation69_spill]]  ;;  %s8530_s9 = sld [smem:[#allocation73_spill]] }
0x221a   : > { %p6647_p4 = scmp.ge.s32.totalorder %s7216_s16, 2 }
0x221f   : > { %s5505_s8 = sand.u32 1, %s8529_s6   ;;  %p8531_p12 = scmp.ne.s32.totalorder %s8530_s9, 0 }
0x2220   : > { %s5506_s2 = scalar_lea.sflag [#allocation5], %s5505_s8 }
0x2221   : > { %p6625_p5 = pnand %p6647_p4, %p8531_p12 }
0x2223   : > { %7195 = dma.done.wait (!%p6625_p5), %s5506_s2, 16  }
0x2224   : > { %7197 = vsyncadd (!%p6625_p5), %s5506_s2, 4294967280  ;;  %s5514_s0 = scalar_lea.sflag [#allocation19], %s5505_s8 }
0x2225   : > { %7199 = dma.done.wait (!%p6625_p5), %s5514_s0, 128  }
0x2226   : > { %7201 = vsyncadd (!%p6625_p5), %s5514_s0, 4294967168  ;;  %s8532_s16 = sld [smem:[#allocation71_spill]]  ;;  %s8533_s26 = sld [smem:[#allocation70_spill]] }
0x2227   : > { %s8534_s11 = sld [smem:[#allocation72_spill]]  ;;  %s8535_s10 = smov %s7208_s7 }
0x222c   : > { %p128_p11 = scmp.ge.s32.totalorder %s8532_s16, 4   ;;  %s8536_s7 = smov %s8533_s26 }
0x222e   :  { %130 = sbr.rel (!%p128_p11) target bundleno = 113 (0x71), region = 380 }
0x2235   :  { %5527 = vsyncpa [#allocation4], 1 }
0x2236   :  { %5529 = vsyncpa [#allocation4 + $0x1], 1 }
0x2237   :  { %5530 = vsyncpa [#allocation7], 1 }
0x2238   :  { %5531 = vsyncpa [#allocation10], 1 }
0x2239   :  { %5532 = vsyncpa [#allocation13], 1 }
0x223a   :  { %5533 = vsyncpa [#allocation16], 1 }
0x223b   :  { %5534 = vsyncpa [#allocation5], 1 }
0x223c   :  { %5536 = vsyncpa [#allocation5 + $0x1], 1 }
0x223d   :  { %5537 = vsyncpa [#allocation19], 1 }
0x223e   :  { %5539 = vsyncpa [#allocation19 + $0x1], 1 }

</bundles_post_ra>
